<compile_context>
chip_gen: v5e
topology: v5e:2x2
jax: 0.10.0
libtpu: 0.0.40
codegen_flags: <defaults>
</compile_context>

<pallas_src>
import functools
import math

import jax
import jax.numpy as jnp
from jax import lax
from jax.experimental import pallas as pl
from jax.experimental.pallas import tpu as pltpu


# ----------------------------------------------------------------------------
# Tile-size helper: largest tile <= target that divides `dim` and is a multiple
# of `unit`; falls back to the full dim (allowed by the (8,128) rule).
# ----------------------------------------------------------------------------
def _fit_tile(dim, target, unit):
    if dim <= target:
        return dim
    t = (target // unit) * unit
    while t >= unit:
        if dim % t == 0:
            return t
        t -= unit
    return dim


def _gelu(y):
    # original BERT gelu: x * 0.5 * (1 + erf(x / sqrt(2))), computed in f32
    return y * 0.5 * (1.0 + lax.erf(y * (1.0 / math.sqrt(2.0))))


# ----------------------------------------------------------------------------
# Tiled linear (optional GELU): bf16 x bf16 -> f32 -> bf16 out
# Full-K fast path (no acc scratch, no K grid axis) + K-tiled fallback.
# ----------------------------------------------------------------------------
def _matmul_fullk_kernel(x_ref, w_ref, b_ref, o_ref, *, act):
    y = jnp.dot(x_ref[...], w_ref[...],
                preferred_element_type=jnp.float32) + b_ref[...]
    if act == "gelu":
        y = _gelu(y)
    o_ref[...] = y.astype(o_ref.dtype)


def _matmul_kernel(x_ref, w_ref, b_ref, o_ref, acc_ref, *, act):
    @pl.when(pl.program_id(2) == 0)
    def _():
        acc_ref[...] = jnp.zeros_like(acc_ref)

    acc_ref[...] += jnp.dot(x_ref[...], w_ref[...],
                            preferred_element_type=jnp.float32)

    @pl.when(pl.program_id(2) == pl.num_programs(2) - 1)
    def _():
        y = acc_ref[...] + b_ref[...]
        if act == "gelu":
            y = _gelu(y)
        o_ref[...] = y.astype(o_ref.dtype)


def pallas_linear(x, w, b, act="none", out_dtype=jnp.bfloat16,
                  tm_target=512, tn_target=512, tk_target=None):
    """x: (M, K), w: (K, N), b: (1, N) f32.  tk_target=None -> full-K tiles."""
    M, K = x.shape
    N = w.shape[1]
    tm = _fit_tile(M, tm_target, 8)
    tn = _fit_tile(N, tn_target, 128)
    tk = K if tk_target is None else _fit_tile(K, tk_target, 128)

    if tk == K:
        kern = functools.partial(_matmul_fullk_kernel, act=act)
        return pl.pallas_call(
            kern,
            out_shape=jax.ShapeDtypeStruct((M, N), out_dtype),
            grid=(M // tm, N // tn),
            in_specs=[
                pl.BlockSpec((tm, K), lambda i, j: (i, 0)),
                pl.BlockSpec((K, tn), lambda i, j: (0, j)),
                pl.BlockSpec((1, tn), lambda i, j: (0, j)),
            ],
            out_specs=pl.BlockSpec((tm, tn), lambda i, j: (i, j)),
            compiler_params=pltpu.CompilerParams(
                dimension_semantics=("parallel", "parallel")),
        )(x, w, b)

    kern = functools.partial(_matmul_kernel, act=act)
    return pl.pallas_call(
        kern,
        out_shape=jax.ShapeDtypeStruct((M, N), out_dtype),
        grid=(M // tm, N // tn, K // tk),
        in_specs=[
            pl.BlockSpec((tm, tk), lambda i, j, k: (i, k)),
            pl.BlockSpec((tk, tn), lambda i, j, k: (k, j)),
            pl.BlockSpec((1, tn), lambda i, j, k: (0, j)),
        ],
        out_specs=pl.BlockSpec((tm, tn), lambda i, j, k: (i, j)),
        scratch_shapes=[pltpu.VMEM((tm, tn), jnp.float32)],
        compiler_params=pltpu.CompilerParams(
            dimension_semantics=("parallel", "parallel", "arbitrary")),
    )(x, w, b)


# ----------------------------------------------------------------------------
# Fused: linear + residual add + LayerNorm (LN over full hidden dim).
# Full-K fast path + K-tiled fallback (for K = intermediate size).
# ----------------------------------------------------------------------------
def _matmul_res_ln_fullk_kernel(x_ref, w_ref, b_ref, r_ref, g_ref, bt_ref,
                                o_ref, *, eps):
    h = (jnp.dot(x_ref[...], w_ref[...], preferred_element_type=jnp.float32)
         + b_ref[...] + r_ref[...].astype(jnp.float32))
    mu = jnp.mean(h, axis=-1, keepdims=True)
    d = h - mu
    var = jnp.mean(d * d, axis=-1, keepdims=True)
    y = d * lax.rsqrt(var + eps)
    o_ref[...] = (y * g_ref[...] + bt_ref[...]).astype(o_ref.dtype)


def _matmul_res_ln_kernel(x_ref, w_ref, b_ref, r_ref, g_ref, bt_ref, o_ref,
                          acc_ref, *, eps):
    @pl.when(pl.program_id(1) == 0)
    def _():
        acc_ref[...] = jnp.zeros_like(acc_ref)

    acc_ref[...] += jnp.dot(x_ref[...], w_ref[...],
                            preferred_element_type=jnp.float32)

    @pl.when(pl.program_id(1) == pl.num_programs(1) - 1)
    def _():
        h = acc_ref[...] + b_ref[...] + r_ref[...].astype(jnp.float32)
        mu = jnp.mean(h, axis=-1, keepdims=True)
        d = h - mu
        var = jnp.mean(d * d, axis=-1, keepdims=True)
        y = d * lax.rsqrt(var + eps)
        o_ref[...] = (y * g_ref[...] + bt_ref[...]).astype(o_ref.dtype)


def pallas_linear_res_ln(x, w, b, res, gamma, beta, eps=1e-12,
                         out_dtype=jnp.bfloat16, tm_target=512,
                         tk_target=1536):
    """x: (M, K), w: (K, H), b/gamma/beta: (1, H) f32, res: (M, H)."""
    M, K = x.shape
    H = w.shape[1]
    tm = _fit_tile(M, tm_target, 8)
    tk = _fit_tile(K, tk_target, 128)

    if tk == K:
        kern = functools.partial(_matmul_res_ln_fullk_kernel, eps=eps)
        return pl.pallas_call(
            kern,
            out_shape=jax.ShapeDtypeStruct((M, H), out_dtype),
            grid=(M // tm,),
            in_specs=[
                pl.BlockSpec((tm, K), lambda i: (i, 0)),
                pl.BlockSpec((K, H), lambda i: (0, 0)),
                pl.BlockSpec((1, H), lambda i: (0, 0)),
                pl.BlockSpec((tm, H), lambda i: (i, 0)),
                pl.BlockSpec((1, H), lambda i: (0, 0)),
                pl.BlockSpec((1, H), lambda i: (0, 0)),
            ],
            out_specs=pl.BlockSpec((tm, H), lambda i: (i, 0)),
            compiler_params=pltpu.CompilerParams(
                dimension_semantics=("parallel",)),
        )(x, w, b, res, gamma, beta)

    kern = functools.partial(_matmul_res_ln_kernel, eps=eps)
    return pl.pallas_call(
        kern,
        out_shape=jax.ShapeDtypeStruct((M, H), out_dtype),
        grid=(M // tm, K // tk),
        in_specs=[
            pl.BlockSpec((tm, tk), lambda i, k: (i, k)),
            pl.BlockSpec((tk, H), lambda i, k: (k, 0)),
            pl.BlockSpec((1, H), lambda i, k: (0, 0)),
            pl.BlockSpec((tm, H), lambda i, k: (i, 0)),
            pl.BlockSpec((1, H), lambda i, k: (0, 0)),
            pl.BlockSpec((1, H), lambda i, k: (0, 0)),
        ],
        out_specs=pl.BlockSpec((tm, H), lambda i, k: (i, 0)),
        scratch_shapes=[pltpu.VMEM((tm, H), jnp.float32)],
        compiler_params=pltpu.CompilerParams(
            dimension_semantics=("parallel", "arbitrary")),
    )(x, w, b, res, gamma, beta)


# ----------------------------------------------------------------------------
# Pure LayerNorm (embedding LN), tiled over rows
# ----------------------------------------------------------------------------
def _layernorm_kernel(x_ref, g_ref, b_ref, o_ref, *, eps):
    h = x_ref[...].astype(jnp.float32)
    mu = jnp.mean(h, axis=-1, keepdims=True)
    d = h - mu
    var = jnp.mean(d * d, axis=-1, keepdims=True)
    y = d * lax.rsqrt(var + eps)
    o_ref[...] = (y * g_ref[...] + b_ref[...]).astype(o_ref.dtype)


def pallas_layernorm(x, gamma, beta, eps=1e-12, out_dtype=jnp.bfloat16,
                     tm_target=512):
    M, H = x.shape
    tm = _fit_tile(M, tm_target, 8)
    kern = functools.partial(_layernorm_kernel, eps=eps)
    return pl.pallas_call(
        kern,
        out_shape=jax.ShapeDtypeStruct((M, H), out_dtype),
        grid=(M // tm,),
        in_specs=[
            pl.BlockSpec((tm, H), lambda i: (i, 0)),
            pl.BlockSpec((1, H), lambda i: (0, 0)),
            pl.BlockSpec((1, H), lambda i: (0, 0)),
        ],
        out_specs=pl.BlockSpec((tm, H), lambda i: (i, 0)),
        compiler_params=pltpu.CompilerParams(
            dimension_semantics=("parallel",)),
    )(x, gamma, beta)


# ----------------------------------------------------------------------------
# Flash-style attention reading the fused (B, S, 3H) QKV buffer directly.
# grid = (B, q_tiles, kv_tiles); online softmax; per-head static slicing.
# Accumulator is a single lane-dense (tq, H) VMEM slab -> one full-slab
# store per kv step and one lane-dense output write at finalize.
# ----------------------------------------------------------------------------
def _attention_kernel(q_ref, k_ref, v_ref, mask_ref, o_ref,
                      m_sc, l_sc, acc_sc, *, heads, head_dim, scale):
    ki = pl.program_id(2)

    @pl.when(ki == 0)
    def _():
        m_sc[...] = jnp.full_like(m_sc, -1e30)
        l_sc[...] = jnp.zeros_like(l_sc)
        acc_sc[...] = jnp.zeros_like(acc_sc)

    q_all = q_ref[0]            # (tq, H)  bf16  (Q slice of QKV buffer)
    k_all = k_ref[0]            # (tkv, H) bf16  (K slice)
    v_all = v_ref[0]            # (tkv, H) bf16  (V slice)
    mask = mask_ref[0, 0]       # (1, tkv) f32 additive mask
    tq = q_all.shape[0]

    pv_parts = []
    alpha_parts = []
    for h in range(heads):
        lo, hi = h * head_dim, (h + 1) * head_dim
        qh = q_all[:, lo:hi]                              # (tq, D)
        kh = k_all[:, lo:hi]                              # (tkv, D)
        vh = v_all[:, lo:hi]                              # (tkv, D)
        s = lax.dot_general(qh, kh, (((1,), (1,)), ((), ())),
                            preferred_element_type=jnp.float32) * scale
        s = s + mask                                      # (tq, tkv)
        m_prev = m_sc[h]                                  # (tq, 1)
        m_new = jnp.maximum(m_prev, jnp.max(s, axis=-1, keepdims=True))
        alpha = jnp.exp(m_prev - m_new)
        p = jnp.exp(s - m_new)
        l_sc[h] = alpha * l_sc[h] + jnp.sum(p, axis=-1, keepdims=True)
        m_sc[h] = m_new
        pv = jnp.dot(p.astype(vh.dtype), vh,
                     preferred_element_type=jnp.float32)  # (tq, D)
        pv_parts.append(pv)
        alpha_parts.append(jnp.broadcast_to(alpha, (tq, head_dim)))

    pv_all = jnp.concatenate(pv_parts, axis=-1)           # (tq, H)
    alpha_all = jnp.concatenate(alpha_parts, axis=-1)     # (tq, H)
    acc_sc[...] = alpha_all * acc_sc[...] + pv_all        # one dense store

    @pl.when(ki == pl.num_programs(2) - 1)
    def _():
        inv_parts = [
            jnp.broadcast_to(pl.reciprocal(l_sc[h], approx=True),
                             (tq, head_dim))
            for h in range(heads)
        ]
        inv_all = jnp.concatenate(inv_parts, axis=-1)     # (tq, H)
        o_ref[0] = (acc_sc[...] * inv_all).astype(o_ref.dtype)


def pallas_attention(qkv3, ext_mask, scale, heads,
                     tq_target=256, tkv_target=256):
    """qkv3: (B, S, 3H) fused projection output; ext_mask: (B,1,1,S) f32."""
    B, S, H3 = qkv3.shape
    H = H3 // 3
    head_dim = H // heads
    tq = _fit_tile(S, tq_target, 8)
    tkv = _fit_tile(S, tkv_target, 128)
    kern = functools.partial(_attention_kernel, heads=heads,
                             head_dim=head_dim, scale=scale)
    # Last-dim block index 0/1/2 selects the Q/K/V slice of the fused buffer.
    q_spec = pl.BlockSpec((1, tq, H), lambda b, qi, ki: (b, qi, 0))
    k_spec = pl.BlockSpec((1, tkv, H), lambda b, qi, ki: (b, ki, 1))
    v_spec = pl.BlockSpec((1, tkv, H), lambda b, qi, ki: (b, ki, 2))
    return pl.pallas_call(
        kern,
        out_shape=jax.ShapeDtypeStruct((B, S, H), jnp.bfloat16),
        grid=(B, S // tq, S // tkv),
        in_specs=[q_spec, k_spec, v_spec,
                  pl.BlockSpec((1, 1, 1, tkv), lambda b, qi, ki: (b, 0, 0, ki))],
        out_specs=pl.BlockSpec((1, tq, H), lambda b, qi, ki: (b, qi, 0)),
        scratch_shapes=[
            pltpu.VMEM((heads, tq, 1), jnp.float32),      # m
            pltpu.VMEM((heads, tq, 1), jnp.float32),      # l
            pltpu.VMEM((tq, H), jnp.float32),             # acc (lane-dense)
        ],
        compiler_params=pltpu.CompilerParams(
            dimension_semantics=("parallel", "parallel", "arbitrary")),
    )(qkv3, qkv3, qkv3, ext_mask)


# ----------------------------------------------------------------------------
# Parameter construction (deterministic, normal(0, initializer_range)).
# Biases / LN params are pre-shaped to (1, N) f32 rows for the kernels.
# ----------------------------------------------------------------------------
def init_params(key, *, vocab_size, hidden, heads, intermediate,
                max_pos, type_vocab, num_layers, fit_size, init_range=0.02):
    def nrm(k, shape, dtype=jnp.float32):
        return (init_range * jax.random.normal(k, shape, jnp.float32)).astype(dtype)

    keys = iter(jax.random.split(key, 16 + 8 * num_layers))
    p = {
        "word_emb": nrm(next(keys), (vocab_size, hidden)),
        "pos_emb": nrm(next(keys), (max_pos, hidden)),
        "type_emb": nrm(next(keys), (type_vocab, hidden)),
        "emb_ln_g": jnp.ones((1, hidden), jnp.float32),
        "emb_ln_b": jnp.zeros((1, hidden), jnp.float32),
        "pool_w": nrm(next(keys), (hidden, hidden)),
        "pool_b": jnp.zeros((hidden,), jnp.float32),
        # present in the module, unused in SuperBertModel.forward:
        "fit_w": nrm(next(keys), (hidden, fit_size)),
        "fit_b": jnp.zeros((fit_size,), jnp.float32),
        "layers": [],
    }
    for _ in range(num_layers):
        layer = {
            # fused Q|K|V projection weight (H, 3H) stored in bf16
            "qkv_w": nrm(next(keys), (hidden, 3 * hidden), jnp.bfloat16),
            "qkv_b": jnp.zeros((1, 3 * hidden), jnp.float32),
            "ao_w": nrm(next(keys), (hidden, hidden), jnp.bfloat16),
            "ao_b": jnp.zeros((1, hidden), jnp.float32),
            "ao_ln_g": jnp.ones((1, hidden), jnp.float32),
            "ao_ln_b": jnp.zeros((1, hidden), jnp.float32),
            "int_w": nrm(next(keys), (hidden, intermediate), jnp.bfloat16),
            "int_b": jnp.zeros((1, intermediate), jnp.float32),
            "out_w": nrm(next(keys), (intermediate, hidden), jnp.bfloat16),
            "out_b": jnp.zeros((1, hidden), jnp.float32),
            "out_ln_g": jnp.ones((1, hidden), jnp.float32),
            "out_ln_b": jnp.zeros((1, hidden), jnp.float32),
        }
        p["layers"].append(layer)
    return p


# ----------------------------------------------------------------------------
# Forward pass (glue in JAX, hot paths in Pallas)
# ----------------------------------------------------------------------------
def super_bert_forward(params, input_ids, attention_mask=None,
                       token_type_ids=None, *, heads, layer_norm_eps=1e-12):
    B, S = input_ids.shape
    hidden = params["word_emb"].shape[1]
    head_dim = hidden // heads

    if attention_mask is None:
        attention_mask = jnp.ones_like(input_ids)
    if token_type_ids is None:
        token_type_ids = jnp.zeros_like(input_ids)

    # extended attention mask: (B, 1, 1, S), (1 - m) * -10000
    ext_mask = (1.0 - attention_mask.astype(jnp.float32)) * -10000.0
    ext_mask = ext_mask[:, None, None, :]

    # ---- embeddings (gather is glue; LayerNorm is a Pallas kernel) ----
    we = jnp.take(params["word_emb"], input_ids, axis=0)          # (B,S,H)
    pe = params["pos_emb"][:S][None, :, :]                        # (1,S,H)
    te = jnp.take(params["type_emb"], token_type_ids, axis=0)     # (B,S,H)
    emb = (we + pe + te).reshape(B * S, hidden)                   # f32
    x = pallas_layernorm(emb, params["emb_ln_g"], params["emb_ln_b"],
                         eps=layer_norm_eps)                      # (B*S,H) bf16
    # TODO(synk): dropout layers are identity here (eval-mode semantics).

    scale = 1.0 / math.sqrt(head_dim)
    num_layers = len(params["layers"])

    # ---- encoder layers ----
    for li, lp in enumerate(params["layers"]):
        is_last = li == num_layers - 1

        # fused QKV projection: one full-K GEMM, one activation read from HBM
        qkv = pallas_linear(x, lp["qkv_w"], lp["qkv_b"])          # (B*S, 3H) bf16
        qkv3 = qkv.reshape(B, S, 3 * hidden)                      # free reshape

        # flash-style attention directly on the fused QKV buffer
        ctx = pallas_attention(qkv3, ext_mask, scale, heads)      # (B,S,H) bf16
        ctx2d = ctx.reshape(B * S, hidden)

        # attention output dense + residual + LayerNorm (fused, full-K)
        x = pallas_linear_res_ln(ctx2d, lp["ao_w"], lp["ao_b"], x,
                                 lp["ao_ln_g"], lp["ao_ln_b"],
                                 eps=layer_norm_eps)

        # FFN: intermediate (gelu, full-K) then output dense + residual + LN;
        # the last layer emits f32 directly (no separate full-tensor cast).
        inter = pallas_linear(x, lp["int_w"], lp["int_b"], act="gelu")
        x = pallas_linear_res_ln(
            inter, lp["out_w"], lp["out_b"], x,
            lp["out_ln_g"], lp["out_ln_b"], eps=layer_norm_eps,
            out_dtype=jnp.float32 if is_last else jnp.bfloat16)

    sequence_output = x.reshape(B, S, hidden)                     # f32 already

    # ---- pooler: dense(first token) + tanh — tiny, done in plain JAX ----
    cls = sequence_output[:, 0, :]                                # (B,H) f32
    pooled_output = jnp.tanh(cls @ params["pool_w"] + params["pool_b"])

    return sequence_output, pooled_output


# ----------------------------------------------------------------------------
if __name__ == "__main__":
    # small BertConfig-like setup: hidden=128 (keeps per-head QKV blocks
    # 128-lane aligned), 4 heads, 2 layers, intermediate=256
    B, S = 2, 16
    VOCAB, HIDDEN, HEADS, INTER = 64, 128, 4, 256
    MAX_POS, TYPE_VOCAB, LAYERS, FIT = 64, 2, 2, 48

    key = jax.random.PRNGKey(0)
    pkey, ikey, mkey, tkey = jax.random.split(key, 4)

    params = init_params(pkey, vocab_size=VOCAB, hidden=HIDDEN, heads=HEADS,
                         intermediate=INTER, max_pos=MAX_POS,
                         type_vocab=TYPE_VOCAB, num_layers=LAYERS,
                         fit_size=FIT)

    input_ids = jax.random.randint(ikey, (B, S), 0, VOCAB, dtype=jnp.int32)
    attention_mask = jnp.ones((B, S), jnp.int32).at[1, 12:].set(0)  # ragged mask
    token_type_ids = jax.random.randint(tkey, (B, S), 0, TYPE_VOCAB,
                                        dtype=jnp.int32)

    fwd = jax.jit(functools.partial(super_bert_forward, heads=HEADS))
    seq_out, pooled = fwd(params, input_ids, attention_mask, token_type_ids)
    jax.block_until_ready((seq_out, pooled))

    assert seq_out.shape == (B, S, HIDDEN)
    assert pooled.shape == (B, HIDDEN)
    assert bool(jnp.all(jnp.isfinite(seq_out))) and bool(
        jnp.all(jnp.isfinite(pooled)))
    print("KERNEL_OK")
</pallas_src>

<mosaic_0001>
module attributes {stable_mosaic.version = 11 : i64} {
  func.func @_matmul_fullk_kernel(%arg0: i32, %arg1: i32, %arg2: memref<32x128xbf16, #tpu.memory_space<vmem>>, %arg3: memref<128x384xbf16, #tpu.memory_space<vmem>>, %arg4: memref<1x384xf32, #tpu.memory_space<vmem>>, %arg5: memref<32x384xbf16, #tpu.memory_space<vmem>>) attributes {dimension_semantics = [#tpu.dimension_semantics<parallel>, #tpu.dimension_semantics<parallel>], iteration_bounds = array<i64: 1, 1>, scalar_prefetch = 0 : i64, scratch_operands = 0 : i64, tpu.core_type = #tpu.core_type<tc>, window_params = [{transform_indices = @transform_0, window_bounds = array<i64: 32, 128>}, {transform_indices = @transform_1, window_bounds = array<i64: 128, 384>}, {transform_indices = @transform_2, window_bounds = array<i64: 1, 384>}, {transform_indices = @transform_3, window_bounds = array<i64: 32, 384>}]} {
    %c0 = arith.constant 0 : index
    %c0_0 = arith.constant 0 : index
    %0 = vector.load %arg2[%c0, %c0_0] : memref<32x128xbf16, #tpu.memory_space<vmem>>, vector<32x128xbf16>
    %c0_1 = arith.constant 0 : index
    %c0_2 = arith.constant 0 : index
    %1 = vector.load %arg3[%c0_1, %c0_2] : memref<128x384xbf16, #tpu.memory_space<vmem>>, vector<128x384xbf16>
    %cst = arith.constant dense<0.000000e+00> : vector<32x384xf32>
    %2 = tpu.matmul %0, %1, %cst {dimension_numbers = #tpu.dot_dimension_numbers<[1], [0], [0], [1], [0, 0, 1, 1], [], []>} : vector<32x128xbf16>, vector<128x384xbf16>, vector<32x384xf32> -> vector<32x384xf32>
    %c0_3 = arith.constant 0 : index
    %c0_4 = arith.constant 0 : index
    %3 = vector.load %arg4[%c0_3, %c0_4] : memref<1x384xf32, #tpu.memory_space<vmem>>, vector<1x384xf32>
    %4 = vector.broadcast %3 : vector<1x384xf32> to vector<32x384xf32>
    %5 = arith.addf %2, %4 : vector<32x384xf32>
    %6 = arith.truncf %5 : vector<32x384xf32> to vector<32x384xbf16>
    %c0_5 = arith.constant 0 : index
    %c0_6 = arith.constant 0 : index
    %7 = vector.load %arg5[%c0_5, %c0_6] : memref<32x384xbf16, #tpu.memory_space<vmem>>, vector<32x384xbf16>
    tpu.vector_store %arg5[%c0_5, %c0_6], %6 {strides = array<i32>} : memref<32x384xbf16, #tpu.memory_space<vmem>>, vector<32x384xbf16>,
    return
  }
  func.func @transform_0(%arg0: i32, %arg1: i32) -> (i32, i32) {
    %c0_i32 = arith.constant 0 : i32
    %c0_i32_0 = arith.constant 0 : i32
    return %arg0, %c0_i32 : i32, i32
  }
  func.func @transform_1(%arg0: i32, %arg1: i32) -> (i32, i32) {
    %c0_i32 = arith.constant 0 : i32
    %c0_i32_0 = arith.constant 0 : i32
    return %c0_i32, %arg1 : i32, i32
  }
  func.func @transform_2(%arg0: i32, %arg1: i32) -> (i32, i32) {
    %c0_i32 = arith.constant 0 : i32
    %c0_i32_0 = arith.constant 0 : i32
    return %c0_i32, %arg1 : i32, i32
  }
  func.func @transform_3(%arg0: i32, %arg1: i32) -> (i32, i32) {
    %c0_i32 = arith.constant 0 : i32
    return %arg0, %arg1 : i32, i32
  }
}

module attributes {stable_mosaic.version = 11 : i64} {
  func.func @_matmul_res_ln_fullk_kernel(%arg0: i32, %arg1: memref<32x128xbf16, #tpu.memory_space<vmem>>, %arg2: memref<128x128xbf16, #tpu.memory_space<vmem>>, %arg3: memref<1x128xf32, #tpu.memory_space<vmem>>, %arg4: memref<32x128xbf16, #tpu.memory_space<vmem>>, %arg5: memref<1x128xf32, #tpu.memory_space<vmem>>, %arg6: memref<1x128xf32, #tpu.memory_space<vmem>>, %arg7: memref<32x128xbf16, #tpu.memory_space<vmem>>) attributes {dimension_semantics = [#tpu.dimension_semantics<parallel>], iteration_bounds = array<i64: 1>, scalar_prefetch = 0 : i64, scratch_operands = 0 : i64, tpu.core_type = #tpu.core_type<tc>, window_params = [{transform_indices = @transform_0, window_bounds = array<i64: 32, 128>}, {pipeline_mode = #tpu.pipeline_mode<synchronous>, transform_indices = @transform_1, window_bounds = array<i64: 128, 128>}, {pipeline_mode = #tpu.pipeline_mode<synchronous>, transform_indices = @transform_2, window_bounds = array<i64: 1, 128>}, {transform_indices = @transform_3, window_bounds = array<i64: 32, 128>}, {pipeline_mode = #tpu.pipeline_mode<synchronous>, transform_indices = @transform_4, window_bounds = array<i64: 1, 128>}, {pipeline_mode = #tpu.pipeline_mode<synchronous>, transform_indices = @transform_5, window_bounds = array<i64: 1, 128>}, {transform_indices = @transform_6, window_bounds = array<i64: 32, 128>}]} {
    %c0 = arith.constant 0 : index
    %c0_0 = arith.constant 0 : index
    %0 = vector.load %arg1[%c0, %c0_0] : memref<32x128xbf16, #tpu.memory_space<vmem>>, vector<32x128xbf16>
    %c0_1 = arith.constant 0 : index
    %c0_2 = arith.constant 0 : index
    %1 = vector.load %arg2[%c0_1, %c0_2] : memref<128x128xbf16, #tpu.memory_space<vmem>>, vector<128x128xbf16>
    %cst = arith.constant dense<0.000000e+00> : vector<32x128xf32>
    %2 = tpu.matmul %0, %1, %cst {dimension_numbers = #tpu.dot_dimension_numbers<[1], [0], [0], [1], [0, 0, 1, 1], [], []>} : vector<32x128xbf16>, vector<128x128xbf16>, vector<32x128xf32> -> vector<32x128xf32>
    %c0_3 = arith.constant 0 : index
    %c0_4 = arith.constant 0 : index
    %3 = vector.load %arg3[%c0_3, %c0_4] : memref<1x128xf32, #tpu.memory_space<vmem>>, vector<1x128xf32>
    %4 = vector.broadcast %3 : vector<1x128xf32> to vector<32x128xf32>
    %5 = arith.addf %2, %4 : vector<32x128xf32>
    %c0_5 = arith.constant 0 : index
    %c0_6 = arith.constant 0 : index
    %6 = vector.load %arg4[%c0_5, %c0_6] : memref<32x128xbf16, #tpu.memory_space<vmem>>, vector<32x128xbf16>
    %7 = arith.extf %6 : vector<32x128xbf16> to vector<32x128xf32>
    %8 = arith.addf %5, %7 : vector<32x128xf32>
    %cst_7 = arith.constant dense<0.000000e+00> : vector<32xf32>
    %9 = vector.multi_reduction <add>, %8, %cst_7 [1] : vector<32x128xf32> to vector<32xf32>
    %10 = vector.shape_cast %9 : vector<32xf32> to vector<32x1xf32>
    %cst_8 = arith.constant 1.280000e+02 : f32
    %11 = vector.broadcast %cst_8 : f32 to vector<32x1xf32>
    %12 = arith.divf %10, %11 : vector<32x1xf32>
    %13 = vector.broadcast %12 : vector<32x1xf32> to vector<32x128xf32>
    %14 = arith.subf %8, %13 : vector<32x128xf32>
    %15 = arith.mulf %14, %14 : vector<32x128xf32>
    %cst_9 = arith.constant dense<0.000000e+00> : vector<32xf32>
    %16 = vector.multi_reduction <add>, %15, %cst_9 [1] : vector<32x128xf32> to vector<32xf32>
    %17 = vector.shape_cast %16 : vector<32xf32> to vector<32x1xf32>
    %cst_10 = arith.constant 1.280000e+02 : f32
    %18 = vector.broadcast %cst_10 : f32 to vector<32x1xf32>
    %19 = arith.divf %17, %18 : vector<32x1xf32>
    %cst_11 = arith.constant 9.99999996E-13 : f32
    %20 = vector.broadcast %cst_11 : f32 to vector<32x1xf32>
    %21 = arith.addf %19, %20 : vector<32x1xf32>
    %22 = math.rsqrt %21 : vector<32x1xf32>
    %23 = vector.broadcast %22 : vector<32x1xf32> to vector<32x128xf32>
    %24 = arith.mulf %14, %23 : vector<32x128xf32>
    %c0_12 = arith.constant 0 : index
    %c0_13 = arith.constant 0 : index
    %25 = vector.load %arg5[%c0_12, %c0_13] : memref<1x128xf32, #tpu.memory_space<vmem>>, vector<1x128xf32>
    %26 = vector.broadcast %25 : vector<1x128xf32> to vector<32x128xf32>
    %27 = arith.mulf %24, %26 : vector<32x128xf32>
    %c0_14 = arith.constant 0 : index
    %c0_15 = arith.constant 0 : index
    %28 = vector.load %arg6[%c0_14, %c0_15] : memref<1x128xf32, #tpu.memory_space<vmem>>, vector<1x128xf32>
    %29 = vector.broadcast %28 : vector<1x128xf32> to vector<32x128xf32>
    %30 = arith.addf %27, %29 : vector<32x128xf32>
    %31 = arith.truncf %30 : vector<32x128xf32> to vector<32x128xbf16>
    %c0_16 = arith.constant 0 : index
    %c0_17 = arith.constant 0 : index
    %32 = vector.load %arg7[%c0_16, %c0_17] : memref<32x128xbf16, #tpu.memory_space<vmem>>, vector<32x128xbf16>
    tpu.vector_store %arg7[%c0_16, %c0_17], %31 {strides = array<i32>} : memref<32x128xbf16, #tpu.memory_space<vmem>>, vector<32x128xbf16>,
    return
  }
  func.func @transform_0(%arg0: i32) -> (i32, i32) {
    %c0_i32 = arith.constant 0 : i32
    %c0_i32_0 = arith.constant 0 : i32
    return %arg0, %c0_i32 : i32, i32
  }
  func.func @transform_1(%arg0: i32) -> (i32, i32) {
    %c0_i32 = arith.constant 0 : i32
    %c0_i32_0 = arith.constant 0 : i32
    %c0_i32_1 = arith.constant 0 : i32
    return %c0_i32, %c0_i32_0 : i32, i32
  }
  func.func @transform_2(%arg0: i32) -> (i32, i32) {
    %c0_i32 = arith.constant 0 : i32
    %c0_i32_0 = arith.constant 0 : i32
    %c0_i32_1 = arith.constant 0 : i32
    return %c0_i32, %c0_i32_0 : i32, i32
  }
  func.func @transform_3(%arg0: i32) -> (i32, i32) {
    %c0_i32 = arith.constant 0 : i32
    %c0_i32_0 = arith.constant 0 : i32
    return %arg0, %c0_i32 : i32, i32
  }
  func.func @transform_4(%arg0: i32) -> (i32, i32) {
    %c0_i32 = arith.constant 0 : i32
    %c0_i32_0 = arith.constant 0 : i32
    %c0_i32_1 = arith.constant 0 : i32
    return %c0_i32, %c0_i32_0 : i32, i32
  }
  func.func @transform_5(%arg0: i32) -> (i32, i32) {
    %c0_i32 = arith.constant 0 : i32
    %c0_i32_0 = arith.constant 0 : i32
    %c0_i32_1 = arith.constant 0 : i32
    return %c0_i32, %c0_i32_0 : i32, i32
  }
  func.func @transform_6(%arg0: i32) -> (i32, i32) {
    %c0_i32 = arith.constant 0 : i32
    %c0_i32_0 = arith.constant 0 : i32
    return %arg0, %c0_i32 : i32, i32
  }
}

module attributes {stable_mosaic.version = 11 : i64} {
  func.func @_attention_kernel(%arg0: i32, %arg1: i32, %arg2: i32, %arg3: memref<1x16x128xbf16, #tpu.memory_space<vmem>>, %arg4: memref<1x16x128xbf16, #tpu.memory_space<vmem>>, %arg5: memref<1x16x128xbf16, #tpu.memory_space<vmem>>, %arg6: memref<1x1x1x16xf32, #tpu.memory_space<vmem>>, %arg7: memref<1x16x128xbf16, #tpu.memory_space<vmem>>, %arg8: memref<4x16x1xf32, #tpu.memory_space<vmem>>, %arg9: memref<4x16x1xf32, #tpu.memory_space<vmem>>, %arg10: memref<16x128xf32, #tpu.memory_space<vmem>>) attributes {dimension_semantics = [#tpu.dimension_semantics<parallel>, #tpu.dimension_semantics<parallel>, #tpu.dimension_semantics<arbitrary>], iteration_bounds = array<i64: 2, 1, 1>, scalar_prefetch = 0 : i64, scratch_operands = 3 : i64, tpu.core_type = #tpu.core_type<tc>, window_params = [{transform_indices = @transform_0, window_bounds = array<i64: 1, 16, 128>}, {transform_indices = @transform_1, window_bounds = array<i64: 1, 16, 128>}, {transform_indices = @transform_2, window_bounds = array<i64: 1, 16, 128>}, {transform_indices = @transform_3, window_bounds = array<i64: 1, 1, 1, 16>}, {transform_indices = @transform_4, window_bounds = array<i64: 1, 16, 128>}]} {
    %c0_i32 = arith.constant 0 : i32
    %0 = arith.cmpi eq, %arg2, %c0_i32 : i32
    %1 = arith.extui %0 : i1 to i32
    %c0_i32_0 = arith.constant 0 : i32
    %2 = arith.cmpi ne, %1, %c0_i32_0 : i32
    scf.if %2 {
      %cst_83 = arith.constant -1.000000e+30 : f32
      %156 = vector.broadcast %cst_83 : f32 to vector<4x16x1xf32>
      %c0_84 = arith.constant 0 : index
      %c0_85 = arith.constant 0 : index
      %c0_86 = arith.constant 0 : index
      %157 = vector.load %arg8[%c0_84, %c0_85, %c0_86] : memref<4x16x1xf32, #tpu.memory_space<vmem>>, vector<4x16x1xf32>
      tpu.vector_store %arg8[%c0_84, %c0_85, %c0_86], %156 {strides = array<i32>} : memref<4x16x1xf32, #tpu.memory_space<vmem>>, vector<4x16x1xf32>,
      %cst_87 = arith.constant 0.000000e+00 : f32
      %158 = vector.broadcast %cst_87 : f32 to vector<4x16x1xf32>
      %c0_88 = arith.constant 0 : index
      %c0_89 = arith.constant 0 : index
      %c0_90 = arith.constant 0 : index
      %159 = vector.load %arg9[%c0_88, %c0_89, %c0_90] : memref<4x16x1xf32, #tpu.memory_space<vmem>>, vector<4x16x1xf32>
      tpu.vector_store %arg9[%c0_88, %c0_89, %c0_90], %158 {strides = array<i32>} : memref<4x16x1xf32, #tpu.memory_space<vmem>>, vector<4x16x1xf32>,
      %cst_91 = arith.constant 0.000000e+00 : f32
      %160 = vector.broadcast %cst_91 : f32 to vector<16x128xf32>
      %c0_92 = arith.constant 0 : index
      %c0_93 = arith.constant 0 : index
      %161 = vector.load %arg10[%c0_92, %c0_93] : memref<16x128xf32, #tpu.memory_space<vmem>>, vector<16x128xf32>
      tpu.vector_store %arg10[%c0_92, %c0_93], %160 {strides = array<i32>} : memref<16x128xf32, #tpu.memory_space<vmem>>, vector<16x128xf32>,
    } else {
    }
    %c0 = arith.constant 0 : index
    %c0_1 = arith.constant 0 : index
    %c0_2 = arith.constant 0 : index
    %3 = vector.load %arg3[%c0, %c0_1, %c0_2] : memref<1x16x128xbf16, #tpu.memory_space<vmem>>, vector<1x16x128xbf16>
    %4 = vector.shape_cast %3 : vector<1x16x128xbf16> to vector<16x128xbf16>
    %c0_3 = arith.constant 0 : index
    %c0_4 = arith.constant 0 : index
    %c0_5 = arith.constant 0 : index
    %5 = vector.load %arg4[%c0_3, %c0_4, %c0_5] : memref<1x16x128xbf16, #tpu.memory_space<vmem>>, vector<1x16x128xbf16>
    %6 = vector.shape_cast %5 : vector<1x16x128xbf16> to vector<16x128xbf16>
    %c0_6 = arith.constant 0 : index
    %c0_7 = arith.constant 0 : index
    %c0_8 = arith.constant 0 : index
    %7 = vector.load %arg5[%c0_6, %c0_7, %c0_8] : memref<1x16x128xbf16, #tpu.memory_space<vmem>>, vector<1x16x128xbf16>
    %8 = vector.shape_cast %7 : vector<1x16x128xbf16> to vector<16x128xbf16>
    %c0_9 = arith.constant 0 : index
    %c0_10 = arith.constant 0 : index
    %c0_11 = arith.constant 0 : index
    %c0_12 = arith.constant 0 : index
    %9 = vector.load %arg6[%c0_9, %c0_10, %c0_11, %c0_12] : memref<1x1x1x16xf32, #tpu.memory_space<vmem>>, vector<1x1x1x16xf32>
    %10 = vector.shape_cast %9 : vector<1x1x1x16xf32> to vector<1x16xf32>
    %11 = vector.extract_strided_slice %4 {offsets = [0, 0], sizes = [16, 32], strides = [1, 1]} : vector<16x128xbf16> to vector<16x32xbf16>
    %12 = vector.extract_strided_slice %6 {offsets = [0, 0], sizes = [16, 32], strides = [1, 1]} : vector<16x128xbf16> to vector<16x32xbf16>
    %13 = vector.extract_strided_slice %8 {offsets = [0, 0], sizes = [16, 32], strides = [1, 1]} : vector<16x128xbf16> to vector<16x32xbf16>
    %cst = arith.constant dense<0.000000e+00> : vector<16x16xf32>
    %14 = tpu.matmul %11, %12, %cst {dimension_numbers = #tpu.dot_dimension_numbers<[1], [1], [0], [0], [0, 0, 1, 0], [], []>} : vector<16x32xbf16>, vector<16x32xbf16>, vector<16x16xf32> -> vector<16x16xf32>
    %cst_13 = arith.constant 0.176776692 : f32
    %15 = vector.broadcast %cst_13 : f32 to vector<16x16xf32>
    %16 = arith.mulf %14, %15 : vector<16x16xf32>
    %17 = vector.broadcast %10 : vector<1x16xf32> to vector<16x16xf32>
    %18 = arith.addf %16, %17 : vector<16x16xf32>
    %c0_14 = arith.constant 0 : index
    %c0_15 = arith.constant 0 : index
    %c0_16 = arith.constant 0 : index
    %19 = vector.load %arg8[%c0_14, %c0_15, %c0_16] : memref<4x16x1xf32, #tpu.memory_space<vmem>>, vector<1x16x1xf32>
    %20 = vector.shape_cast %19 : vector<1x16x1xf32> to vector<16x1xf32>
    %cst_17 = arith.constant dense<0xFF800000> : vector<16xf32>
    %21 = vector.multi_reduction <maximumf>, %18, %cst_17 [1] : vector<16x16xf32> to vector<16xf32>
    %22 = vector.shape_cast %21 : vector<16xf32> to vector<16x1xf32>
    %23 = arith.maximumf %20, %22 : vector<16x1xf32>
    %24 = arith.subf %20, %23 : vector<16x1xf32>
    %25 = math.exp %24 : vector<16x1xf32>
    %26 = vector.broadcast %23 : vector<16x1xf32> to vector<16x16xf32>
    %27 = arith.subf %18, %26 : vector<16x16xf32>
    %28 = math.exp %27 : vector<16x16xf32>
    %c0_18 = arith.constant 0 : index
    %c0_19 = arith.constant 0 : index
    %c0_20 = arith.constant 0 : index
    %29 = vector.load %arg9[%c0_18, %c0_19, %c0_20] : memref<4x16x1xf32, #tpu.memory_space<vmem>>, vector<1x16x1xf32>
    %30 = vector.shape_cast %29 : vector<1x16x1xf32> to vector<16x1xf32>
    %31 = arith.mulf %25, %30 : vector<16x1xf32>
    %cst_21 = arith.constant dense<0.000000e+00> : vector<16xf32>
    %32 = vector.multi_reduction <add>, %28, %cst_21 [1] : vector<16x16xf32> to vector<16xf32>
    %33 = vector.shape_cast %32 : vector<16xf32> to vector<16x1xf32>
    %34 = arith.addf %31, %33 : vector<16x1xf32>
    %c0_22 = arith.constant 0 : index
    %c0_23 = arith.constant 0 : index
    %c0_24 = arith.constant 0 : index
    %35 = vector.load %arg9[%c0_22, %c0_23, %c0_24] : memref<4x16x1xf32, #tpu.memory_space<vmem>>, vector<1x16x1xf32>
    %36 = vector.shape_cast %35 : vector<1x16x1xf32> to vector<16x1xf32>
    %37 = vector.shape_cast %34 : vector<16x1xf32> to vector<1x16x1xf32>
    tpu.vector_store %arg9[%c0_22, %c0_23, %c0_24], %37 {strides = array<i32>} : memref<4x16x1xf32, #tpu.memory_space<vmem>>, vector<1x16x1xf32>,
    %c0_25 = arith.constant 0 : index
    %c0_26 = arith.constant 0 : index
    %c0_27 = arith.constant 0 : index
    %38 = vector.load %arg8[%c0_25, %c0_26, %c0_27] : memref<4x16x1xf32, #tpu.memory_space<vmem>>, vector<1x16x1xf32>
    %39 = vector.shape_cast %38 : vector<1x16x1xf32> to vector<16x1xf32>
    %40 = vector.shape_cast %23 : vector<16x1xf32> to vector<1x16x1xf32>
    tpu.vector_store %arg8[%c0_25, %c0_26, %c0_27], %40 {strides = array<i32>} : memref<4x16x1xf32, #tpu.memory_space<vmem>>, vector<1x16x1xf32>,
    %41 = arith.truncf %28 : vector<16x16xf32> to vector<16x16xbf16>
    %cst_28 = arith.constant dense<0.000000e+00> : vector<16x32xf32>
    %42 = tpu.matmul %41, %13, %cst_28 {dimension_numbers = #tpu.dot_dimension_numbers<[1], [0], [0], [1], [0, 0, 1, 1], [], []>} : vector<16x16xbf16>, vector<16x32xbf16>, vector<16x32xf32> -> vector<16x32xf32>
    %43 = vector.shape_cast %25 : vector<16x1xf32> to vector<16x1xf32>
    %44 = vector.broadcast %43 : vector<16x1xf32> to vector<16x32xf32>
    %45 = vector.extract_strided_slice %4 {offsets = [0, 32], sizes = [16, 32], strides = [1, 1]} : vector<16x128xbf16> to vector<16x32xbf16>
    %46 = vector.extract_strided_slice %6 {offsets = [0, 32], sizes = [16, 32], strides = [1, 1]} : vector<16x128xbf16> to vector<16x32xbf16>
    %47 = vector.extract_strided_slice %8 {offsets = [0, 32], sizes = [16, 32], strides = [1, 1]} : vector<16x128xbf16> to vector<16x32xbf16>
    %cst_29 = arith.constant dense<0.000000e+00> : vector<16x16xf32>
    %48 = tpu.matmul %45, %46, %cst_29 {dimension_numbers = #tpu.dot_dimension_numbers<[1], [1], [0], [0], [0, 0, 1, 0], [], []>} : vector<16x32xbf16>, vector<16x32xbf16>, vector<16x16xf32> -> vector<16x16xf32>
    %cst_30 = arith.constant 0.176776692 : f32
    %49 = vector.broadcast %cst_30 : f32 to vector<16x16xf32>
    %50 = arith.mulf %48, %49 : vector<16x16xf32>
    %51 = vector.broadcast %10 : vector<1x16xf32> to vector<16x16xf32>
    %52 = arith.addf %50, %51 : vector<16x16xf32>
    %c1 = arith.constant 1 : index
    %c0_31 = arith.constant 0 : index
    %c0_32 = arith.constant 0 : index
    %53 = vector.load %arg8[%c1, %c0_31, %c0_32] : memref<4x16x1xf32, #tpu.memory_space<vmem>>, vector<1x16x1xf32>
    %54 = vector.shape_cast %53 : vector<1x16x1xf32> to vector<16x1xf32>
    %cst_33 = arith.constant dense<0xFF800000> : vector<16xf32>
    %55 = vector.multi_reduction <maximumf>, %52, %cst_33 [1] : vector<16x16xf32> to vector<16xf32>
    %56 = vector.shape_cast %55 : vector<16xf32> to vector<16x1xf32>
    %57 = arith.maximumf %54, %56 : vector<16x1xf32>
    %58 = arith.subf %54, %57 : vector<16x1xf32>
    %59 = math.exp %58 : vector<16x1xf32>
    %60 = vector.broadcast %57 : vector<16x1xf32> to vector<16x16xf32>
    %61 = arith.subf %52, %60 : vector<16x16xf32>
    %62 = math.exp %61 : vector<16x16xf32>
    %c1_34 = arith.constant 1 : index
    %c0_35 = arith.constant 0 : index
    %c0_36 = arith.constant 0 : index
    %63 = vector.load %arg9[%c1_34, %c0_35, %c0_36] : memref<4x16x1xf32, #tpu.memory_space<vmem>>, vector<1x16x1xf32>
    %64 = vector.shape_cast %63 : vector<1x16x1xf32> to vector<16x1xf32>
    %65 = arith.mulf %59, %64 : vector<16x1xf32>
    %cst_37 = arith.constant dense<0.000000e+00> : vector<16xf32>
    %66 = vector.multi_reduction <add>, %62, %cst_37 [1] : vector<16x16xf32> to vector<16xf32>
    %67 = vector.shape_cast %66 : vector<16xf32> to vector<16x1xf32>
    %68 = arith.addf %65, %67 : vector<16x1xf32>
    %c1_38 = arith.constant 1 : index
    %c0_39 = arith.constant 0 : index
    %c0_40 = arith.constant 0 : index
    %69 = vector.load %arg9[%c1_38, %c0_39, %c0_40] : memref<4x16x1xf32, #tpu.memory_space<vmem>>, vector<1x16x1xf32>
    %70 = vector.shape_cast %69 : vector<1x16x1xf32> to vector<16x1xf32>
    %71 = vector.shape_cast %68 : vector<16x1xf32> to vector<1x16x1xf32>
    tpu.vector_store %arg9[%c1_38, %c0_39, %c0_40], %71 {strides = array<i32>} : memref<4x16x1xf32, #tpu.memory_space<vmem>>, vector<1x16x1xf32>,
    %c1_41 = arith.constant 1 : index
    %c0_42 = arith.constant 0 : index
    %c0_43 = arith.constant 0 : index
    %72 = vector.load %arg8[%c1_41, %c0_42, %c0_43] : memref<4x16x1xf32, #tpu.memory_space<vmem>>, vector<1x16x1xf32>
    %73 = vector.shape_cast %72 : vector<1x16x1xf32> to vector<16x1xf32>
    %74 = vector.shape_cast %57 : vector<16x1xf32> to vector<1x16x1xf32>
    tpu.vector_store %arg8[%c1_41, %c0_42, %c0_43], %74 {strides = array<i32>} : memref<4x16x1xf32, #tpu.memory_space<vmem>>, vector<1x16x1xf32>,
    %75 = arith.truncf %62 : vector<16x16xf32> to vector<16x16xbf16>
    %cst_44 = arith.constant dense<0.000000e+00> : vector<16x32xf32>
    %76 = tpu.matmul %75, %47, %cst_44 {dimension_numbers = #tpu.dot_dimension_numbers<[1], [0], [0], [1], [0, 0, 1, 1], [], []>} : vector<16x16xbf16>, vector<16x32xbf16>, vector<16x32xf32> -> vector<16x32xf32>
    %77 = vector.shape_cast %59 : vector<16x1xf32> to vector<16x1xf32>
    %78 = vector.broadcast %77 : vector<16x1xf32> to vector<16x32xf32>
    %79 = vector.extract_strided_slice %4 {offsets = [0, 64], sizes = [16, 32], strides = [1, 1]} : vector<16x128xbf16> to vector<16x32xbf16>
    %80 = vector.extract_strided_slice %6 {offsets = [0, 64], sizes = [16, 32], strides = [1, 1]} : vector<16x128xbf16> to vector<16x32xbf16>
    %81 = vector.extract_strided_slice %8 {offsets = [0, 64], sizes = [16, 32], strides = [1, 1]} : vector<16x128xbf16> to vector<16x32xbf16>
    %cst_45 = arith.constant dense<0.000000e+00> : vector<16x16xf32>
    %82 = tpu.matmul %79, %80, %cst_45 {dimension_numbers = #tpu.dot_dimension_numbers<[1], [1], [0], [0], [0, 0, 1, 0], [], []>} : vector<16x32xbf16>, vector<16x32xbf16>, vector<16x16xf32> -> vector<16x16xf32>
    %cst_46 = arith.constant 0.176776692 : f32
    %83 = vector.broadcast %cst_46 : f32 to vector<16x16xf32>
    %84 = arith.mulf %82, %83 : vector<16x16xf32>
    %85 = vector.broadcast %10 : vector<1x16xf32> to vector<16x16xf32>
    %86 = arith.addf %84, %85 : vector<16x16xf32>
    %c2 = arith.constant 2 : index
    %c0_47 = arith.constant 0 : index
    %c0_48 = arith.constant 0 : index
    %87 = vector.load %arg8[%c2, %c0_47, %c0_48] : memref<4x16x1xf32, #tpu.memory_space<vmem>>, vector<1x16x1xf32>
    %88 = vector.shape_cast %87 : vector<1x16x1xf32> to vector<16x1xf32>
    %cst_49 = arith.constant dense<0xFF800000> : vector<16xf32>
    %89 = vector.multi_reduction <maximumf>, %86, %cst_49 [1] : vector<16x16xf32> to vector<16xf32>
    %90 = vector.shape_cast %89 : vector<16xf32> to vector<16x1xf32>
    %91 = arith.maximumf %88, %90 : vector<16x1xf32>
    %92 = arith.subf %88, %91 : vector<16x1xf32>
    %93 = math.exp %92 : vector<16x1xf32>
    %94 = vector.broadcast %91 : vector<16x1xf32> to vector<16x16xf32>
    %95 = arith.subf %86, %94 : vector<16x16xf32>
    %96 = math.exp %95 : vector<16x16xf32>
    %c2_50 = arith.constant 2 : index
    %c0_51 = arith.constant 0 : index
    %c0_52 = arith.constant 0 : index
    %97 = vector.load %arg9[%c2_50, %c0_51, %c0_52] : memref<4x16x1xf32, #tpu.memory_space<vmem>>, vector<1x16x1xf32>
    %98 = vector.shape_cast %97 : vector<1x16x1xf32> to vector<16x1xf32>
    %99 = arith.mulf %93, %98 : vector<16x1xf32>
    %cst_53 = arith.constant dense<0.000000e+00> : vector<16xf32>
    %100 = vector.multi_reduction <add>, %96, %cst_53 [1] : vector<16x16xf32> to vector<16xf32>
    %101 = vector.shape_cast %100 : vector<16xf32> to vector<16x1xf32>
    %102 = arith.addf %99, %101 : vector<16x1xf32>
    %c2_54 = arith.constant 2 : index
    %c0_55 = arith.constant 0 : index
    %c0_56 = arith.constant 0 : index
    %103 = vector.load %arg9[%c2_54, %c0_55, %c0_56] : memref<4x16x1xf32, #tpu.memory_space<vmem>>, vector<1x16x1xf32>
    %104 = vector.shape_cast %103 : vector<1x16x1xf32> to vector<16x1xf32>
    %105 = vector.shape_cast %102 : vector<16x1xf32> to vector<1x16x1xf32>
    tpu.vector_store %arg9[%c2_54, %c0_55, %c0_56], %105 {strides = array<i32>} : memref<4x16x1xf32, #tpu.memory_space<vmem>>, vector<1x16x1xf32>,
    %c2_57 = arith.constant 2 : index
    %c0_58 = arith.constant 0 : index
    %c0_59 = arith.constant 0 : index
    %106 = vector.load %arg8[%c2_57, %c0_58, %c0_59] : memref<4x16x1xf32, #tpu.memory_space<vmem>>, vector<1x16x1xf32>
    %107 = vector.shape_cast %106 : vector<1x16x1xf32> to vector<16x1xf32>
    %108 = vector.shape_cast %91 : vector<16x1xf32> to vector<1x16x1xf32>
    tpu.vector_store %arg8[%c2_57, %c0_58, %c0_59], %108 {strides = array<i32>} : memref<4x16x1xf32, #tpu.memory_space<vmem>>, vector<1x16x1xf32>,
    %109 = arith.truncf %96 : vector<16x16xf32> to vector<16x16xbf16>
    %cst_60 = arith.constant dense<0.000000e+00> : vector<16x32xf32>
    %110 = tpu.matmul %109, %81, %cst_60 {dimension_numbers = #tpu.dot_dimension_numbers<[1], [0], [0], [1], [0, 0, 1, 1], [], []>} : vector<16x16xbf16>, vector<16x32xbf16>, vector<16x32xf32> -> vector<16x32xf32>
    %111 = vector.shape_cast %93 : vector<16x1xf32> to vector<16x1xf32>
    %112 = vector.broadcast %111 : vector<16x1xf32> to vector<16x32xf32>
    %113 = vector.extract_strided_slice %4 {offsets = [0, 96], sizes = [16, 32], strides = [1, 1]} : vector<16x128xbf16> to vector<16x32xbf16>
    %114 = vector.extract_strided_slice %6 {offsets = [0, 96], sizes = [16, 32], strides = [1, 1]} : vector<16x128xbf16> to vector<16x32xbf16>
    %115 = vector.extract_strided_slice %8 {offsets = [0, 96], sizes = [16, 32], strides = [1, 1]} : vector<16x128xbf16> to vector<16x32xbf16>
    %cst_61 = arith.constant dense<0.000000e+00> : vector<16x16xf32>
    %116 = tpu.matmul %113, %114, %cst_61 {dimension_numbers = #tpu.dot_dimension_numbers<[1], [1], [0], [0], [0, 0, 1, 0], [], []>} : vector<16x32xbf16>, vector<16x32xbf16>, vector<16x16xf32> -> vector<16x16xf32>
    %cst_62 = arith.constant 0.176776692 : f32
    %117 = vector.broadcast %cst_62 : f32 to vector<16x16xf32>
    %118 = arith.mulf %116, %117 : vector<16x16xf32>
    %119 = vector.broadcast %10 : vector<1x16xf32> to vector<16x16xf32>
    %120 = arith.addf %118, %119 : vector<16x16xf32>
    %c3 = arith.constant 3 : index
    %c0_63 = arith.constant 0 : index
    %c0_64 = arith.constant 0 : index
    %121 = vector.load %arg8[%c3, %c0_63, %c0_64] : memref<4x16x1xf32, #tpu.memory_space<vmem>>, vector<1x16x1xf32>
    %122 = vector.shape_cast %121 : vector<1x16x1xf32> to vector<16x1xf32>
    %cst_65 = arith.constant dense<0xFF800000> : vector<16xf32>
    %123 = vector.multi_reduction <maximumf>, %120, %cst_65 [1] : vector<16x16xf32> to vector<16xf32>
    %124 = vector.shape_cast %123 : vector<16xf32> to vector<16x1xf32>
    %125 = arith.maximumf %122, %124 : vector<16x1xf32>
    %126 = arith.subf %122, %125 : vector<16x1xf32>
    %127 = math.exp %126 : vector<16x1xf32>
    %128 = vector.broadcast %125 : vector<16x1xf32> to vector<16x16xf32>
    %129 = arith.subf %120, %128 : vector<16x16xf32>
    %130 = math.exp %129 : vector<16x16xf32>
    %c3_66 = arith.constant 3 : index
    %c0_67 = arith.constant 0 : index
    %c0_68 = arith.constant 0 : index
    %131 = vector.load %arg9[%c3_66, %c0_67, %c0_68] : memref<4x16x1xf32, #tpu.memory_space<vmem>>, vector<1x16x1xf32>
    %132 = vector.shape_cast %131 : vector<1x16x1xf32> to vector<16x1xf32>
    %133 = arith.mulf %127, %132 : vector<16x1xf32>
    %cst_69 = arith.constant dense<0.000000e+00> : vector<16xf32>
    %134 = vector.multi_reduction <add>, %130, %cst_69 [1] : vector<16x16xf32> to vector<16xf32>
    %135 = vector.shape_cast %134 : vector<16xf32> to vector<16x1xf32>
    %136 = arith.addf %133, %135 : vector<16x1xf32>
    %c3_70 = arith.constant 3 : index
    %c0_71 = arith.constant 0 : index
    %c0_72 = arith.constant 0 : index
    %137 = vector.load %arg9[%c3_70, %c0_71, %c0_72] : memref<4x16x1xf32, #tpu.memory_space<vmem>>, vector<1x16x1xf32>
    %138 = vector.shape_cast %137 : vector<1x16x1xf32> to vector<16x1xf32>
    %139 = vector.shape_cast %136 : vector<16x1xf32> to vector<1x16x1xf32>
    tpu.vector_store %arg9[%c3_70, %c0_71, %c0_72], %139 {strides = array<i32>} : memref<4x16x1xf32, #tpu.memory_space<vmem>>, vector<1x16x1xf32>,
    %c3_73 = arith.constant 3 : index
    %c0_74 = arith.constant 0 : index
    %c0_75 = arith.constant 0 : index
    %140 = vector.load %arg8[%c3_73, %c0_74, %c0_75] : memref<4x16x1xf32, #tpu.memory_space<vmem>>, vector<1x16x1xf32>
    %141 = vector.shape_cast %140 : vector<1x16x1xf32> to vector<16x1xf32>
    %142 = vector.shape_cast %125 : vector<16x1xf32> to vector<1x16x1xf32>
    tpu.vector_store %arg8[%c3_73, %c0_74, %c0_75], %142 {strides = array<i32>} : memref<4x16x1xf32, #tpu.memory_space<vmem>>, vector<1x16x1xf32>,
    %143 = arith.truncf %130 : vector<16x16xf32> to vector<16x16xbf16>
    %cst_76 = arith.constant dense<0.000000e+00> : vector<16x32xf32>
    %144 = tpu.matmul %143, %115, %cst_76 {dimension_numbers = #tpu.dot_dimension_numbers<[1], [0], [0], [1], [0, 0, 1, 1], [], []>} : vector<16x16xbf16>, vector<16x32xbf16>, vector<16x32xf32> -> vector<16x32xf32>
    %145 = vector.shape_cast %127 : vector<16x1xf32> to vector<16x1xf32>
    %146 = vector.broadcast %145 : vector<16x1xf32> to vector<16x32xf32>
    %147 = tpu.concatenate %42, %76, %110, %144 in 1 : vector<16x32xf32>, vector<16x32xf32>, vector<16x32xf32>, vector<16x32xf32> -> vector<16x128xf32>
    %148 = tpu.concatenate %44, %78, %112, %146 in 1 : vector<16x32xf32>, vector<16x32xf32>, vector<16x32xf32>, vector<16x32xf32> -> vector<16x128xf32>
    %c0_77 = arith.constant 0 : index
    %c0_78 = arith.constant 0 : index
    %149 = vector.load %arg10[%c0_77, %c0_78] : memref<16x128xf32, #tpu.memory_space<vmem>>, vector<16x128xf32>
    %150 = arith.mulf %148, %149 : vector<16x128xf32>
    %151 = arith.addf %150, %147 : vector<16x128xf32>
    %c0_79 = arith.constant 0 : index
    %c0_80 = arith.constant 0 : index
    %152 = vector.load %arg10[%c0_79, %c0_80] : memref<16x128xf32, #tpu.memory_space<vmem>>, vector<16x128xf32>
    tpu.vector_store %arg10[%c0_79, %c0_80], %151 {strides = array<i32>} : memref<16x128xf32, #tpu.memory_space<vmem>>, vector<16x128xf32>,
    %c0_i32_81 = arith.constant 0 : i32
    %153 = arith.cmpi eq, %arg2, %c0_i32_81 : i32
    %154 = arith.extui %153 : i1 to i32
    %c0_i32_82 = arith.constant 0 : i32
    %155 = arith.cmpi ne, %154, %c0_i32_82 : i32
    scf.if %155 {
      %c0_83 = arith.constant 0 : index
      %c0_84 = arith.constant 0 : index
      %c0_85 = arith.constant 0 : index
      %156 = vector.load %arg9[%c0_83, %c0_84, %c0_85] : memref<4x16x1xf32, #tpu.memory_space<vmem>>, vector<1x16x1xf32>
      %157 = vector.shape_cast %156 : vector<1x16x1xf32> to vector<16x1xf32>
      %158 = tpu.reciprocal %157 {approx = true} : vector<16x1xf32> -> vector<16x1xf32>
      %159 = vector.shape_cast %158 : vector<16x1xf32> to vector<16x1xf32>
      %160 = vector.broadcast %159 : vector<16x1xf32> to vector<16x32xf32>
      %c1_86 = arith.constant 1 : index
      %c0_87 = arith.constant 0 : index
      %c0_88 = arith.constant 0 : index
      %161 = vector.load %arg9[%c1_86, %c0_87, %c0_88] : memref<4x16x1xf32, #tpu.memory_space<vmem>>, vector<1x16x1xf32>
      %162 = vector.shape_cast %161 : vector<1x16x1xf32> to vector<16x1xf32>
      %163 = tpu.reciprocal %162 {approx = true} : vector<16x1xf32> -> vector<16x1xf32>
      %164 = vector.shape_cast %163 : vector<16x1xf32> to vector<16x1xf32>
      %165 = vector.broadcast %164 : vector<16x1xf32> to vector<16x32xf32>
      %c2_89 = arith.constant 2 : index
      %c0_90 = arith.constant 0 : index
      %c0_91 = arith.constant 0 : index
      %166 = vector.load %arg9[%c2_89, %c0_90, %c0_91] : memref<4x16x1xf32, #tpu.memory_space<vmem>>, vector<1x16x1xf32>
      %167 = vector.shape_cast %166 : vector<1x16x1xf32> to vector<16x1xf32>
      %168 = tpu.reciprocal %167 {approx = true} : vector<16x1xf32> -> vector<16x1xf32>
      %169 = vector.shape_cast %168 : vector<16x1xf32> to vector<16x1xf32>
      %170 = vector.broadcast %169 : vector<16x1xf32> to vector<16x32xf32>
      %c3_92 = arith.constant 3 : index
      %c0_93 = arith.constant 0 : index
      %c0_94 = arith.constant 0 : index
      %171 = vector.load %arg9[%c3_92, %c0_93, %c0_94] : memref<4x16x1xf32, #tpu.memory_space<vmem>>, vector<1x16x1xf32>
      %172 = vector.shape_cast %171 : vector<1x16x1xf32> to vector<16x1xf32>
      %173 = tpu.reciprocal %172 {approx = true} : vector<16x1xf32> -> vector<16x1xf32>
      %174 = vector.shape_cast %173 : vector<16x1xf32> to vector<16x1xf32>
      %175 = vector.broadcast %174 : vector<16x1xf32> to vector<16x32xf32>
      %176 = tpu.concatenate %160, %165, %170, %175 in 1 : vector<16x32xf32>, vector<16x32xf32>, vector<16x32xf32>, vector<16x32xf32> -> vector<16x128xf32>
      %c0_95 = arith.constant 0 : index
      %c0_96 = arith.constant 0 : index
      %177 = vector.load %arg10[%c0_95, %c0_96] : memref<16x128xf32, #tpu.memory_space<vmem>>, vector<16x128xf32>
      %178 = arith.mulf %177, %176 : vector<16x128xf32>
      %179 = arith.truncf %178 : vector<16x128xf32> to vector<16x128xbf16>
      %c0_97 = arith.constant 0 : index
      %c0_98 = arith.constant 0 : index
      %c0_99 = arith.constant 0 : index
      %180 = vector.load %arg7[%c0_97, %c0_98, %c0_99] : memref<1x16x128xbf16, #tpu.memory_space<vmem>>, vector<1x16x128xbf16>
      %181 = vector.shape_cast %180 : vector<1x16x128xbf16> to vector<16x128xbf16>
      %182 = vector.shape_cast %179 : vector<16x128xbf16> to vector<1x16x128xbf16>
      tpu.vector_store %arg7[%c0_97, %c0_98, %c0_99], %182 {strides = array<i32>} : memref<1x16x128xbf16, #tpu.memory_space<vmem>>, vector<1x16x128xbf16>,
    } else {
    }
    return
  }
  func.func @transform_0(%arg0: i32, %arg1: i32, %arg2: i32) -> (i32, i32, i32) {
    %c0_i32 = arith.constant 0 : i32
    %c0_i32_0 = arith.constant 0 : i32
    return %arg0, %arg1, %c0_i32 : i32, i32, i32
  }
  func.func @transform_1(%arg0: i32, %arg1: i32, %arg2: i32) -> (i32, i32, i32) {
    %c1_i32 = arith.constant 1 : i32
    %c0_i32 = arith.constant 0 : i32
    return %arg0, %arg2, %c1_i32 : i32, i32, i32
  }
  func.func @transform_2(%arg0: i32, %arg1: i32, %arg2: i32) -> (i32, i32, i32) {
    %c2_i32 = arith.constant 2 : i32
    %c0_i32 = arith.constant 0 : i32
    return %arg0, %arg2, %c2_i32 : i32, i32, i32
  }
  func.func @transform_3(%arg0: i32, %arg1: i32, %arg2: i32) -> (i32, i32, i32, i32) {
    %c0_i32 = arith.constant 0 : i32
    %c0_i32_0 = arith.constant 0 : i32
    %c0_i32_1 = arith.constant 0 : i32
    return %arg0, %c0_i32, %c0_i32_0, %arg2 : i32, i32, i32, i32
  }
  func.func @transform_4(%arg0: i32, %arg1: i32, %arg2: i32) -> (i32, i32, i32) {
    %c0_i32 = arith.constant 0 : i32
    %c0_i32_0 = arith.constant 0 : i32
    return %arg0, %arg1, %c0_i32 : i32, i32, i32
  }
}

module attributes {stable_mosaic.version = 11 : i64} {
  func.func @_layernorm_kernel(%arg0: i32, %arg1: memref<32x128xf32, #tpu.memory_space<vmem>>, %arg2: memref<1x128xf32, #tpu.memory_space<vmem>>, %arg3: memref<1x128xf32, #tpu.memory_space<vmem>>, %arg4: memref<32x128xbf16, #tpu.memory_space<vmem>>) attributes {dimension_semantics = [#tpu.dimension_semantics<parallel>], iteration_bounds = array<i64: 1>, scalar_prefetch = 0 : i64, scratch_operands = 0 : i64, tpu.core_type = #tpu.core_type<tc>, window_params = [{transform_indices = @transform_0, window_bounds = array<i64: 32, 128>}, {pipeline_mode = #tpu.pipeline_mode<synchronous>, transform_indices = @transform_1, window_bounds = array<i64: 1, 128>}, {pipeline_mode = #tpu.pipeline_mode<synchronous>, transform_indices = @transform_2, window_bounds = array<i64: 1, 128>}, {transform_indices = @transform_3, window_bounds = array<i64: 32, 128>}]} {
    %c0 = arith.constant 0 : index
    %c0_0 = arith.constant 0 : index
    %0 = vector.load %arg1[%c0, %c0_0] : memref<32x128xf32, #tpu.memory_space<vmem>>, vector<32x128xf32>
    %cst = arith.constant dense<0.000000e+00> : vector<32xf32>
    %1 = vector.multi_reduction <add>, %0, %cst [1] : vector<32x128xf32> to vector<32xf32>
    %2 = vector.shape_cast %1 : vector<32xf32> to vector<32x1xf32>
    %cst_1 = arith.constant 1.280000e+02 : f32
    %3 = vector.broadcast %cst_1 : f32 to vector<32x1xf32>
    %4 = arith.divf %2, %3 : vector<32x1xf32>
    %5 = vector.broadcast %4 : vector<32x1xf32> to vector<32x128xf32>
    %6 = arith.subf %0, %5 : vector<32x128xf32>
    %7 = arith.mulf %6, %6 : vector<32x128xf32>
    %cst_2 = arith.constant dense<0.000000e+00> : vector<32xf32>
    %8 = vector.multi_reduction <add>, %7, %cst_2 [1] : vector<32x128xf32> to vector<32xf32>
    %9 = vector.shape_cast %8 : vector<32xf32> to vector<32x1xf32>
    %cst_3 = arith.constant 1.280000e+02 : f32
    %10 = vector.broadcast %cst_3 : f32 to vector<32x1xf32>
    %11 = arith.divf %9, %10 : vector<32x1xf32>
    %cst_4 = arith.constant 9.99999996E-13 : f32
    %12 = vector.broadcast %cst_4 : f32 to vector<32x1xf32>
    %13 = arith.addf %11, %12 : vector<32x1xf32>
    %14 = math.rsqrt %13 : vector<32x1xf32>
    %15 = vector.broadcast %14 : vector<32x1xf32> to vector<32x128xf32>
    %16 = arith.mulf %6, %15 : vector<32x128xf32>
    %c0_5 = arith.constant 0 : index
    %c0_6 = arith.constant 0 : index
    %17 = vector.load %arg2[%c0_5, %c0_6] : memref<1x128xf32, #tpu.memory_space<vmem>>, vector<1x128xf32>
    %18 = vector.broadcast %17 : vector<1x128xf32> to vector<32x128xf32>
    %19 = arith.mulf %16, %18 : vector<32x128xf32>
    %c0_7 = arith.constant 0 : index
    %c0_8 = arith.constant 0 : index
    %20 = vector.load %arg3[%c0_7, %c0_8] : memref<1x128xf32, #tpu.memory_space<vmem>>, vector<1x128xf32>
    %21 = vector.broadcast %20 : vector<1x128xf32> to vector<32x128xf32>
    %22 = arith.addf %19, %21 : vector<32x128xf32>
    %23 = arith.truncf %22 : vector<32x128xf32> to vector<32x128xbf16>
    %c0_9 = arith.constant 0 : index
    %c0_10 = arith.constant 0 : index
    %24 = vector.load %arg4[%c0_9, %c0_10] : memref<32x128xbf16, #tpu.memory_space<vmem>>, vector<32x128xbf16>
    tpu.vector_store %arg4[%c0_9, %c0_10], %23 {strides = array<i32>} : memref<32x128xbf16, #tpu.memory_space<vmem>>, vector<32x128xbf16>,
    return
  }
  func.func @transform_0(%arg0: i32) -> (i32, i32) {
    %c0_i32 = arith.constant 0 : i32
    %c0_i32_0 = arith.constant 0 : i32
    return %arg0, %c0_i32 : i32, i32
  }
  func.func @transform_1(%arg0: i32) -> (i32, i32) {
    %c0_i32 = arith.constant 0 : i32
    %c0_i32_0 = arith.constant 0 : i32
    %c0_i32_1 = arith.constant 0 : i32
    return %c0_i32, %c0_i32_0 : i32, i32
  }
  func.func @transform_2(%arg0: i32) -> (i32, i32) {
    %c0_i32 = arith.constant 0 : i32
    %c0_i32_0 = arith.constant 0 : i32
    %c0_i32_1 = arith.constant 0 : i32
    return %c0_i32, %c0_i32_0 : i32, i32
  }
  func.func @transform_3(%arg0: i32) -> (i32, i32) {
    %c0_i32 = arith.constant 0 : i32
    %c0_i32_0 = arith.constant 0 : i32
    return %arg0, %c0_i32 : i32, i32
  }
}

module attributes {stable_mosaic.version = 11 : i64} {
  func.func @_matmul_fullk_kernel(%arg0: i32, %arg1: i32, %arg2: memref<32x128xbf16, #tpu.memory_space<vmem>>, %arg3: memref<128x256xbf16, #tpu.memory_space<vmem>>, %arg4: memref<1x256xf32, #tpu.memory_space<vmem>>, %arg5: memref<32x256xbf16, #tpu.memory_space<vmem>>) attributes {dimension_semantics = [#tpu.dimension_semantics<parallel>, #tpu.dimension_semantics<parallel>], iteration_bounds = array<i64: 1, 1>, scalar_prefetch = 0 : i64, scratch_operands = 0 : i64, tpu.core_type = #tpu.core_type<tc>, window_params = [{transform_indices = @transform_0, window_bounds = array<i64: 32, 128>}, {transform_indices = @transform_1, window_bounds = array<i64: 128, 256>}, {transform_indices = @transform_2, window_bounds = array<i64: 1, 256>}, {transform_indices = @transform_3, window_bounds = array<i64: 32, 256>}]} {
    %c0 = arith.constant 0 : index
    %c0_0 = arith.constant 0 : index
    %0 = vector.load %arg2[%c0, %c0_0] : memref<32x128xbf16, #tpu.memory_space<vmem>>, vector<32x128xbf16>
    %c0_1 = arith.constant 0 : index
    %c0_2 = arith.constant 0 : index
    %1 = vector.load %arg3[%c0_1, %c0_2] : memref<128x256xbf16, #tpu.memory_space<vmem>>, vector<128x256xbf16>
    %cst = arith.constant dense<0.000000e+00> : vector<32x256xf32>
    %2 = tpu.matmul %0, %1, %cst {dimension_numbers = #tpu.dot_dimension_numbers<[1], [0], [0], [1], [0, 0, 1, 1], [], []>} : vector<32x128xbf16>, vector<128x256xbf16>, vector<32x256xf32> -> vector<32x256xf32>
    %c0_3 = arith.constant 0 : index
    %c0_4 = arith.constant 0 : index
    %3 = vector.load %arg4[%c0_3, %c0_4] : memref<1x256xf32, #tpu.memory_space<vmem>>, vector<1x256xf32>
    %4 = vector.broadcast %3 : vector<1x256xf32> to vector<32x256xf32>
    %5 = arith.addf %2, %4 : vector<32x256xf32>
    %cst_5 = arith.constant 5.000000e-01 : f32
    %6 = vector.broadcast %cst_5 : f32 to vector<32x256xf32>
    %7 = arith.mulf %5, %6 : vector<32x256xf32>
    %cst_6 = arith.constant 0.707106769 : f32
    %8 = vector.broadcast %cst_6 : f32 to vector<32x256xf32>
    %9 = arith.mulf %5, %8 : vector<32x256xf32>
    %10 = math.erf %9 : vector<32x256xf32>
    %cst_7 = arith.constant 1.000000e+00 : f32
    %11 = vector.broadcast %cst_7 : f32 to vector<32x256xf32>
    %12 = arith.addf %11, %10 : vector<32x256xf32>
    %13 = arith.mulf %7, %12 : vector<32x256xf32>
    %14 = arith.truncf %13 : vector<32x256xf32> to vector<32x256xbf16>
    %c0_8 = arith.constant 0 : index
    %c0_9 = arith.constant 0 : index
    %15 = vector.load %arg5[%c0_8, %c0_9] : memref<32x256xbf16, #tpu.memory_space<vmem>>, vector<32x256xbf16>
    tpu.vector_store %arg5[%c0_8, %c0_9], %14 {strides = array<i32>} : memref<32x256xbf16, #tpu.memory_space<vmem>>, vector<32x256xbf16>,
    return
  }
  func.func @transform_0(%arg0: i32, %arg1: i32) -> (i32, i32) {
    %c0_i32 = arith.constant 0 : i32
    %c0_i32_0 = arith.constant 0 : i32
    return %arg0, %c0_i32 : i32, i32
  }
  func.func @transform_1(%arg0: i32, %arg1: i32) -> (i32, i32) {
    %c0_i32 = arith.constant 0 : i32
    %c0_i32_0 = arith.constant 0 : i32
    return %c0_i32, %arg1 : i32, i32
  }
  func.func @transform_2(%arg0: i32, %arg1: i32) -> (i32, i32) {
    %c0_i32 = arith.constant 0 : i32
    %c0_i32_0 = arith.constant 0 : i32
    return %c0_i32, %arg1 : i32, i32
  }
  func.func @transform_3(%arg0: i32, %arg1: i32) -> (i32, i32) {
    %c0_i32 = arith.constant 0 : i32
    return %arg0, %arg1 : i32, i32
  }
}

module attributes {stable_mosaic.version = 11 : i64} {
  func.func @_matmul_res_ln_fullk_kernel(%arg0: i32, %arg1: memref<32x128xbf16, #tpu.memory_space<vmem>>, %arg2: memref<128x128xbf16, #tpu.memory_space<vmem>>, %arg3: memref<1x128xf32, #tpu.memory_space<vmem>>, %arg4: memref<32x128xbf16, #tpu.memory_space<vmem>>, %arg5: memref<1x128xf32, #tpu.memory_space<vmem>>, %arg6: memref<1x128xf32, #tpu.memory_space<vmem>>, %arg7: memref<32x128xbf16, #tpu.memory_space<vmem>>) attributes {dimension_semantics = [#tpu.dimension_semantics<parallel>], iteration_bounds = array<i64: 1>, scalar_prefetch = 0 : i64, scratch_operands = 0 : i64, tpu.core_type = #tpu.core_type<tc>, window_params = [{transform_indices = @transform_0, window_bounds = array<i64: 32, 128>}, {pipeline_mode = #tpu.pipeline_mode<synchronous>, transform_indices = @transform_1, window_bounds = array<i64: 128, 128>}, {pipeline_mode = #tpu.pipeline_mode<synchronous>, transform_indices = @transform_2, window_bounds = array<i64: 1, 128>}, {transform_indices = @transform_3, window_bounds = array<i64: 32, 128>}, {pipeline_mode = #tpu.pipeline_mode<synchronous>, transform_indices = @transform_4, window_bounds = array<i64: 1, 128>}, {pipeline_mode = #tpu.pipeline_mode<synchronous>, transform_indices = @transform_5, window_bounds = array<i64: 1, 128>}, {transform_indices = @transform_6, window_bounds = array<i64: 32, 128>}]} {
    %c0 = arith.constant 0 : index
    %c0_0 = arith.constant 0 : index
    %0 = vector.load %arg1[%c0, %c0_0] : memref<32x128xbf16, #tpu.memory_space<vmem>>, vector<32x128xbf16>
    %c0_1 = arith.constant 0 : index
    %c0_2 = arith.constant 0 : index
    %1 = vector.load %arg2[%c0_1, %c0_2] : memref<128x128xbf16, #tpu.memory_space<vmem>>, vector<128x128xbf16>
    %cst = arith.constant dense<0.000000e+00> : vector<32x128xf32>
    %2 = tpu.matmul %0, %1, %cst {dimension_numbers = #tpu.dot_dimension_numbers<[1], [0], [0], [1], [0, 0, 1, 1], [], []>} : vector<32x128xbf16>, vector<128x128xbf16>, vector<32x128xf32> -> vector<32x128xf32>
    %c0_3 = arith.constant 0 : index
    %c0_4 = arith.constant 0 : index
    %3 = vector.load %arg3[%c0_3, %c0_4] : memref<1x128xf32, #tpu.memory_space<vmem>>, vector<1x128xf32>
    %4 = vector.broadcast %3 : vector<1x128xf32> to vector<32x128xf32>
    %5 = arith.addf %2, %4 : vector<32x128xf32>
    %c0_5 = arith.constant 0 : index
    %c0_6 = arith.constant 0 : index
    %6 = vector.load %arg4[%c0_5, %c0_6] : memref<32x128xbf16, #tpu.memory_space<vmem>>, vector<32x128xbf16>
    %7 = arith.extf %6 : vector<32x128xbf16> to vector<32x128xf32>
    %8 = arith.addf %5, %7 : vector<32x128xf32>
    %cst_7 = arith.constant dense<0.000000e+00> : vector<32xf32>
    %9 = vector.multi_reduction <add>, %8, %cst_7 [1] : vector<32x128xf32> to vector<32xf32>
    %10 = vector.shape_cast %9 : vector<32xf32> to vector<32x1xf32>
    %cst_8 = arith.constant 1.280000e+02 : f32
    %11 = vector.broadcast %cst_8 : f32 to vector<32x1xf32>
    %12 = arith.divf %10, %11 : vector<32x1xf32>
    %13 = vector.broadcast %12 : vector<32x1xf32> to vector<32x128xf32>
    %14 = arith.subf %8, %13 : vector<32x128xf32>
    %15 = arith.mulf %14, %14 : vector<32x128xf32>
    %cst_9 = arith.constant dense<0.000000e+00> : vector<32xf32>
    %16 = vector.multi_reduction <add>, %15, %cst_9 [1] : vector<32x128xf32> to vector<32xf32>
    %17 = vector.shape_cast %16 : vector<32xf32> to vector<32x1xf32>
    %cst_10 = arith.constant 1.280000e+02 : f32
    %18 = vector.broadcast %cst_10 : f32 to vector<32x1xf32>
    %19 = arith.divf %17, %18 : vector<32x1xf32>
    %cst_11 = arith.constant 9.99999996E-13 : f32
    %20 = vector.broadcast %cst_11 : f32 to vector<32x1xf32>
    %21 = arith.addf %19, %20 : vector<32x1xf32>
    %22 = math.rsqrt %21 : vector<32x1xf32>
    %23 = vector.broadcast %22 : vector<32x1xf32> to vector<32x128xf32>
    %24 = arith.mulf %14, %23 : vector<32x128xf32>
    %c0_12 = arith.constant 0 : index
    %c0_13 = arith.constant 0 : index
    %25 = vector.load %arg5[%c0_12, %c0_13] : memref<1x128xf32, #tpu.memory_space<vmem>>, vector<1x128xf32>
    %26 = vector.broadcast %25 : vector<1x128xf32> to vector<32x128xf32>
    %27 = arith.mulf %24, %26 : vector<32x128xf32>
    %c0_14 = arith.constant 0 : index
    %c0_15 = arith.constant 0 : index
    %28 = vector.load %arg6[%c0_14, %c0_15] : memref<1x128xf32, #tpu.memory_space<vmem>>, vector<1x128xf32>
    %29 = vector.broadcast %28 : vector<1x128xf32> to vector<32x128xf32>
    %30 = arith.addf %27, %29 : vector<32x128xf32>
    %31 = arith.truncf %30 : vector<32x128xf32> to vector<32x128xbf16>
    %c0_16 = arith.constant 0 : index
    %c0_17 = arith.constant 0 : index
    %32 = vector.load %arg7[%c0_16, %c0_17] : memref<32x128xbf16, #tpu.memory_space<vmem>>, vector<32x128xbf16>
    tpu.vector_store %arg7[%c0_16, %c0_17], %31 {strides = array<i32>} : memref<32x128xbf16, #tpu.memory_space<vmem>>, vector<32x128xbf16>,
    return
  }
  func.func @transform_0(%arg0: i32) -> (i32, i32) {
    %c0_i32 = arith.constant 0 : i32
    %c0_i32_0 = arith.constant 0 : i32
    return %arg0, %c0_i32 : i32, i32
  }
  func.func @transform_1(%arg0: i32) -> (i32, i32) {
    %c0_i32 = arith.constant 0 : i32
    %c0_i32_0 = arith.constant 0 : i32
    %c0_i32_1 = arith.constant 0 : i32
    return %c0_i32, %c0_i32_0 : i32, i32
  }
  func.func @transform_2(%arg0: i32) -> (i32, i32) {
    %c0_i32 = arith.constant 0 : i32
    %c0_i32_0 = arith.constant 0 : i32
    %c0_i32_1 = arith.constant 0 : i32
    return %c0_i32, %c0_i32_0 : i32, i32
  }
  func.func @transform_3(%arg0: i32) -> (i32, i32) {
    %c0_i32 = arith.constant 0 : i32
    %c0_i32_0 = arith.constant 0 : i32
    return %arg0, %c0_i32 : i32, i32
  }
  func.func @transform_4(%arg0: i32) -> (i32, i32) {
    %c0_i32 = arith.constant 0 : i32
    %c0_i32_0 = arith.constant 0 : i32
    %c0_i32_1 = arith.constant 0 : i32
    return %c0_i32, %c0_i32_0 : i32, i32
  }
  func.func @transform_5(%arg0: i32) -> (i32, i32) {
    %c0_i32 = arith.constant 0 : i32
    %c0_i32_0 = arith.constant 0 : i32
    %c0_i32_1 = arith.constant 0 : i32
    return %c0_i32, %c0_i32_0 : i32, i32
  }
  func.func @transform_6(%arg0: i32) -> (i32, i32) {
    %c0_i32 = arith.constant 0 : i32
    %c0_i32_0 = arith.constant 0 : i32
    return %arg0, %c0_i32 : i32, i32
  }
}

module attributes {stable_mosaic.version = 11 : i64} {
  func.func @_matmul_res_ln_fullk_kernel(%arg0: i32, %arg1: memref<32x256xbf16, #tpu.memory_space<vmem>>, %arg2: memref<256x128xbf16, #tpu.memory_space<vmem>>, %arg3: memref<1x128xf32, #tpu.memory_space<vmem>>, %arg4: memref<32x128xbf16, #tpu.memory_space<vmem>>, %arg5: memref<1x128xf32, #tpu.memory_space<vmem>>, %arg6: memref<1x128xf32, #tpu.memory_space<vmem>>, %arg7: memref<32x128xbf16, #tpu.memory_space<vmem>>) attributes {dimension_semantics = [#tpu.dimension_semantics<parallel>], iteration_bounds = array<i64: 1>, scalar_prefetch = 0 : i64, scratch_operands = 0 : i64, tpu.core_type = #tpu.core_type<tc>, window_params = [{transform_indices = @transform_0, window_bounds = array<i64: 32, 256>}, {pipeline_mode = #tpu.pipeline_mode<synchronous>, transform_indices = @transform_1, window_bounds = array<i64: 256, 128>}, {pipeline_mode = #tpu.pipeline_mode<synchronous>, transform_indices = @transform_2, window_bounds = array<i64: 1, 128>}, {transform_indices = @transform_3, window_bounds = array<i64: 32, 128>}, {pipeline_mode = #tpu.pipeline_mode<synchronous>, transform_indices = @transform_4, window_bounds = array<i64: 1, 128>}, {pipeline_mode = #tpu.pipeline_mode<synchronous>, transform_indices = @transform_5, window_bounds = array<i64: 1, 128>}, {transform_indices = @transform_6, window_bounds = array<i64: 32, 128>}]} {
    %c0 = arith.constant 0 : index
    %c0_0 = arith.constant 0 : index
    %0 = vector.load %arg1[%c0, %c0_0] : memref<32x256xbf16, #tpu.memory_space<vmem>>, vector<32x256xbf16>
    %c0_1 = arith.constant 0 : index
    %c0_2 = arith.constant 0 : index
    %1 = vector.load %arg2[%c0_1, %c0_2] : memref<256x128xbf16, #tpu.memory_space<vmem>>, vector<256x128xbf16>
    %cst = arith.constant dense<0.000000e+00> : vector<32x128xf32>
    %2 = tpu.matmul %0, %1, %cst {dimension_numbers = #tpu.dot_dimension_numbers<[1], [0], [0], [1], [0, 0, 1, 1], [], []>} : vector<32x256xbf16>, vector<256x128xbf16>, vector<32x128xf32> -> vector<32x128xf32>
    %c0_3 = arith.constant 0 : index
    %c0_4 = arith.constant 0 : index
    %3 = vector.load %arg3[%c0_3, %c0_4] : memref<1x128xf32, #tpu.memory_space<vmem>>, vector<1x128xf32>
    %4 = vector.broadcast %3 : vector<1x128xf32> to vector<32x128xf32>
    %5 = arith.addf %2, %4 : vector<32x128xf32>
    %c0_5 = arith.constant 0 : index
    %c0_6 = arith.constant 0 : index
    %6 = vector.load %arg4[%c0_5, %c0_6] : memref<32x128xbf16, #tpu.memory_space<vmem>>, vector<32x128xbf16>
    %7 = arith.extf %6 : vector<32x128xbf16> to vector<32x128xf32>
    %8 = arith.addf %5, %7 : vector<32x128xf32>
    %cst_7 = arith.constant dense<0.000000e+00> : vector<32xf32>
    %9 = vector.multi_reduction <add>, %8, %cst_7 [1] : vector<32x128xf32> to vector<32xf32>
    %10 = vector.shape_cast %9 : vector<32xf32> to vector<32x1xf32>
    %cst_8 = arith.constant 1.280000e+02 : f32
    %11 = vector.broadcast %cst_8 : f32 to vector<32x1xf32>
    %12 = arith.divf %10, %11 : vector<32x1xf32>
    %13 = vector.broadcast %12 : vector<32x1xf32> to vector<32x128xf32>
    %14 = arith.subf %8, %13 : vector<32x128xf32>
    %15 = arith.mulf %14, %14 : vector<32x128xf32>
    %cst_9 = arith.constant dense<0.000000e+00> : vector<32xf32>
    %16 = vector.multi_reduction <add>, %15, %cst_9 [1] : vector<32x128xf32> to vector<32xf32>
    %17 = vector.shape_cast %16 : vector<32xf32> to vector<32x1xf32>
    %cst_10 = arith.constant 1.280000e+02 : f32
    %18 = vector.broadcast %cst_10 : f32 to vector<32x1xf32>
    %19 = arith.divf %17, %18 : vector<32x1xf32>
    %cst_11 = arith.constant 9.99999996E-13 : f32
    %20 = vector.broadcast %cst_11 : f32 to vector<32x1xf32>
    %21 = arith.addf %19, %20 : vector<32x1xf32>
    %22 = math.rsqrt %21 : vector<32x1xf32>
    %23 = vector.broadcast %22 : vector<32x1xf32> to vector<32x128xf32>
    %24 = arith.mulf %14, %23 : vector<32x128xf32>
    %c0_12 = arith.constant 0 : index
    %c0_13 = arith.constant 0 : index
    %25 = vector.load %arg5[%c0_12, %c0_13] : memref<1x128xf32, #tpu.memory_space<vmem>>, vector<1x128xf32>
    %26 = vector.broadcast %25 : vector<1x128xf32> to vector<32x128xf32>
    %27 = arith.mulf %24, %26 : vector<32x128xf32>
    %c0_14 = arith.constant 0 : index
    %c0_15 = arith.constant 0 : index
    %28 = vector.load %arg6[%c0_14, %c0_15] : memref<1x128xf32, #tpu.memory_space<vmem>>, vector<1x128xf32>
    %29 = vector.broadcast %28 : vector<1x128xf32> to vector<32x128xf32>
    %30 = arith.addf %27, %29 : vector<32x128xf32>
    %31 = arith.truncf %30 : vector<32x128xf32> to vector<32x128xbf16>
    %c0_16 = arith.constant 0 : index
    %c0_17 = arith.constant 0 : index
    %32 = vector.load %arg7[%c0_16, %c0_17] : memref<32x128xbf16, #tpu.memory_space<vmem>>, vector<32x128xbf16>
    tpu.vector_store %arg7[%c0_16, %c0_17], %31 {strides = array<i32>} : memref<32x128xbf16, #tpu.memory_space<vmem>>, vector<32x128xbf16>,
    return
  }
  func.func @transform_0(%arg0: i32) -> (i32, i32) {
    %c0_i32 = arith.constant 0 : i32
    %c0_i32_0 = arith.constant 0 : i32
    return %arg0, %c0_i32 : i32, i32
  }
  func.func @transform_1(%arg0: i32) -> (i32, i32) {
    %c0_i32 = arith.constant 0 : i32
    %c0_i32_0 = arith.constant 0 : i32
    %c0_i32_1 = arith.constant 0 : i32
    return %c0_i32, %c0_i32_0 : i32, i32
  }
  func.func @transform_2(%arg0: i32) -> (i32, i32) {
    %c0_i32 = arith.constant 0 : i32
    %c0_i32_0 = arith.constant 0 : i32
    %c0_i32_1 = arith.constant 0 : i32
    return %c0_i32, %c0_i32_0 : i32, i32
  }
  func.func @transform_3(%arg0: i32) -> (i32, i32) {
    %c0_i32 = arith.constant 0 : i32
    %c0_i32_0 = arith.constant 0 : i32
    return %arg0, %c0_i32 : i32, i32
  }
  func.func @transform_4(%arg0: i32) -> (i32, i32) {
    %c0_i32 = arith.constant 0 : i32
    %c0_i32_0 = arith.constant 0 : i32
    %c0_i32_1 = arith.constant 0 : i32
    return %c0_i32, %c0_i32_0 : i32, i32
  }
  func.func @transform_5(%arg0: i32) -> (i32, i32) {
    %c0_i32 = arith.constant 0 : i32
    %c0_i32_0 = arith.constant 0 : i32
    %c0_i32_1 = arith.constant 0 : i32
    return %c0_i32, %c0_i32_0 : i32, i32
  }
  func.func @transform_6(%arg0: i32) -> (i32, i32) {
    %c0_i32 = arith.constant 0 : i32
    %c0_i32_0 = arith.constant 0 : i32
    return %arg0, %c0_i32 : i32, i32
  }
}

module attributes {stable_mosaic.version = 11 : i64} {
  func.func @_matmul_fullk_kernel(%arg0: i32, %arg1: i32, %arg2: memref<32x128xbf16, #tpu.memory_space<vmem>>, %arg3: memref<128x256xbf16, #tpu.memory_space<vmem>>, %arg4: memref<1x256xf32, #tpu.memory_space<vmem>>, %arg5: memref<32x256xbf16, #tpu.memory_space<vmem>>) attributes {dimension_semantics = [#tpu.dimension_semantics<parallel>, #tpu.dimension_semantics<parallel>], iteration_bounds = array<i64: 1, 1>, scalar_prefetch = 0 : i64, scratch_operands = 0 : i64, tpu.core_type = #tpu.core_type<tc>, window_params = [{transform_indices = @transform_0, window_bounds = array<i64: 32, 128>}, {transform_indices = @transform_1, window_bounds = array<i64: 128, 256>}, {transform_indices = @transform_2, window_bounds = array<i64: 1, 256>}, {transform_indices = @transform_3, window_bounds = array<i64: 32, 256>}]} {
    %c0 = arith.constant 0 : index
    %c0_0 = arith.constant 0 : index
    %0 = vector.load %arg2[%c0, %c0_0] : memref<32x128xbf16, #tpu.memory_space<vmem>>, vector<32x128xbf16>
    %c0_1 = arith.constant 0 : index
    %c0_2 = arith.constant 0 : index
    %1 = vector.load %arg3[%c0_1, %c0_2] : memref<128x256xbf16, #tpu.memory_space<vmem>>, vector<128x256xbf16>
    %cst = arith.constant dense<0.000000e+00> : vector<32x256xf32>
    %2 = tpu.matmul %0, %1, %cst {dimension_numbers = #tpu.dot_dimension_numbers<[1], [0], [0], [1], [0, 0, 1, 1], [], []>} : vector<32x128xbf16>, vector<128x256xbf16>, vector<32x256xf32> -> vector<32x256xf32>
    %c0_3 = arith.constant 0 : index
    %c0_4 = arith.constant 0 : index
    %3 = vector.load %arg4[%c0_3, %c0_4] : memref<1x256xf32, #tpu.memory_space<vmem>>, vector<1x256xf32>
    %4 = vector.broadcast %3 : vector<1x256xf32> to vector<32x256xf32>
    %5 = arith.addf %2, %4 : vector<32x256xf32>
    %cst_5 = arith.constant 5.000000e-01 : f32
    %6 = vector.broadcast %cst_5 : f32 to vector<32x256xf32>
    %7 = arith.mulf %5, %6 : vector<32x256xf32>
    %cst_6 = arith.constant 0.707106769 : f32
    %8 = vector.broadcast %cst_6 : f32 to vector<32x256xf32>
    %9 = arith.mulf %5, %8 : vector<32x256xf32>
    %10 = math.erf %9 : vector<32x256xf32>
    %cst_7 = arith.constant 1.000000e+00 : f32
    %11 = vector.broadcast %cst_7 : f32 to vector<32x256xf32>
    %12 = arith.addf %11, %10 : vector<32x256xf32>
    %13 = arith.mulf %7, %12 : vector<32x256xf32>
    %14 = arith.truncf %13 : vector<32x256xf32> to vector<32x256xbf16>
    %c0_8 = arith.constant 0 : index
    %c0_9 = arith.constant 0 : index
    %15 = vector.load %arg5[%c0_8, %c0_9] : memref<32x256xbf16, #tpu.memory_space<vmem>>, vector<32x256xbf16>
    tpu.vector_store %arg5[%c0_8, %c0_9], %14 {strides = array<i32>} : memref<32x256xbf16, #tpu.memory_space<vmem>>, vector<32x256xbf16>,
    return
  }
  func.func @transform_0(%arg0: i32, %arg1: i32) -> (i32, i32) {
    %c0_i32 = arith.constant 0 : i32
    %c0_i32_0 = arith.constant 0 : i32
    return %arg0, %c0_i32 : i32, i32
  }
  func.func @transform_1(%arg0: i32, %arg1: i32) -> (i32, i32) {
    %c0_i32 = arith.constant 0 : i32
    %c0_i32_0 = arith.constant 0 : i32
    return %c0_i32, %arg1 : i32, i32
  }
  func.func @transform_2(%arg0: i32, %arg1: i32) -> (i32, i32) {
    %c0_i32 = arith.constant 0 : i32
    %c0_i32_0 = arith.constant 0 : i32
    return %c0_i32, %arg1 : i32, i32
  }
  func.func @transform_3(%arg0: i32, %arg1: i32) -> (i32, i32) {
    %c0_i32 = arith.constant 0 : i32
    return %arg0, %arg1 : i32, i32
  }
}

module attributes {stable_mosaic.version = 11 : i64} {
  func.func @_matmul_res_ln_fullk_kernel(%arg0: i32, %arg1: memref<32x256xbf16, #tpu.memory_space<vmem>>, %arg2: memref<256x128xbf16, #tpu.memory_space<vmem>>, %arg3: memref<1x128xf32, #tpu.memory_space<vmem>>, %arg4: memref<32x128xbf16, #tpu.memory_space<vmem>>, %arg5: memref<1x128xf32, #tpu.memory_space<vmem>>, %arg6: memref<1x128xf32, #tpu.memory_space<vmem>>, %arg7: memref<32x128xf32, #tpu.memory_space<vmem>>) attributes {dimension_semantics = [#tpu.dimension_semantics<parallel>], iteration_bounds = array<i64: 1>, scalar_prefetch = 0 : i64, scratch_operands = 0 : i64, tpu.core_type = #tpu.core_type<tc>, window_params = [{transform_indices = @transform_0, window_bounds = array<i64: 32, 256>}, {pipeline_mode = #tpu.pipeline_mode<synchronous>, transform_indices = @transform_1, window_bounds = array<i64: 256, 128>}, {pipeline_mode = #tpu.pipeline_mode<synchronous>, transform_indices = @transform_2, window_bounds = array<i64: 1, 128>}, {transform_indices = @transform_3, window_bounds = array<i64: 32, 128>}, {pipeline_mode = #tpu.pipeline_mode<synchronous>, transform_indices = @transform_4, window_bounds = array<i64: 1, 128>}, {pipeline_mode = #tpu.pipeline_mode<synchronous>, transform_indices = @transform_5, window_bounds = array<i64: 1, 128>}, {transform_indices = @transform_6, window_bounds = array<i64: 32, 128>}]} {
    %c0 = arith.constant 0 : index
    %c0_0 = arith.constant 0 : index
    %0 = vector.load %arg1[%c0, %c0_0] : memref<32x256xbf16, #tpu.memory_space<vmem>>, vector<32x256xbf16>
    %c0_1 = arith.constant 0 : index
    %c0_2 = arith.constant 0 : index
    %1 = vector.load %arg2[%c0_1, %c0_2] : memref<256x128xbf16, #tpu.memory_space<vmem>>, vector<256x128xbf16>
    %cst = arith.constant dense<0.000000e+00> : vector<32x128xf32>
    %2 = tpu.matmul %0, %1, %cst {dimension_numbers = #tpu.dot_dimension_numbers<[1], [0], [0], [1], [0, 0, 1, 1], [], []>} : vector<32x256xbf16>, vector<256x128xbf16>, vector<32x128xf32> -> vector<32x128xf32>
    %c0_3 = arith.constant 0 : index
    %c0_4 = arith.constant 0 : index
    %3 = vector.load %arg3[%c0_3, %c0_4] : memref<1x128xf32, #tpu.memory_space<vmem>>, vector<1x128xf32>
    %4 = vector.broadcast %3 : vector<1x128xf32> to vector<32x128xf32>
    %5 = arith.addf %2, %4 : vector<32x128xf32>
    %c0_5 = arith.constant 0 : index
    %c0_6 = arith.constant 0 : index
    %6 = vector.load %arg4[%c0_5, %c0_6] : memref<32x128xbf16, #tpu.memory_space<vmem>>, vector<32x128xbf16>
    %7 = arith.extf %6 : vector<32x128xbf16> to vector<32x128xf32>
    %8 = arith.addf %5, %7 : vector<32x128xf32>
    %cst_7 = arith.constant dense<0.000000e+00> : vector<32xf32>
    %9 = vector.multi_reduction <add>, %8, %cst_7 [1] : vector<32x128xf32> to vector<32xf32>
    %10 = vector.shape_cast %9 : vector<32xf32> to vector<32x1xf32>
    %cst_8 = arith.constant 1.280000e+02 : f32
    %11 = vector.broadcast %cst_8 : f32 to vector<32x1xf32>
    %12 = arith.divf %10, %11 : vector<32x1xf32>
    %13 = vector.broadcast %12 : vector<32x1xf32> to vector<32x128xf32>
    %14 = arith.subf %8, %13 : vector<32x128xf32>
    %15 = arith.mulf %14, %14 : vector<32x128xf32>
    %cst_9 = arith.constant dense<0.000000e+00> : vector<32xf32>
    %16 = vector.multi_reduction <add>, %15, %cst_9 [1] : vector<32x128xf32> to vector<32xf32>
    %17 = vector.shape_cast %16 : vector<32xf32> to vector<32x1xf32>
    %cst_10 = arith.constant 1.280000e+02 : f32
    %18 = vector.broadcast %cst_10 : f32 to vector<32x1xf32>
    %19 = arith.divf %17, %18 : vector<32x1xf32>
    %cst_11 = arith.constant 9.99999996E-13 : f32
    %20 = vector.broadcast %cst_11 : f32 to vector<32x1xf32>
    %21 = arith.addf %19, %20 : vector<32x1xf32>
    %22 = math.rsqrt %21 : vector<32x1xf32>
    %23 = vector.broadcast %22 : vector<32x1xf32> to vector<32x128xf32>
    %24 = arith.mulf %14, %23 : vector<32x128xf32>
    %c0_12 = arith.constant 0 : index
    %c0_13 = arith.constant 0 : index
    %25 = vector.load %arg5[%c0_12, %c0_13] : memref<1x128xf32, #tpu.memory_space<vmem>>, vector<1x128xf32>
    %26 = vector.broadcast %25 : vector<1x128xf32> to vector<32x128xf32>
    %27 = arith.mulf %24, %26 : vector<32x128xf32>
    %c0_14 = arith.constant 0 : index
    %c0_15 = arith.constant 0 : index
    %28 = vector.load %arg6[%c0_14, %c0_15] : memref<1x128xf32, #tpu.memory_space<vmem>>, vector<1x128xf32>
    %29 = vector.broadcast %28 : vector<1x128xf32> to vector<32x128xf32>
    %30 = arith.addf %27, %29 : vector<32x128xf32>
    %c0_16 = arith.constant 0 : index
    %c0_17 = arith.constant 0 : index
    %31 = vector.load %arg7[%c0_16, %c0_17] : memref<32x128xf32, #tpu.memory_space<vmem>>, vector<32x128xf32>
    tpu.vector_store %arg7[%c0_16, %c0_17], %30 {strides = array<i32>} : memref<32x128xf32, #tpu.memory_space<vmem>>, vector<32x128xf32>,
    return
  }
  func.func @transform_0(%arg0: i32) -> (i32, i32) {
    %c0_i32 = arith.constant 0 : i32
    %c0_i32_0 = arith.constant 0 : i32
    return %arg0, %c0_i32 : i32, i32
  }
  func.func @transform_1(%arg0: i32) -> (i32, i32) {
    %c0_i32 = arith.constant 0 : i32
    %c0_i32_0 = arith.constant 0 : i32
    %c0_i32_1 = arith.constant 0 : i32
    return %c0_i32, %c0_i32_0 : i32, i32
  }
  func.func @transform_2(%arg0: i32) -> (i32, i32) {
    %c0_i32 = arith.constant 0 : i32
    %c0_i32_0 = arith.constant 0 : i32
    %c0_i32_1 = arith.constant 0 : i32
    return %c0_i32, %c0_i32_0 : i32, i32
  }
  func.func @transform_3(%arg0: i32) -> (i32, i32) {
    %c0_i32 = arith.constant 0 : i32
    %c0_i32_0 = arith.constant 0 : i32
    return %arg0, %c0_i32 : i32, i32
  }
  func.func @transform_4(%arg0: i32) -> (i32, i32) {
    %c0_i32 = arith.constant 0 : i32
    %c0_i32_0 = arith.constant 0 : i32
    %c0_i32_1 = arith.constant 0 : i32
    return %c0_i32, %c0_i32_0 : i32, i32
  }
  func.func @transform_5(%arg0: i32) -> (i32, i32) {
    %c0_i32 = arith.constant 0 : i32
    %c0_i32_0 = arith.constant 0 : i32
    %c0_i32_1 = arith.constant 0 : i32
    return %c0_i32, %c0_i32_0 : i32, i32
  }
  func.func @transform_6(%arg0: i32) -> (i32, i32) {
    %c0_i32 = arith.constant 0 : i32
    %c0_i32_0 = arith.constant 0 : i32
    return %arg0, %c0_i32 : i32, i32
  }
}

</mosaic_0001>

<bundles_post_ra>
// kernel: super_bert_forward.14
= control target key start
LH: loop header
LB: loop body
LE: loop exit
PB: predicated region body
PF: predicated region fallthrough
CT: control target
= control target key end

     0   :  { %v345_v29 = vmov 128.0   ;;  %s452_s1 = inlined_call_operand.vmem [shape: bf16[128,128], index: 1, kind: input, shape index: {}]   ;;  %s453_s2 = inlined_call_operand.vmem [shape: f32[1,128], index: 2, kind: input, shape index: {}]   ;;  %s454_s0 = inlined_call_operand.vmem [shape: bf16[32,128], index: 0, kind: input, shape index: {}]   ;;  %s455_s3 = inlined_call_operand.vmem [shape: bf16[32,128], index: 3, kind: input, shape index: {}]   ;;  %s456_s4 = inlined_call_operand.vmem [shape: f32[1,128], index: 4, kind: input, shape index: {}]   ;;  %s457_s5 = inlined_call_operand.vmem [shape: f32[1,128], index: 5, kind: input, shape index: {}]   ;;  %s458_s6 = inlined_call_operand.vmem [shape: bf16[32,128], index: 6, kind: output, shape index: {}]  }
   0x1   :  { %v302_v0 = vld [vmem:[%s452_s1 + $0x38] sm:$0xff]  ;;  %v301_v1 = vld [vmem:[%s452_s1 + $0x30] sm:$0xff]  ;;  %v300_v2 = vld [vmem:[%s452_s1 + $0x28] sm:$0xff]  ;;  %335 = vrcp.f32 %v345_v29 }
   0x2   :  { %107 = vmatpush.bf16.msra.mxu0 %v302_v0  ;;  %323 = vmatpush.bf16.msra.mxu1 %v302_v0  ;;  %v299_v3 = vld [vmem:[%s452_s1 + $0x20] sm:$0xff]  ;;  %v298_v4 = vld [vmem:[%s452_s1 + $0x18] sm:$0xff]  ;;  %v297_v5 = vld [vmem:[%s452_s1 + $0x10] sm:$0xff] }
   0x3   :  { %v296_v6 = vld [vmem:[%s452_s1 + $0x8] sm:$0xff]  ;;  %v295_v7 = vld [vmem:[%s452_s1] sm:$0xff] }
   0x4   :  { %v293_v8 = vld [vmem:[%s454_s0] sm:$0xff]  ;;  %v294_v9 = vld [vmem:[%s454_s0 + $0x8] sm:$0xff] }
   0x5   :  { %v321_v10 = vld [vmem:[%s455_s3 + $0x8] sm:$0xff]   ;;  %v304_v11 = vld [vmem:[%s455_s3] sm:$0xff]  }
   0x6   :  { %108 = vmatpush.bf16.msra.mxu0 %v301_v1  ;;  %324 = vmatpush.bf16.msra.mxu1 %v301_v1  ;;  %v332_v12 = vld [vmem:[%s453_s2] ss:$0 sm:$0xff]  ;;  %v309_v13 = vunpack.c.l.bf16 %v321_v10  ;;  %v305_v14 = vunpack.c.l.bf16 %v304_v11  ;;  %v310_v21 = vunpack.c.h.bf16 %v321_v10  ;;  %v306_v22 = vunpack.c.h.bf16 %v304_v11 }
   0x7   :  { %v336_v30 = vpop.eup %335 }
   0x8   :  { %v147_v31 = vmul.f32 128.0, %v336_v30  ;;  %vm151_vm0 = vweird.f32 %v336_v30 }
   0xa   :  { %109 = vmatpush.bf16.msra.mxu0 %v300_v2  ;;  %325 = vmatpush.bf16.msra.mxu1 %v300_v2  ;;  %v148_v32 = vsub.f32 1.0, %v147_v31 }
   0xc   :  { %v149_v33 = vmul.f32 %v336_v30, %v148_v32 }
   0xe   :  { %110 = vmatpush.bf16.msra.mxu0 %v299_v3  ;;  %326 = vmatpush.bf16.msra.mxu1 %v299_v3  ;;  %v150_v34 = vadd.f32 %v336_v30, %v149_v33 }
  0x10   :  { %v152_v35 = vsel %vm151_vm0, %v336_v30, %v150_v34  ;;  %v334_v30 = vld [vmem:[%s457_s5] ss:$0 sm:$0xff] }
  0x12   :  { %111 = vmatpush.bf16.msra.mxu0 %v298_v4  ;;  %327 = vmatpush.bf16.msra.mxu1 %v298_v4 }
  0x16   :  { %112 = vmatpush.bf16.msra.mxu0 %v297_v5  ;;  %328 = vmatpush.bf16.msra.mxu1 %v297_v5 }
  0x1a   :  { %113 = vmatpush.bf16.msra.mxu0 %v296_v6  ;;  %329 = vmatpush.bf16.msra.mxu1 %v296_v6 }
  0x1e   :  { %114 = vmatpush.bf16.msra.mxu0 %v295_v7  ;;  %330 = vmatpush.bf16.msra.mxu1 %v295_v7 }
  0x21   :  { %115 = vmatmul.bf16.vlgmr.msra.gmra.mxu0 %v293_v8  ;;  %120 = vmatmul.bf16.vlgmr.msra.gmra.mxu1 %v294_v9 }
  0x9e   :  { %v116_v15 = vpop.f32.mrf.mxu0  ;;  %v121_v16 = vpop.f32.mrf.mxu1 }
  0x9f   :  { %v117_v17 = vadd.f32 %v332_v12, %v116_v15  ;;  %v122_v18 = vadd.f32 %v332_v12, %v121_v16 }
  0xa1   :  { %v136_v19 = vadd.f32 %v309_v13, %v122_v18  ;;  %v134_v20 = vadd.f32 %v305_v14, %v117_v17 }
  0xa3   :  { %142 = vadd.xlane.f32.xlu1 %v136_v19  ;;  %138 = vadd.xlane.f32.xlu0 %v134_v20 }
  0xa6   :  { %v118_v23 = vpop.f32.mrf.mxu0  ;;  %v123_v24 = vpop.f32.mrf.mxu1 }
  0xa7   :  { %v119_v25 = vadd.f32 %v332_v12, %v118_v23  ;;  %v124_v26 = vadd.f32 %v332_v12, %v123_v24  ;;  %v333_v23 = vld [vmem:[%s456_s4] ss:$0 sm:$0xff] }
  0xa9   :  { %v137_v27 = vadd.f32 %v310_v21, %v124_v26  ;;  %v135_v28 = vadd.f32 %v306_v22, %v119_v25 }
  0xab   :  { %144 = vadd.xlane.f32.xlu1 %v137_v27  ;;  %140 = vadd.xlane.f32.xlu0 %v135_v28 }
 0x116   :  { %v143_v36 = vpop.xlane.xlu1 %142  ;;  %v139_v37 = vpop.xlane.xlu0 %138 }
 0x117   :  { %v155_v38 = vmul.f32 %v152_v35, %v143_v36  ;;  %v153_v39 = vmul.f32 %v152_v35, %v139_v37 }
 0x119   :  { %v420_v40 = vsub.f32 %v136_v19, %v155_v38  ;;  %v422_v41 = vsub.f32 %v134_v20, %v153_v39 }
 0x11b   :  { %v163_v42 = vmul.f32 %v420_v40, %v420_v40  ;;  %v161_v43 = vmul.f32 %v422_v41, %v422_v41 }
 0x11d   :  { %169 = vadd.xlane.f32.xlu0 %v163_v42  ;;  %165 = vadd.xlane.f32.xlu2 %v161_v43 }
 0x11e   :  { %v145_v44 = vpop.xlane.xlu1 %144  ;;  %v141_v45 = vpop.xlane.xlu0 %140 }
 0x11f   :  { %v156_v46 = vmul.f32 %v152_v35, %v145_v44  ;;  %v154_v47 = vmul.f32 %v152_v35, %v141_v45 }
 0x121   :  { %v428_v48 = vsub.f32 %v137_v27, %v156_v46  ;;  %v430_v49 = vsub.f32 %v135_v28, %v154_v47 }
 0x123   :  { %v164_v50 = vmul.f32 %v428_v48, %v428_v48  ;;  %v162_v51 = vmul.f32 %v430_v49, %v430_v49 }
 0x125   :  { %171 = vadd.xlane.f32.xlu1 %v164_v50  ;;  %167 = vadd.xlane.f32.xlu2 %v162_v51 }
 0x190   :  { %v166_v52 = vpop.xlane.xlu2 %165  ;;  %v170_v53 = vpop.xlane.xlu0 %169 }
 0x191   :  { %v173_v54 = vmul.f32 %v166_v52, %v152_v35  ;;  %v175_v55 = vmul.f32 %v170_v53, %v152_v35 }
 0x193   :  { %v177_v56 = vadd.f32 1e-12, %v173_v54  ;;  %v179_v57 = vadd.f32 1e-12, %v175_v55 }
 0x195   :  { %337 = vrsqrt.f32 %v177_v56  ;;  %vm207_vm3 = vweird.f32 %v179_v57  ;;  %vm187_vm4 = vweird.f32 %v177_v56 }
 0x196   :  { %339 = vrsqrt.f32 %v179_v57 }
 0x198   :  { %v172_v58 = vpop.xlane.xlu1 %171  ;;  %v168_v59 = vpop.xlane.xlu2 %167 }
 0x199   :  { %v176_v60 = vmul.f32 %v172_v58, %v152_v35  ;;  %v174_v61 = vmul.f32 %v168_v59, %v152_v35 }
 0x19b   :  { %v338_v62 = vpop.eup %337  ;;  %v180_v63 = vadd.f32 1e-12, %v176_v60  ;;  %v178_v0 = vadd.f32 1e-12, %v174_v61 }
 0x19c   :  { %v340_v1 = vpop.eup %339  ;;  %v182_v2 = vmul.f32 %v338_v62, %v177_v56  ;;  %vm188_vm2 = vweird.f32 %v338_v62 }
 0x19d   :  { %v202_v3 = vmul.f32 %v340_v1, %v179_v57  ;;  %341 = vrsqrt.f32 %v180_v63  ;;  %vm208_vm1 = vweird.f32 %v340_v1  ;;  %vm189_vm6 = vmor %vm187_vm4, %vm188_vm2  ;;  %vm217_vm9 = vweird.f32 %v180_v63 }
 0x19e   :  { %v183_v4 = vmul.f32 %v338_v62, %v182_v2  ;;  %343 = vrsqrt.f32 %v178_v0  ;;  %vm209_vm5 = vmor %vm207_vm3, %vm208_vm1  ;;  %vm197_vm11 = vweird.f32 %v178_v0 }
 0x19f   :  { %v203_v5 = vmul.f32 %v340_v1, %v202_v3 }
 0x1a0   :  { %v184_v6 = vmul.f32 0.5, %v183_v4 }
 0x1a1   :  { %v204_v7 = vmul.f32 0.5, %v203_v5 }
 0x1a2   :  { %v185_v8 = vsub.f32 1.5, %v184_v6 }
 0x1a3   :  { %v342_v9 = vpop.eup %341  ;;  %v205_v10 = vsub.f32 1.5, %v204_v7 }
 0x1a4   :  { %v344_v11 = vpop.eup %343  ;;  %v212_v12 = vmul.f32 %v342_v9, %v180_v63  ;;  %v186_v13 = vmul.f32 %v338_v62, %v185_v8  ;;  %vm218_vm7 = vweird.f32 %v342_v9 }
 0x1a5   :  { %v206_v14 = vmul.f32 %v340_v1, %v205_v10  ;;  %v192_v15 = vmul.f32 %v344_v11, %v178_v0  ;;  %vm198_vm8 = vweird.f32 %v344_v11  ;;  %vm219_vm10 = vmor %vm217_vm9, %vm218_vm7 }
 0x1a6   :  { %v213_v16 = vmul.f32 %v342_v9, %v212_v12  ;;  %v190_v20 = vsel %vm189_vm6, %v338_v62, %v186_v13  ;;  %vm199_vm12 = vmor %vm197_vm11, %vm198_vm8 }
 0x1a7   :  { %v193_v17 = vmul.f32 %v344_v11, %v192_v15  ;;  %v210_v18 = vsel %vm209_vm5, %v340_v1, %v206_v14  ;;  %v221_v26 = vmul.f32 %v190_v20, %v422_v41 }
 0x1a8   :  { %v214_v19 = vmul.f32 0.5, %v213_v16  ;;  %v223_v24 = vmul.f32 %v210_v18, %v420_v40 }
 0x1a9   :  { %v194_v21 = vmul.f32 0.5, %v193_v17  ;;  %v229_v34 = vmul.f32 %v333_v23, %v221_v26 }
 0x1aa   :  { %v215_v22 = vsub.f32 1.5, %v214_v19  ;;  %v231_v31 = vmul.f32 %v333_v23, %v223_v24 }
 0x1ab   :  { %v195_v25 = vsub.f32 1.5, %v194_v21  ;;  %v237_v40 = vadd.f32 %v334_v30, %v229_v34 }
 0x1ac   :  { %v216_v27 = vmul.f32 %v342_v9, %v215_v22  ;;  %v239_v38 = vadd.f32 %v334_v30, %v231_v31 }
 0x1ad   :  { %v196_v28 = vmul.f32 %v344_v11, %v195_v25 }
 0x1ae   :  { %v220_v29 = vsel %vm219_vm10, %v342_v9, %v216_v27 }
 0x1af   :  { %v224_v32 = vmul.f32 %v220_v29, %v428_v48  ;;  %v200_v33 = vsel %vm199_vm12, %v344_v11, %v196_v28 }
 0x1b0   :  { %v222_v35 = vmul.f32 %v200_v33, %v430_v49 }
 0x1b1   :  { %v232_v36 = vmul.f32 %v333_v23, %v224_v32 }
 0x1b2   :  { %v230_v37 = vmul.f32 %v333_v23, %v222_v35 }
 0x1b3   :  { %v240_v39 = vadd.f32 %v334_v30, %v232_v36 }
 0x1b4   :  { %v238_v41 = vadd.f32 %v334_v30, %v230_v37 }
 0x1b5   :  { %v319_v42 = vpack.c.bf16 %v240_v39, %v239_v38 }
 0x1b6   :  { %v314_v43 = vpack.c.bf16 %v238_v41, %v237_v40 }
 0x1b7   :  { %322 = vst [vmem:[%s458_s6 + $0x8] sm:$0xff] %v319_v42  }
 0x1b8   :  { %315 = vst [vmem:[%s458_s6] sm:$0xff] %v314_v43  }

// kernel: super_bert_forward.11
= control target key start
LH: loop header
LB: loop body
LE: loop exit
PB: predicated region body
PF: predicated region fallthrough
CT: control target
= control target key end

     0   :  { %v157_v4 = vmov 128.0   ;;  %s222_s0 = inlined_call_operand.vmem [shape: f32[32,128], index: 0, kind: input, shape index: {}]   ;;  %s223_s1 = inlined_call_operand.vmem [shape: f32[1,128], index: 1, kind: input, shape index: {}]   ;;  %s224_s2 = inlined_call_operand.vmem [shape: f32[1,128], index: 2, kind: input, shape index: {}]   ;;  %s225_s3 = inlined_call_operand.vmem [shape: bf16[32,128], index: 3, kind: output, shape index: {}]  }
   0x1   :  { %v16_v0 = vld [vmem:[%s222_s0 + $0x10] sm:$0xff]  ;;  %v14_v1 = vld [vmem:[%s222_s0] sm:$0xff]  ;;  %v17_v2 = vld [vmem:[%s222_s0 + $0x18] sm:$0xff]  ;;  %147 = vrcp.f32 %v157_v4 }
   0x2   :  { %22 = vadd.xlane.f32.xlu1 %v16_v0  ;;  %18 = vadd.xlane.f32.xlu0 %v14_v1  ;;  %v15_v3 = vld [vmem:[%s222_s0 + $0x8] sm:$0xff]  ;;  %v145_v62 = vld [vmem:[%s223_s1] ss:$0 sm:$0xff] }
   0x7   :  { %v148_v5 = vpop.eup %147 }
   0x8   :  { %v27_v6 = vmul.f32 128.0, %v148_v5  ;;  %vm31_vm0 = vweird.f32 %v148_v5 }
   0xa   :  { %24 = vadd.xlane.f32.xlu1 %v17_v2  ;;  %20 = vadd.xlane.f32.xlu0 %v15_v3  ;;  %v28_v7 = vsub.f32 1.0, %v27_v6 }
   0xc   :  { %v29_v8 = vmul.f32 %v148_v5, %v28_v7 }
   0xe   :  { %v30_v9 = vadd.f32 %v148_v5, %v29_v8 }
  0x10   :  { %v32_v10 = vsel %vm31_vm0, %v148_v5, %v30_v9  ;;  %v146_v5 = vld [vmem:[%s224_s2] ss:$0 sm:$0xff] }
  0x75   :  { %v23_v11 = vpop.xlane.xlu1 %22  ;;  %v19_v12 = vpop.xlane.xlu0 %18 }
  0x76   :  { %v35_v13 = vmul.f32 %v32_v10, %v23_v11  ;;  %v33_v14 = vmul.f32 %v32_v10, %v19_v12 }
  0x78   :  { %v190_v15 = vsub.f32 %v16_v0, %v35_v13  ;;  %v192_v16 = vsub.f32 %v14_v1, %v33_v14 }
  0x7a   :  { %v43_v17 = vmul.f32 %v190_v15, %v190_v15  ;;  %v41_v18 = vmul.f32 %v192_v16, %v192_v16 }
  0x7c   :  { %49 = vadd.xlane.f32.xlu0 %v43_v17  ;;  %45 = vadd.xlane.f32.xlu2 %v41_v18 }
  0x7d   :  { %v25_v19 = vpop.xlane.xlu1 %24  ;;  %v21_v20 = vpop.xlane.xlu0 %20 }
  0x7e   :  { %v36_v21 = vmul.f32 %v32_v10, %v25_v19  ;;  %v34_v22 = vmul.f32 %v32_v10, %v21_v20 }
  0x80   :  { %v198_v23 = vsub.f32 %v17_v2, %v36_v21  ;;  %v200_v24 = vsub.f32 %v15_v3, %v34_v22 }
  0x82   :  { %v44_v25 = vmul.f32 %v198_v23, %v198_v23  ;;  %v42_v26 = vmul.f32 %v200_v24, %v200_v24 }
  0x84   :  { %51 = vadd.xlane.f32.xlu1 %v44_v25  ;;  %47 = vadd.xlane.f32.xlu2 %v42_v26 }
  0xef   :  { %v46_v27 = vpop.xlane.xlu2 %45  ;;  %v50_v28 = vpop.xlane.xlu0 %49 }
  0xf0   :  { %v53_v29 = vmul.f32 %v46_v27, %v32_v10  ;;  %v55_v30 = vmul.f32 %v50_v28, %v32_v10 }
  0xf2   :  { %v57_v31 = vadd.f32 1e-12, %v53_v29  ;;  %v59_v32 = vadd.f32 1e-12, %v55_v30 }
  0xf4   :  { %149 = vrsqrt.f32 %v57_v31  ;;  %vm87_vm3 = vweird.f32 %v59_v32  ;;  %vm67_vm4 = vweird.f32 %v57_v31 }
  0xf5   :  { %151 = vrsqrt.f32 %v59_v32 }
  0xf7   :  { %v52_v33 = vpop.xlane.xlu1 %51  ;;  %v48_v34 = vpop.xlane.xlu2 %47 }
  0xf8   :  { %v56_v35 = vmul.f32 %v52_v33, %v32_v10  ;;  %v54_v36 = vmul.f32 %v48_v34, %v32_v10 }
  0xfa   :  { %v150_v37 = vpop.eup %149  ;;  %v60_v38 = vadd.f32 1e-12, %v56_v35  ;;  %v58_v39 = vadd.f32 1e-12, %v54_v36 }
  0xfb   :  { %v152_v40 = vpop.eup %151  ;;  %v62_v41 = vmul.f32 %v150_v37, %v57_v31  ;;  %vm68_vm2 = vweird.f32 %v150_v37 }
  0xfc   :  { %v82_v42 = vmul.f32 %v152_v40, %v59_v32  ;;  %153 = vrsqrt.f32 %v60_v38  ;;  %vm88_vm1 = vweird.f32 %v152_v40  ;;  %vm69_vm6 = vmor %vm67_vm4, %vm68_vm2  ;;  %vm97_vm9 = vweird.f32 %v60_v38 }
  0xfd   :  { %v63_v43 = vmul.f32 %v150_v37, %v62_v41  ;;  %155 = vrsqrt.f32 %v58_v39  ;;  %vm89_vm5 = vmor %vm87_vm3, %vm88_vm1  ;;  %vm77_vm11 = vweird.f32 %v58_v39 }
  0xfe   :  { %v83_v44 = vmul.f32 %v152_v40, %v82_v42 }
  0xff   :  { %v64_v45 = vmul.f32 0.5, %v63_v43 }
 0x100   :  { %v84_v46 = vmul.f32 0.5, %v83_v44 }
 0x101   :  { %v65_v47 = vsub.f32 1.5, %v64_v45 }
 0x102   :  { %v154_v48 = vpop.eup %153  ;;  %v85_v49 = vsub.f32 1.5, %v84_v46 }
 0x103   :  { %v156_v50 = vpop.eup %155  ;;  %v92_v51 = vmul.f32 %v154_v48, %v60_v38  ;;  %v66_v52 = vmul.f32 %v150_v37, %v65_v47  ;;  %vm98_vm7 = vweird.f32 %v154_v48 }
 0x104   :  { %v86_v53 = vmul.f32 %v152_v40, %v85_v49  ;;  %v72_v54 = vmul.f32 %v156_v50, %v58_v39  ;;  %vm78_vm8 = vweird.f32 %v156_v50  ;;  %vm99_vm10 = vmor %vm97_vm9, %vm98_vm7 }
 0x105   :  { %v93_v55 = vmul.f32 %v154_v48, %v92_v51  ;;  %v70_v59 = vsel %vm69_vm6, %v150_v37, %v66_v52  ;;  %vm79_vm12 = vmor %vm77_vm11, %vm78_vm8 }
 0x106   :  { %v73_v56 = vmul.f32 %v156_v50, %v72_v54  ;;  %v90_v57 = vsel %vm89_vm5, %v152_v40, %v86_v53  ;;  %v101_v1 = vmul.f32 %v70_v59, %v192_v16 }
 0x107   :  { %v94_v58 = vmul.f32 0.5, %v93_v55  ;;  %v103_v63 = vmul.f32 %v90_v57, %v190_v15 }
 0x108   :  { %v74_v60 = vmul.f32 0.5, %v73_v56  ;;  %v109_v9 = vmul.f32 %v145_v62, %v101_v1 }
 0x109   :  { %v95_v61 = vsub.f32 1.5, %v94_v58  ;;  %v111_v6 = vmul.f32 %v145_v62, %v103_v63 }
 0x10a   :  { %v75_v0 = vsub.f32 1.5, %v74_v60  ;;  %v117_v15 = vadd.f32 %v146_v5, %v109_v9 }
 0x10b   :  { %v96_v2 = vmul.f32 %v154_v48, %v95_v61  ;;  %v119_v13 = vadd.f32 %v146_v5, %v111_v6 }
 0x10c   :  { %v76_v3 = vmul.f32 %v156_v50, %v75_v0 }
 0x10d   :  { %v100_v4 = vsel %vm99_vm10, %v154_v48, %v96_v2 }
 0x10e   :  { %v104_v7 = vmul.f32 %v100_v4, %v198_v23  ;;  %v80_v8 = vsel %vm79_vm12, %v156_v50, %v76_v3 }
 0x10f   :  { %v102_v10 = vmul.f32 %v80_v8, %v200_v24 }
 0x110   :  { %v112_v11 = vmul.f32 %v145_v62, %v104_v7 }
 0x111   :  { %v110_v12 = vmul.f32 %v145_v62, %v102_v10 }
 0x112   :  { %v120_v14 = vadd.f32 %v146_v5, %v112_v11 }
 0x113   :  { %v118_v16 = vadd.f32 %v146_v5, %v110_v12 }
 0x114   :  { %v141_v17 = vpack.c.bf16 %v120_v14, %v119_v13 }
 0x115   :  { %v136_v18 = vpack.c.bf16 %v118_v16, %v117_v15 }
 0x116   :  { %143 = vst [vmem:[%s225_s3 + $0x8] sm:$0xff] %v141_v17  }
 0x117   :  { %137 = vst [vmem:[%s225_s3] sm:$0xff] %v136_v18  }

// kernel: super_bert_forward.12
= control target key start
LH: loop header
LB: loop body
LE: loop exit
PB: predicated region body
PF: predicated region fallthrough
CT: control target
= control target key end

     0   :  { %s610_s1 = inlined_call_operand.vmem [shape: bf16[128,384], index: 1, kind: input, shape index: {}]   ;;  %s611_s0 = inlined_call_operand.vmem [shape: bf16[32,128], index: 0, kind: input, shape index: {}]   ;;  %s612_s2 = inlined_call_operand.vmem [shape: f32[1,384], index: 2, kind: input, shape index: {}]   ;;  %s613_s3 = inlined_call_operand.vmem [shape: bf16[32,384], index: 3, kind: output, shape index: {}]  }
   0x1   :  { %v369_v0 = vld [vmem:[%s610_s1 + $0xa8] sm:$0xf]  ;;  %v403_v1 = vld [vmem:[%s610_s1 + $0xb0] sm:$0xf0]  ;;  %v402_v2 = vld [vmem:[%s610_s1 + $0xac] sm:$0xf] }
   0x2   :  { %v370_v3 = vor.u32 %v403_v1, %v369_v0  ;;  %v371_v4 = vld [vmem:[%s610_s1 + $0xb4] sm:$0xf0]  ;;  %v377_v5 = vld [vmem:[%s610_s1 + $0xb0] sm:$0xf]  ;;  %v404_v6 = vld [vmem:[%s610_s1 + $0xb8] sm:$0xf0] }
   0x3   :  { %v374_v7 = vor.u32 %v402_v2, %v371_v4  ;;  %v378_v8 = vor.u32 %v404_v6, %v377_v5  ;;  %v357_v9 = vld [vmem:[%s610_s1 + $0x90] sm:$0xf]  ;;  %v400_v10 = vld [vmem:[%s610_s1 + $0x98] sm:$0xf0]  ;;  %v399_v11 = vld [vmem:[%s610_s1 + $0x94] sm:$0xf] }
   0x4   :  { %198 = vmatpush.bf16.msra.mxu0 %v370_v3  ;;  %v358_v12 = vor.u32 %v400_v10, %v357_v9  ;;  %v359_v13 = vld [vmem:[%s610_s1 + $0x9c] sm:$0xf0]  ;;  %v365_v14 = vld [vmem:[%s610_s1 + $0x98] sm:$0xf]  ;;  %v401_v15 = vld [vmem:[%s610_s1 + $0xa0] sm:$0xf0]  ;;  %405 = vmatpush.bf16.msra.mxu3 %v370_v3 }
   0x5   :  { %217 = vmatpush.bf16.msra.mxu1 %v374_v7  ;;  %236 = vmatpush.bf16.msra.mxu2 %v378_v8  ;;  %v362_v16 = vor.u32 %v399_v11, %v359_v13  ;;  %v366_v17 = vor.u32 %v401_v15, %v365_v14  ;;  %v345_v18 = vld [vmem:[%s610_s1 + $0x78] sm:$0xf]  ;;  %v397_v19 = vld [vmem:[%s610_s1 + $0x80] sm:$0xf0]  ;;  %v396_v20 = vld [vmem:[%s610_s1 + $0x7c] sm:$0xf] }
   0x6   :  { %v347_v21 = vld [vmem:[%s610_s1 + $0x84] sm:$0xf0]  ;;  %v353_v22 = vld [vmem:[%s610_s1 + $0x80] sm:$0xf]  ;;  %v398_v23 = vld [vmem:[%s610_s1 + $0x88] sm:$0xf0]  ;;  %v346_v24 = vor.u32 %v397_v19, %v345_v18 }
   0x7   :  { %v350_v25 = vor.u32 %v396_v20, %v347_v21  ;;  %v354_v26 = vor.u32 %v398_v23, %v353_v22  ;;  %v333_v27 = vld [vmem:[%s610_s1 + $0x60] sm:$0xf]  ;;  %v394_v28 = vld [vmem:[%s610_s1 + $0x68] sm:$0xf0]  ;;  %v393_v29 = vld [vmem:[%s610_s1 + $0x64] sm:$0xf] }
   0x8   :  { %199 = vmatpush.bf16.msra.mxu0 %v358_v12  ;;  %406 = vmatpush.bf16.msra.mxu3 %v358_v12  ;;  %v335_v30 = vld [vmem:[%s610_s1 + $0x6c] sm:$0xf0]  ;;  %v341_v31 = vld [vmem:[%s610_s1 + $0x68] sm:$0xf]  ;;  %v395_v32 = vld [vmem:[%s610_s1 + $0x70] sm:$0xf0]  ;;  %v334_v33 = vor.u32 %v394_v28, %v333_v27 }
   0x9   :  { %218 = vmatpush.bf16.msra.mxu1 %v362_v16  ;;  %237 = vmatpush.bf16.msra.mxu2 %v366_v17  ;;  %v338_v34 = vor.u32 %v393_v29, %v335_v30  ;;  %v342_v35 = vor.u32 %v395_v32, %v341_v31  ;;  %v321_v36 = vld [vmem:[%s610_s1 + $0x48] sm:$0xf]  ;;  %v391_v37 = vld [vmem:[%s610_s1 + $0x50] sm:$0xf0]  ;;  %v390_v38 = vld [vmem:[%s610_s1 + $0x4c] sm:$0xf] }
   0xa   :  { %v323_v39 = vld [vmem:[%s610_s1 + $0x54] sm:$0xf0]  ;;  %v329_v40 = vld [vmem:[%s610_s1 + $0x50] sm:$0xf]  ;;  %v392_v41 = vld [vmem:[%s610_s1 + $0x58] sm:$0xf0]  ;;  %v322_v42 = vor.u32 %v391_v37, %v321_v36 }
   0xb   :  { %v326_v43 = vor.u32 %v390_v38, %v323_v39  ;;  %v330_v44 = vor.u32 %v392_v41, %v329_v40  ;;  %v309_v45 = vld [vmem:[%s610_s1 + $0x30] sm:$0xf]  ;;  %v388_v46 = vld [vmem:[%s610_s1 + $0x38] sm:$0xf0]  ;;  %v387_v47 = vld [vmem:[%s610_s1 + $0x34] sm:$0xf] }
   0xc   :  { %200 = vmatpush.bf16.msra.mxu0 %v346_v24  ;;  %407 = vmatpush.bf16.msra.mxu3 %v346_v24  ;;  %v311_v48 = vld [vmem:[%s610_s1 + $0x3c] sm:$0xf0]  ;;  %v317_v49 = vld [vmem:[%s610_s1 + $0x38] sm:$0xf]  ;;  %v389_v50 = vld [vmem:[%s610_s1 + $0x40] sm:$0xf0]  ;;  %v310_v51 = vor.u32 %v388_v46, %v309_v45 }
   0xd   :  { %219 = vmatpush.bf16.msra.mxu1 %v350_v25  ;;  %238 = vmatpush.bf16.msra.mxu2 %v354_v26  ;;  %v314_v52 = vor.u32 %v387_v47, %v311_v48  ;;  %v318_v53 = vor.u32 %v389_v50, %v317_v49  ;;  %v297_v54 = vld [vmem:[%s610_s1 + $0x18] sm:$0xf]  ;;  %v385_v55 = vld [vmem:[%s610_s1 + $0x20] sm:$0xf0]  ;;  %v384_v56 = vld [vmem:[%s610_s1 + $0x1c] sm:$0xf] }
   0xe   :  { %v299_v57 = vld [vmem:[%s610_s1 + $0x24] sm:$0xf0]  ;;  %v305_v58 = vld [vmem:[%s610_s1 + $0x20] sm:$0xf]  ;;  %v386_v59 = vld [vmem:[%s610_s1 + $0x28] sm:$0xf0]  ;;  %v298_v60 = vor.u32 %v385_v55, %v297_v54 }
   0xf   :  { %v302_v61 = vor.u32 %v384_v56, %v299_v57  ;;  %v306_v62 = vor.u32 %v386_v59, %v305_v58  ;;  %v285_v63 = vld [vmem:[%s610_s1] sm:$0xf]  ;;  %v382_v0 = vld [vmem:[%s610_s1 + $0x8] sm:$0xf0]  ;;  %v381_v1 = vld [vmem:[%s610_s1 + $0x4] sm:$0xf] }
  0x10   :  { %201 = vmatpush.bf16.msra.mxu0 %v334_v33  ;;  %408 = vmatpush.bf16.msra.mxu3 %v334_v33  ;;  %v287_v2 = vld [vmem:[%s610_s1 + $0xc] sm:$0xf0]  ;;  %v293_v3 = vld [vmem:[%s610_s1 + $0x8] sm:$0xf]  ;;  %v383_v4 = vld [vmem:[%s610_s1 + $0x10] sm:$0xf0]  ;;  %v286_v5 = vor.u32 %v382_v0, %v285_v63 }
  0x11   :  { %220 = vmatpush.bf16.msra.mxu1 %v338_v34  ;;  %239 = vmatpush.bf16.msra.mxu2 %v342_v35  ;;  %v290_v6 = vor.u32 %v381_v1, %v287_v2  ;;  %v294_v7 = vor.u32 %v383_v4, %v293_v3  ;;  %v379_v8 = vld [vmem:[%s611_s0] sm:$0xff]  ;;  %v380_v9 = vld [vmem:[%s611_s0 + $0x8] sm:$0xff] }
  0x12   :  { %v50_v10 = vld [vmem:[%s612_s2] sm:$0x7] }
  0x13   :  { %v52_v11 = vperm.slane %v50_v10, 0  ;;  %v53_v12 = vperm.slane %v50_v10, 1  ;;  %v54_v18 = vperm.slane %v50_v10, 2 }
  0x14   :  { %202 = vmatpush.bf16.msra.mxu0 %v322_v42  ;;  %409 = vmatpush.bf16.msra.mxu3 %v322_v42 }
  0x15   :  { %221 = vmatpush.bf16.msra.mxu1 %v326_v43  ;;  %240 = vmatpush.bf16.msra.mxu2 %v330_v44 }
  0x18   :  { %203 = vmatpush.bf16.msra.mxu0 %v310_v51  ;;  %410 = vmatpush.bf16.msra.mxu3 %v310_v51 }
  0x19   :  { %222 = vmatpush.bf16.msra.mxu1 %v314_v52  ;;  %241 = vmatpush.bf16.msra.mxu2 %v318_v53 }
  0x1c   :  { %204 = vmatpush.bf16.msra.mxu0 %v298_v60  ;;  %411 = vmatpush.bf16.msra.mxu3 %v298_v60 }
  0x1d   :  { %223 = vmatpush.bf16.msra.mxu1 %v302_v61  ;;  %242 = vmatpush.bf16.msra.mxu2 %v306_v62 }
  0x20   :  { %205 = vmatpush.bf16.msra.mxu0 %v286_v5  ;;  %412 = vmatpush.bf16.msra.mxu3 %v286_v5 }
  0x21   :  { %224 = vmatpush.bf16.msra.mxu1 %v290_v6  ;;  %243 = vmatpush.bf16.msra.mxu2 %v294_v7 }
  0x23   :  { %206 = vmatmul.bf16.vlgmr.msra.gmra.mxu0 %v379_v8  ;;  %211 = vmatmul.bf16.vlgmr.msra.gmra.mxu3 %v380_v9 }
  0x24   :  { %225 = vmatmul.bf16.vlgmr.msra.gmra.mxu1 %v379_v8  ;;  %244 = vmatmul.bf16.vlgmr.msra.gmra.mxu2 %v379_v8 }
  0x34   :  { %230 = vmatmul.bf16.gmra.mxu1 %v380_v9  ;;  %249 = vmatmul.bf16.gmra.mxu2 %v380_v9 }
  0xa0   :  { %v207_v13 = vpop.f32.mrf.mxu0 }
  0xa1   :  { %v208_v14 = vadd.f32 %v207_v13, %v52_v11  ;;  %v226_v15 = vpop.f32.mrf.mxu1 }
  0xa2   :  { %v227_v16 = vadd.f32 %v226_v15, %v53_v12 }
  0xa4   :  { %v255_v17 = vpack.c.bf16 %v227_v16, %v208_v14 }
  0xa6   :  { %263 = vst [vmem:[%s613_s3] sm:$0xff] %v255_v17  ;;  %v212_v27 = vpop.f32.mrf.mxu3 }
  0xa7   :  { %v245_v19 = vpop.f32.mrf.mxu2  ;;  %v213_v29 = vadd.f32 %v212_v27, %v52_v11 }
  0xa8   :  { %v246_v20 = vadd.f32 %v245_v19, %v54_v18  ;;  %v209_v21 = vpop.f32.mrf.mxu0 }
  0xa9   :  { %v210_v22 = vadd.f32 %v209_v21, %v52_v11  ;;  %v228_v23 = vpop.f32.mrf.mxu1 }
  0xaa   :  { %v256_v24 = vpack.c.bf16 %v246_v20, %v246_v20  ;;  %v229_v25 = vadd.f32 %v228_v23, %v53_v12 }
  0xac   :  { %264 = vst [vmem:[%s613_s3 + $0x8] sm:$0xf] %v256_v24  ;;  %v257_v26 = vpack.c.bf16 %v229_v25, %v210_v22 }
  0xae   :  { %265 = vst [vmem:[%s613_s3 + $0xc] sm:$0xff] %v257_v26  ;;  %v214_v35 = vpop.f32.mrf.mxu3 }
  0xaf   :  { %v247_v28 = vpop.f32.mrf.mxu2  ;;  %v215_v39 = vadd.f32 %v214_v35, %v52_v11 }
  0xb0   :  { %v248_v30 = vadd.f32 %v247_v28, %v54_v18 }
  0xb1   :  { %v231_v31 = vpop.f32.mrf.mxu1 }
  0xb2   :  { %v258_v32 = vpack.c.bf16 %v248_v30, %v248_v30  ;;  %v232_v33 = vadd.f32 %v231_v31, %v53_v12 }
  0xb4   :  { %266 = vst [vmem:[%s613_s3 + $0x14] sm:$0xf] %v258_v32  ;;  %v259_v34 = vpack.c.bf16 %v232_v33, %v213_v29 }
  0xb6   :  { %267 = vst [vmem:[%s613_s3 + $0x18] sm:$0xff] %v259_v34 }
  0xb7   :  { %v250_v36 = vpop.f32.mrf.mxu2 }
  0xb8   :  { %v251_v37 = vadd.f32 %v250_v36, %v54_v18 }
  0xb9   :  { %v233_v38 = vpop.f32.mrf.mxu1 }
  0xba   :  { %v260_v40 = vpack.c.bf16 %v251_v37, %v251_v37  ;;  %v234_v41 = vadd.f32 %v233_v38, %v53_v12 }
  0xbc   :  { %268 = vst [vmem:[%s613_s3 + $0x20] sm:$0xf] %v260_v40  ;;  %v261_v42 = vpack.c.bf16 %v234_v41, %v215_v39 }
  0xbe   :  { %269 = vst [vmem:[%s613_s3 + $0x24] sm:$0xff] %v261_v42 }
  0xbf   :  { %v252_v43 = vpop.f32.mrf.mxu2 }
  0xc0   :  { %v253_v44 = vadd.f32 %v252_v43, %v54_v18 }
  0xc2   :  { %v262_v45 = vpack.c.bf16 %v253_v44, %v253_v44 }
  0xc4   :  { %270 = vst [vmem:[%s613_s3 + $0x2c] sm:$0xf] %v262_v45 }

// kernel: super_bert_forward.13
= control target key start
LH: loop header
LB: loop body
LE: loop exit
PB: predicated region body
PF: predicated region fallthrough
CT: control target
= control target key end

     0   :  { %s1426_s15 = smov 0   ;;  %s1428_s16 = smov 0   ;;  %s1734_s0 = inlined_call_operand.vmem [shape: bf16[2,16,384], index: 0, kind: input, shape index: {}, may-alias: {0,1,2}]   ;;  %s1735_s1 = inlined_call_operand.vmem [shape: bf16[2,16,384], index: 1, kind: input, shape index: {}, may-alias: {0,1,2}]   ;;  %s1736_s2 = inlined_call_operand.vmem [shape: bf16[2,16,384], index: 2, kind: input, shape index: {}, may-alias: {0,1,2}]   ;;  %s1737_s3 = inlined_call_operand.vmem [shape: f32[2,1,1,16], index: 3, kind: input, shape index: {}]   ;;  %s1738_s4 = inlined_call_operand.vmem [shape: bf16[2,16,128], index: 4, kind: output, shape index: {}]  }
   0x1   :  { %s1430_s17 = smov 0   ;;  %s1432_s18 = smov 0  }
   0x2   :  { %s1434_s19 = smov 0  }
   0x3 LB: > { %s33_s20 = sadd.s32 1, %s1389_s18  ;;  %p49_p1 = scmp.ne.s32.totalorder %s1381_s16, %s1377_s15  ;;  %s1393_s19 = sphi %s1434_s19, %s14_s19   ;;  %s1389_s18 = sphi %s1432_s18, %s1743_s18   ;;  %s1385_s17 = sphi %s1430_s17, %s1742_s17   ;;  %s1381_s16 = sphi %s1428_s16, %s1741_s16   ;;  %s1377_s15 = sphi %s1426_s15, %s1740_s15  }
   0x4   : > { %p35_p0 = scmp.ge.s32.totalorder %s33_s20, 2  ;;  %p50_p2 = scmp.eq.s32.totalorder %s1393_s19, 0 }
   0x5   : > { %s42_s23 = sadd.s32 1, %s1381_s16  ;;  %p1208_p5 = scmp.ge.s32.totalorder %s1393_s19, 2 }
   0x6   : > { %s1745_s20 = smov (%p35_p0, %s33_s20), 0  ;;  %p1457_p3 = por %p50_p2, %p49_p1 }
   0x7   : > { %s37_s22 = ssub.s32 %s1389_s18, %s1745_s20  ;;  %187 = sbr.rel (%p1208_p5) target bundleno = 33 (0x21), region = 16 }
   0x8   : > { %p40_p4 = scmp.eq.s32.totalorder %s37_s22, 0 }
   0xa   : > { %s1465_s24 = scalar_select %p40_p4, %s1381_s16, %s42_s23  }
   0xc   : > { %190 = sbr.rel (!%p1457_p3) target bundleno = 19 (0x13), region = 20  ;;  %s192_s25 = sand.u32 (%p1457_p3), 1, %s1381_s16  }
   0xd   : > { %s1256_s26 = smul.u32 (%p1457_p3), 24, %s1389_s18  ;;  %s1209_s27 = sshll.u32 (%p1457_p3), %s192_s25, 3 }
   0xe   : > { %s194_s5 = scalar_lea.vmem (%p1457_p3), [#allocation5], %s1209_s27 }
   0xf   : > { %s200_s30 = scalar_lea.vmem (%p1457_p3), %s1734_s0, %s1256_s26 }
  0x10   : > { %v217_v0 = vld [vmem:[%s200_s30] sm:$0xf] (%p1457_p3)  ;;  %v219_v1 = vld [vmem:[%s200_s30 + $0xc] sm:$0xf] (%p1457_p3) }
  0x11   : > { %218 = vst [vmem:[%s194_s5] sm:$0xf] %v217_v0 }
  0x12   : > { %220 = vst [vmem:[%s194_s5 + $0x4] sm:$0xf] %v219_v1 }
  0x13 PF: > { %248 = sbr.rel (!%p1457_p3) target bundleno = 26 (0x1a), region = 61  ;;  %s250_s6 = sand.u32 (%p1457_p3), 1, %s1381_s16  }
  0x14   : > { %s1212_s7 = smul.u32 (%p1457_p3), 24, %s1389_s18  ;;  %s1211_s8 = sshll.u32 (%p1457_p3), %s250_s6, 3 }
  0x15   : > { %s252_s12 = scalar_lea.vmem (%p1457_p3), [#allocation6], %s1211_s8 }
  0x16   : > { %s1099_s11 = scalar_lea.vmem (%p1457_p3), %s1735_s1, %s1212_s7 }
  0x17   : > { %v1213_v2 = vld [vmem:[%s1099_s11 + $0x4] sm:$0xf] (%p1457_p3)  ;;  %v1214_v3 = vld [vmem:[%s1099_s11 + $0x10] sm:$0xf] (%p1457_p3) }
  0x18   : > { %277 = vst [vmem:[%s252_s12] sm:$0xf] %v1213_v2 }
  0x19   : > { %279 = vst [vmem:[%s252_s12 + $0x4] sm:$0xf] %v1214_v3 }
  0x1a PF: > { %307 = sbr.rel (!%p1457_p3) target bundleno = 33 (0x21), region = 102  ;;  %s309_s13 = sand.u32 (%p1457_p3), 1, %s1381_s16  }
  0x1b   : > { %s1216_s14 = smul.u32 (%p1457_p3), 24, %s1389_s18  ;;  %s1215_s22 = sshll.u32 (%p1457_p3), %s309_s13, 3 }
  0x1c   : > { %s311_s27 = scalar_lea.vmem (%p1457_p3), [#allocation7], %s1215_s22 }
  0x1d   : > { %s1107_s26 = scalar_lea.vmem (%p1457_p3), %s1736_s2, %s1216_s14 }
  0x1e   : > { %v1217_v4 = vld [vmem:[%s1107_s26 + $0x8] sm:$0xf] (%p1457_p3)  ;;  %v1218_v5 = vld [vmem:[%s1107_s26 + $0x14] sm:$0xf] (%p1457_p3) }
  0x1f   : > { %336 = vst [vmem:[%s311_s27] sm:$0xf] %v1217_v4 }
  0x20   : > { %338 = vst [vmem:[%s311_s27 + $0x4] sm:$0xf] %v1218_v5 }
  0x21 PF: > { %p1219_p6 = scmp.ge.s32.totalorder %s1393_s19, 1  ;;  %p374_p7 = scmp.lt.s32.totalorder %s1393_s19, 3 }
  0x23   : > { %p375_p8 = pnand %p1219_p6, %p374_p7 }
  0x24   : > { %s381_s21 = sand.u32 (!%p375_p8), 1, %s1377_s15   ;;  %p441_p9 = scmp.lt.s32.totalorder (!%p375_p8), %s1385_s17, 1 }
  0x25   : > { %378 = sbr.rel (%p375_p8) target bundleno = 1357 (0x54d), region = 147  ;;  %s1492_s28 = sshll.u32 (!%p375_p8), %s381_s21, 3 }
  0x26   : > { %s390_s29 = scalar_lea.vmem (!%p375_p8), [#allocation6], %s1492_s28  ;;  %s383_s30 = scalar_lea.vmem (!%p375_p8), [#allocation5], %s1492_s28 }
  0x27   : > { %s1395_s7 = smov (!%p375_p8), 96   ;;  %s1397_s8 = smov (!%p375_p8), 64  }
  0x28   : > { %s1400_s9 = smov (!%p375_p8), 32   ;;  %s397_s10 = scalar_lea.vmem (!%p375_p8), [#allocation7], %s1492_s28 }
  0x2a   : > { %vm498_vm0 = vcmask 261120   ;;  %v1249_v6 = vld [vmem:[%s390_s29] sm:$0xff]  ;;  %s1747_s17 = smov (!%p441_p9, %s1385_s17), 1  ;;  %v1248_v8 = vld [vmem:[%s383_s30] sm:$0xff]  ;;  %vm462_vm1 = vcmask 7168   ;;  %vm528_vm2 = vcmask 130048  }
  0x2b   : > { %v503_v7 = vsel %vm498_vm0, %v1249_v6, 0  ;;  %s446_s15 = scalar_lea.vmem %s1737_s3, %s1747_s17  ;;  %612 = vrot.lane.b32.xlu1 %v1249_v6, %s1395_s7  ;;  %v1396_v9 = vmov -1e+30   ;;  %v1398_v19 = vmov 0   ;;  %v1399_v20 = vmov 0.0   ;;  %v1547_v31 = vld [vmem:[%s397_s10] sm:$0xff] }
  0x2c   : > { %512 = vmatpush.bf16.xpose.msra.mxu0 %v503_v7  ;;  %463 = vst.msk [vmem:[#allocation2] sm:$0xff] %vm462_vm1, %v1396_v9  ;;  %v1515_v10 = vld [vmem:[%s446_s15] ss:$0 sm:$0xff]  ;;  %1303 = vset.pattern.permute.xlu1 %v1398_v19  ;;  %vm963_vm3 = vcmask 523264   ;;  %vm966_vm4 = vcmask 785408   ;;  %s1247_s11 = sshll.u32 %s1747_s17, 3 }
  0x2d   : > { %464 = vst.msk [vmem:[#allocation2 + $0x8] sm:$0xff] %vm462_vm1, %v1396_v9  ;;  %1304 = vset.pattern.permute.xlu2 %v1398_v19  ;;  %1305 = vset.pattern.permute.xlu0 %v1398_v19  ;;  %s455_s14 = scalar_lea.vmem %s1738_s4, %s1247_s11 }
  0x2e   : > { %465 = vst.msk [vmem:[#allocation2 + $0x10] sm:$0xff] %vm462_vm1, %v1396_v9  ;;  %593 = vmatpush.bf16.msra.mxu1 %v1547_v31 }
  0x2f   : > { %466 = vst.msk [vmem:[#allocation2 + $0x18] sm:$0xff] %vm462_vm1, %v1396_v9 }
  0x30   : > { %467 = vst.msk [vmem:[#allocation2 + $0x20] sm:$0xff] %vm462_vm1, %v1396_v9 }
  0x31   : > { %468 = vst.msk [vmem:[#allocation2 + $0x28] sm:$0xff] %vm462_vm1, %v1396_v9 }
  0x32   : > { %469 = vst.msk [vmem:[#allocation2 + $0x30] sm:$0xff] %vm462_vm1, %v1396_v9 }
  0x33   : > { %1233 = vmatmul.msk.bf16.vlgmr.msra.gmra.mxu0 %vm498_vm0, %v1248_v8  ;;  %470 = vst.msk [vmem:[#allocation2 + $0x38] sm:$0xff] %vm462_vm1, %v1396_v9  ;;  %v526_v21 = vld [vmem:[#allocation2] sm:$0xff] }
  0x34   : > { %471 = vst.msk [vmem:[#allocation3] sm:$0xff] %vm462_vm1, %v1399_v20  ;;  %v1531_v25 = vld [vmem:[#allocation2 + $0x8] sm:$0xff] }
  0x35   : > { %472 = vst.msk [vmem:[#allocation3 + $0x8] sm:$0xff] %vm462_vm1, %v1399_v20 }
  0x36   : > { %473 = vst.msk [vmem:[#allocation3 + $0x10] sm:$0xff] %vm462_vm1, %v1399_v20 }
  0x37   : > { %474 = vst.msk [vmem:[#allocation3 + $0x18] sm:$0xff] %vm462_vm1, %v1399_v20 }
  0x38   : > { %475 = vst.msk [vmem:[#allocation3 + $0x20] sm:$0xff] %vm462_vm1, %v1399_v20 }
  0x39   : > { %476 = vst.msk [vmem:[#allocation3 + $0x28] sm:$0xff] %vm462_vm1, %v1399_v20 }
  0x3a   : > { %477 = vst.msk [vmem:[#allocation3 + $0x30] sm:$0xff] %vm462_vm1, %v1399_v20 }
  0x3b   : > { %478 = vst.msk [vmem:[#allocation3 + $0x38] sm:$0xff] %vm462_vm1, %v1399_v20  ;;  %v640_v20 = vld [vmem:[#allocation2 + $0x18] sm:$0xff] }
  0x9d   : > { %v613_v29 = vpop.permute.xlu1 %612 }
  0x9e   : > { %v618_v30 = vsel %vm498_vm0, %v613_v29, 0 }
  0x9f   : > { %627 = vmatpush.bf16.xpose.msra.mxu2 %v618_v30 }
  0xb0   : > { %v514_v11 = vpop.f32.mrf.mxu0 }
  0xb1   : > { %v519_v12 = vmul.f32 0.17677669, %v514_v11 }
  0xb3   : > { %v524_v13 = vadd.f32 %v1515_v10, %v519_v12  ;;  %v639_v12 = vld [vmem:[#allocation2 + $0x10] sm:$0xff] }
  0xb5   : > { %v529_v14 = vsel %vm528_vm2, %v524_v13, -inf }
  0xb6   : > { %530 = vmax.xlane.f32.xlu0 %v529_v14 }
  0xb8   : > { %v516_v15 = vpop.f32.mrf.mxu0 }
  0xb9   : > { %v520_v16 = vmul.f32 0.17677669, %v516_v15 }
  0xbb   : > { %v525_v17 = vadd.f32 %v1515_v10, %v520_v16  ;;  %v1595_v16 = vld [vmem:[#allocation2 + $0x30] sm:$0xff] }
  0xbd   : > { %v532_v18 = vsel %vm528_vm2, %v525_v17, -inf }
  0xbe   : > { %533 = vmax.xlane.f32.xlu0 %v532_v18 }
  0xd2   : > { %721 = vrot.lane.b32.xlu0 %v1249_v6, %s1397_s8 }
 0x129   : > { %v531_v22 = vpop.xlane.xlu0 %530 }
 0x12a   : > { %v535_v23 = vmax.f32 %v526_v21, %v531_v22 }
 0x12c   : > { %v537_v24 = vsub.f32 %v526_v21, %v535_v23  ;;  %574 = vst.msk [vmem:[#allocation2] sm:$0xff] %vm462_vm1, %v535_v23  ;;  %545 = vperm.xlu1 %1303, %v535_v23   ;;  %v858_v21 = vld [vmem:[#allocation2 + $0x38] sm:$0xff] }
 0x12e   : > { %v539_v52 = vmul.f32 1.442695, %v537_v24 }
 0x131   : > { %v534_v26 = vpop.xlane.xlu0 %533 }
 0x132   : > { %v1534_v27 = vmax.f32 %v1531_v25, %v534_v26 }
 0x134   : > { %v538_v28 = vsub.f32 %v1531_v25, %v1534_v27  ;;  %575 = vst.msk [vmem:[#allocation2 + $0x8] sm:$0xff] %vm462_vm1, %v1534_v27  ;;  %830 = vrot.lane.b32.xlu1 %v1249_v6, %s1400_s9  ;;  %550 = vperm.xlu2 %1304, %v1534_v27  }
 0x136   : > { %v541_v2 = vmul.f32 1.442695, %v538_v28 }
 0x13c   : > { %828 = vrot.lane.b32.xlu1 %v1248_v8, %s1400_s9  ;;  %610 = vrot.lane.b32.xlu2 %v1248_v8, %s1395_s7 }
 0x144   : > { %719 = vrot.lane.b32.xlu2 %v1248_v8, %s1397_s8  ;;  %v722_v33 = vpop.permute.xlu0 %721 }
 0x145   : > { %v727_v34 = vsel %vm498_vm0, %v722_v33, 0 }
 0x146   : > { %736 = vmatpush.bf16.xpose.msrb.mxu1 %v727_v34  ;;  %v559_v34 = vld [vmem:[#allocation3] sm:$0xff] }
 0x18e   : > { %v551_v32 = vpop.permute.xlu2 %550 }
 0x18f   : > { %v554_v36 = vsub.f32 %v525_v17, %v551_v32 }
 0x191   : > { %v557_v37 = vmul.f32 1.442695, %v554_v36 }
 0x193   : > { %1307 = vpow2.f32 %v557_v37 }
 0x196   : > { %v611_v35 = vpop.permute.xlu2 %610 }
 0x197   : > { %1239 = vmatmul.msk.bf16.vlgmr.msra.gmra.mxu2 %vm498_vm0, %v611_v35 }
 0x199   : > { %v1553_v43 = vpop.eup %1307 }
 0x19a   : > { %v566_v29 = vsel %vm528_vm2, %v1553_v43, 0.0 }
 0x19e   : > { %v546_v38 = vpop.permute.xlu1 %545  ;;  %v720_v47 = vpop.permute.xlu2 %719 }
 0x19f   : > { %v553_v39 = vsub.f32 %v524_v13, %v546_v38  ;;  %v1619_v38 = vld [vmem:[#allocation2 + $0x20] sm:$0xff] }
 0x1a1   : > { %v555_v40 = vmul.f32 1.442695, %v553_v39 }
 0x1a3   : > { %1309 = vpow2.f32 %v555_v40 }
 0x1a4   : > { %1311 = vpow2.f32 %v539_v52 }
 0x1a5   : > { %1313 = vpow2.f32 %v541_v2 }
 0x1a6   : > { %v831_v41 = vpop.permute.xlu1 %830 }
 0x1a7   : > { %v836_v42 = vsel %vm498_vm0, %v831_v41, 0 }
 0x1a8   : > { %845 = vmatpush.bf16.xpose.msrb.mxu0 %v836_v42 }
 0x1a9   : > { %v1310_v44 = vpop.eup %1309 }
 0x1aa   : > { %v576_v45 = vpack.c.bf16 %v1553_v43, %v1310_v44  ;;  %v1312_v59 = vpop.eup %1311  ;;  %v563_v8 = vsel %vm528_vm2, %v1310_v44, 0.0 }
 0x1ab   : > { %v1579_v3 = vpop.eup %1313  ;;  %v561_v35 = vmul.f32 %v1312_v59, %v559_v34 }
 0x1ac   : > { %1238 = vmatmul.msk.bf16.vlgmr.msra.gmra.mxu1 %vm528_vm2, %v576_v45 }
 0x1ae   : > { %v829_v46 = vpop.permute.xlu1 %828 }
 0x1af   : > { %1243 = vmatmul.msk.bf16.vlgmr.msrb.gmra.mxu0 %vm498_vm0, %v829_v46 }
 0x1bc   : > { %1241 = vmatmul.msk.bf16.vlgmr.msrb.gmra.mxu1 %vm498_vm0, %v720_v47 }
 0x21a   : > { %v629_v48 = vpop.f32.mrf.mxu2 }
 0x21b   : > { %v634_v49 = vmul.f32 0.17677669, %v629_v48 }
 0x21d   : > { %v1560_v50 = vadd.f32 %v1515_v10, %v634_v49 }
 0x21f   : > { %v641_v51 = vsel %vm528_vm2, %v1560_v50, -inf }
 0x220   : > { %642 = vmax.xlane.f32.xlu0 %v641_v51 }
 0x222   : > { %v631_v55 = vpop.f32.mrf.mxu2 }
 0x223   : > { %v635_v58 = vmul.f32 0.17677669, %v631_v55 }
 0x225   : > { %v1570_v62 = vadd.f32 %v1515_v10, %v635_v58 }
 0x227   : > { %v644_v0 = vsel %vm528_vm2, %v1570_v62, -inf }
 0x229   : > { %v1582_v4 = vpop.f32.mrf.mxu1 }
 0x22c   : > { %v847_v53 = vpop.f32.mrf.mxu0 }
 0x22d   : > { %v852_v54 = vmul.f32 0.17677669, %v847_v53 }
 0x22f   : > { %v1565_v56 = vadd.f32 %v1515_v10, %v852_v54 }
 0x231   : > { %v859_v57 = vsel %vm528_vm2, %v1565_v56, -inf  ;;  %v1584_v5 = vpop.f32.mrf.mxu1 }
 0x232   : > { %860 = vmax.xlane.f32.xlu2 %v859_v57 }
 0x234   : > { %602 = vperm.xlu0 %1305, %v1312_v59   ;;  %v849_v60 = vpop.f32.mrf.mxu0 }
 0x235   : > { %v853_v61 = vmul.f32 0.17677669, %v849_v60 }
 0x237   : > { %v1573_v63 = vadd.f32 %v1515_v10, %v853_v61 }
 0x239   : > { %v862_v1 = vsel %vm528_vm2, %v1573_v63, -inf  ;;  %v738_v6 = vpop.f32.mrf.mxu1 }
 0x23a   : > { %645 = vmax.xlane.f32.xlu2 %v644_v0  ;;  %863 = vmax.xlane.f32.xlu1 %v862_v1  ;;  %v743_v7 = vmul.f32 0.17677669, %v738_v6  ;;  %v560_v0 = vld [vmem:[#allocation3 + $0x8] sm:$0xff] }
 0x23c   : > { %v1588_v9 = vadd.f32 %v1515_v10, %v743_v7 }
 0x23e   : > { %v750_v11 = vsel %vm528_vm2, %v1588_v9, -inf }
 0x241   : > { %v740_v27 = vpop.f32.mrf.mxu1 }
 0x242   : > { %v744_v28 = vmul.f32 0.17677669, %v740_v27 }
 0x244   : > { %v1612_v30 = vadd.f32 %v1515_v10, %v744_v28 }
 0x246   : > { %v753_v32 = vsel %vm528_vm2, %v1612_v30, -inf }
 0x252   : > { %607 = vperm.xlu2 %1304, %v1579_v3  }
 0x27b   : > { %564 = vadd.xlane.f32.xlu2 %v563_v8 }
 0x283   : > { %751 = vmax.xlane.f32.xlu2 %v750_v11  ;;  %v1645_v11 = vld [vmem:[#allocation2 + $0x28] sm:$0xff] }
 0x293   : > { %v643_v13 = vpop.xlane.xlu0 %642 }
 0x294   : > { %v647_v14 = vmax.f32 %v639_v12, %v643_v13 }
 0x296   : > { %v649_v15 = vsub.f32 %v639_v12, %v647_v14  ;;  %686 = vst.msk [vmem:[#allocation2 + $0x10] sm:$0xff] %vm462_vm1, %v647_v14  ;;  %657 = vperm.xlu1 %1303, %v647_v14  }
 0x298   : > { %v651_v52 = vmul.f32 1.442695, %v649_v15 }
 0x29b   : > { %689 = vrot.lane.b32.xlu2 %v1547_v31, %s1395_s7 }
 0x2a5   : > { %v861_v17 = vpop.xlane.xlu2 %860 }
 0x2a6   : > { %v1598_v18 = vmax.f32 %v1595_v16, %v861_v17  ;;  %v1632_v49 = vpop.permute.xlu0 %602 }
 0x2a8   : > { %v867_v19 = vsub.f32 %v1595_v16, %v1598_v18  ;;  %904 = vst.msk [vmem:[#allocation2 + $0x30] sm:$0xff] %vm462_vm1, %v1598_v18  ;;  %875 = vperm.xlu2 %1304, %v1598_v18  }
 0x2aa   : > { %v869_v7 = vmul.f32 1.442695, %v867_v19 }
 0x2ad   : > { %v646_v22 = vpop.xlane.xlu2 %645  ;;  %v864_v23 = vpop.xlane.xlu1 %863 }
 0x2ae   : > { %v648_v24 = vmax.f32 %v640_v20, %v646_v22  ;;  %v866_v25 = vmax.f32 %v858_v21, %v864_v23 }
 0x2b0   : > { %v650_v26 = vsub.f32 %v640_v20, %v648_v24  ;;  %687 = vst.msk [vmem:[#allocation2 + $0x18] sm:$0xff] %vm462_vm1, %v648_v24  ;;  %662 = vperm.xlu0 %1305, %v648_v24   ;;  %907 = vrot.lane.b32.xlu2 %v1547_v31, %s1400_s9 }
 0x2b1   : > { %905 = vst.msk [vmem:[#allocation2 + $0x38] sm:$0xff] %vm462_vm1, %v866_v25 }
 0x2b2   : > { %v653_v57 = vmul.f32 1.442695, %v650_v26 }
 0x2b5   : > { %v1616_v33 = vpop.permute.xlu2 %607 }
 0x2c0   : > { %567 = vadd.xlane.f32.xlu1 %v566_v29 }
 0x2c8   : > { %754 = vmax.xlane.f32.xlu1 %v753_v32  ;;  %v672_v32 = vld [vmem:[#allocation3 + $0x10] sm:$0xff] }
 0x2ee   : > { %v565_v36 = vpop.xlane.xlu2 %564 }
 0x2ef   : > { %v569_v37 = vadd.f32 %v565_v36, %v561_v35 }
 0x2f1   : > { %572 = vst.msk [vmem:[#allocation3] sm:$0xff] %vm462_vm1, %v569_v37 }
 0x2f6   : > { %v752_v39 = vpop.xlane.xlu2 %751 }
 0x2f7   : > { %v1622_v40 = vmax.f32 %v1619_v38, %v752_v39 }
 0x2f9   : > { %v758_v10 = vsub.f32 %v1619_v38, %v1622_v40  ;;  %795 = vst.msk [vmem:[#allocation2 + $0x20] sm:$0xff] %vm462_vm1, %v1622_v40  ;;  %766 = vperm.xlu0 %1305, %v1622_v40  }
 0x2fb   : > { %v760_v28 = vmul.f32 1.442695, %v758_v10 }
 0x2fe   : > { %v690_v41 = vpop.permute.xlu2 %689 }
 0x2ff   : > { %702 = vmatpush.bf16.msra.mxu3 %v690_v41 }
 0x301   : > { %880 = vperm.xlu0 %1305, %v866_v25  }
 0x306   : > { %v876_v42 = vpop.permute.xlu2 %875 }
 0x307   : > { %v883_v43 = vsub.f32 %v1565_v56, %v876_v42 }
 0x308   : > { %v658_v47 = vpop.permute.xlu1 %657 }
 0x309   : > { %v885_v44 = vmul.f32 1.442695, %v883_v43  ;;  %v665_v48 = vsub.f32 %v1560_v50, %v658_v47  ;;  %v868_v50 = vsub.f32 %v858_v21, %v866_v25  ;;  %v890_v25 = vld [vmem:[#allocation3 + $0x30] sm:$0xff] }
 0x30b   : > { %1315 = vpow2.f32 %v885_v44  ;;  %v667_v51 = vmul.f32 1.442695, %v665_v48  ;;  %v871_v1 = vmul.f32 1.442695, %v868_v50 }
 0x30d   : > { %1317 = vpow2.f32 %v667_v51 }
 0x30e   : > { %1319 = vpow2.f32 %v651_v52  ;;  %v908_v16 = vpop.permute.xlu2 %907  ;;  %v891_v52 = vld [vmem:[#allocation3 + $0x38] sm:$0xff] }
 0x30f   : > { %920 = vmatpush.bf16.msrb.mxu2 %v908_v16 }
 0x311   : > { %v1316_v45 = vpop.eup %1315 }
 0x312   : > { %v894_v46 = vsel %vm528_vm2, %v1316_v45, 0.0 }
 0x313   : > { %895 = vadd.xlane.f32.xlu2 %v894_v46  ;;  %v1318_v56 = vpop.eup %1317 }
 0x314   : > { %v1320_v58 = vpop.eup %1319  ;;  %v676_v59 = vsel %vm528_vm2, %v1318_v56, 0.0 }
 0x315   : > { %v674_v34 = vmul.f32 %v1320_v58, %v672_v32  ;;  %v782_v32 = vld [vmem:[#allocation3 + $0x28] sm:$0xff] }
 0x322   : > { %v663_v53 = vpop.permute.xlu0 %662 }
 0x323   : > { %v666_v54 = vsub.f32 %v1570_v62, %v663_v53  ;;  %v562_v62 = vmul.f32 %v1579_v3, %v560_v0 }
 0x325   : > { %v669_v55 = vmul.f32 1.442695, %v666_v54 }
 0x327   : > { %1321 = vpow2.f32 %v669_v55 }
 0x328   : > { %1323 = vpow2.f32 %v653_v57 }
 0x329   : > { %1325 = vpow2.f32 %v871_v1 }
 0x32a   : > { %1327 = vpow2.f32 %v869_v7 }
 0x32b   : > { %677 = vadd.xlane.f32.xlu0 %v676_v59  ;;  %711 = vperm.xlu2 %1304, %v1320_v58  }
 0x32d   : > { %v1322_v60 = vpop.eup %1321 }
 0x32e   : > { %v688_v61 = vpack.c.bf16 %v1322_v60, %v1318_v56  ;;  %v1637_v2 = vpop.eup %1323  ;;  %v679_v18 = vsel %vm528_vm2, %v1322_v60, 0.0  ;;  %v986_v56 = vld [vmem:[#allocation3] sm:$0xff] }
 0x32f   : > { %v1647_v12 = vpop.eup %1325 }
 0x330   : > { %1240 = vmatmul.msk.bf16.vlgmr.msra.gmra.mxu3 %vm528_vm2, %v688_v61  ;;  %v1328_v14 = vpop.eup %1327  ;;  %v893_v53 = vmul.f32 %v1647_v12, %v891_v52 }
 0x333   : > { %v568_v6 = vpop.xlane.xlu1 %567  ;;  %716 = vperm.xlu2 %1304, %v1637_v2  }
 0x334   : > { %v570_v8 = vadd.f32 %v568_v6, %v562_v62 }
 0x336   : > { %573 = vst.msk [vmem:[#allocation3 + $0x8] sm:$0xff] %vm462_vm1, %v570_v8 }
 0x33b   : > { %v755_v13 = vpop.xlane.xlu1 %754  ;;  %934 = vperm.xlu2 %1304, %v1647_v12  }
 0x33c   : > { %v1651_v3 = vmax.f32 %v1645_v11, %v755_v13 }
 0x33e   : > { %v759_v15 = vsub.f32 %v1645_v11, %v1651_v3  ;;  %796 = vst.msk [vmem:[#allocation2 + $0x28] sm:$0xff] %vm462_vm1, %v1651_v3  ;;  %771 = vperm.xlu1 %1303, %v1651_v3  }
 0x33f   : > { %929 = vperm.xlu0 %1305, %v1328_v14  }
 0x340   : > { %v762_v59 = vmul.f32 1.442695, %v759_v15 }
 0x346   : > { %798 = vrot.lane.b32.xlu1 %v1547_v31, %s1397_s8  ;;  %v892_v31 = vmul.f32 %v1328_v14, %v890_v25  ;;  %v781_v25 = vld [vmem:[#allocation3 + $0x20] sm:$0xff] }
 0x36b   : > { %v767_v17 = vpop.permute.xlu0 %766 }
 0x36c   : > { %v774_v39 = vsub.f32 %v1588_v9, %v767_v17  ;;  %v673_v9 = vld [vmem:[#allocation3 + $0x18] sm:$0xff] }
 0x36d   : > { %v675_v48 = vmul.f32 %v1637_v2, %v673_v9 }
 0x36e   : > { %v776_v41 = vmul.f32 1.442695, %v774_v39 }
 0x370   : > { %680 = vadd.xlane.f32.xlu1 %v679_v18 }
 0x373   : > { %v881_v19 = vpop.permute.xlu0 %880 }
 0x374   : > { %v884_v20 = vsub.f32 %v1573_v63, %v881_v19  ;;  %v987_v63 = vld [vmem:[#allocation3 + $0x8] sm:$0xff] }
 0x376   : > { %v887_v21 = vmul.f32 1.442695, %v884_v20 }
 0x378   : > { %1329 = vpow2.f32 %v887_v21 }
 0x379   : > { %1331 = vpow2.f32 %v760_v28 }
 0x37a   : > { %1333 = vrcp.f32 %v987_v63 }
 0x37b   : > { %1335 = vpow2.f32 %v776_v41 }
 0x37e   : > { %v1330_v22 = vpop.eup %1329 }
 0x37f   : > { %v897_v23 = vsel %vm528_vm2, %v1330_v22, 0.0  ;;  %v906_v24 = vpack.c.bf16 %v1330_v22, %v1316_v45  ;;  %v1668_v29 = vpop.eup %1331 }
 0x380   : > { %898 = vadd.xlane.f32.xlu1 %v897_v23  ;;  %v1334_v37 = vpop.eup %1333 }
 0x381   : > { %1244 = vmatmul.msk.bf16.vlgmr.msrb.gmra.mxu2 %vm528_vm2, %v906_v24  ;;  %v1336_v44 = vpop.eup %1335 }
 0x386   : > { %v896_v26 = vpop.xlane.xlu2 %895 }
 0x387   : > { %v900_v27 = vadd.f32 %v896_v26, %v892_v31  ;;  %v783_v31 = vmul.f32 %v1668_v29, %v781_v25 }
 0x389   : > { %902 = vst.msk [vmem:[#allocation3 + $0x30] sm:$0xff] %vm462_vm1, %v900_v27 }
 0x38e   : > { %v712_v58 = vpop.permute.xlu2 %711 }
 0x38f   : > { %v969_v50 = vsel %vm498_vm0, %v1632_v49, %v712_v58  ;;  %v785_v49 = vsel %vm528_vm2, %v1336_v44, 0.0 }
 0x396   : > { %v717_v17 = vpop.permute.xlu2 %716 }
 0x397   : > { %v970_v19 = vsel %vm498_vm0, %v1616_v33, %v717_v17 }
 0x399   : > { %820 = vperm.xlu1 %1303, %v1668_v29  }
 0x39e   : > { %v678_v35 = vpop.xlane.xlu0 %677  ;;  %v935_v21 = vpop.permute.xlu2 %934 }
 0x39f   : > { %v682_v36 = vadd.f32 %v678_v35, %v674_v34 }
 0x3a1   : > { %684 = vst.msk [vmem:[#allocation3 + $0x10] sm:$0xff] %vm462_vm1, %v682_v36  ;;  %997 = vperm.xlu1 %1303, %v1334_v37   ;;  %v1028_v37 = vld [vmem:[#allocation3 + $0x30] sm:$0xff] }
 0x3a8   : > { %v1000_v11 = vld [vmem:[#allocation3 + $0x10] sm:$0xff] }
 0x3b0   : > { %v772_v38 = vpop.permute.xlu1 %771 }
 0x3b1   : > { %v775_v40 = vsub.f32 %v1612_v30, %v772_v38  ;;  %v930_v0 = vpop.permute.xlu0 %929 }
 0x3b3   : > { %v778_v10 = vmul.f32 1.442695, %v775_v40  ;;  %v704_v42 = vpop.f32.mrf.mxu3 }
 0x3b4   : > { %939 = vrot.lane.b32.xlu0 %v704_v42, %s1400_s9 }
 0x3b5   : > { %1337 = vpow2.f32 %v778_v10 }
 0x3b6   : > { %1339 = vrcp.f32 %v986_v56 }
 0x3b7   : > { %1341 = vpow2.f32 %v762_v59 }
 0x3b8   : > { %v799_v43 = vpop.permute.xlu1 %798 }
 0x3b9   : > { %811 = vmatpush.bf16.msrb.mxu3 %v799_v43 }
 0x3bb   : > { %v1338_v45 = vpop.eup %1337  ;;  %v706_v46 = vpop.f32.mrf.mxu3 }
 0x3bc   : > { %941 = vrot.lane.b32.xlu0 %v706_v46, %s1400_s9  ;;  %v797_v47 = vpack.c.bf16 %v1338_v45, %v1336_v44  ;;  %v1340_v61 = vpop.eup %1339  ;;  %v788_v12 = vsel %vm528_vm2, %v1338_v45, 0.0 }
 0x3bd   : > { %v1342_v7 = vpop.eup %1341 }
 0x3be   : > { %1242 = vmatmul.msk.bf16.vlgmr.msrb.gmra.mxu3 %vm528_vm2, %v797_v47  ;;  %v784_v34 = vmul.f32 %v1342_v7, %v782_v32 }
 0x3e3   : > { %v681_v30 = vpop.xlane.xlu1 %680 }
 0x3e4   : > { %v683_v51 = vadd.f32 %v681_v30, %v675_v48 }
 0x3e6   : > { %685 = vst.msk [vmem:[#allocation3 + $0x18] sm:$0xff] %vm462_vm1, %v683_v51 }
 0x3ed   : > { %v1001_v6 = vld [vmem:[#allocation3 + $0x18] sm:$0xff] }
 0x3ee   : > { %1343 = vrcp.f32 %v1001_v6 }
 0x3ef   : > { %1345 = vrcp.f32 %v1000_v11 }
 0x3f3   : > { %v899_v54 = vpop.xlane.xlu1 %898 }
 0x3f4   : > { %v901_v55 = vadd.f32 %v899_v54, %v893_v53  ;;  %v1344_v8 = vpop.eup %1343 }
 0x3f5   : > { %v1346_v13 = vpop.eup %1345 }
 0x3f6   : > { %903 = vst.msk [vmem:[#allocation3 + $0x38] sm:$0xff] %vm462_vm1, %v901_v55 }
 0x3fd   : > { %v1029_v38 = vld [vmem:[#allocation3 + $0x38] sm:$0xff] }
 0x404   : > { %v922_v57 = vpop.f32.mrf.mxu2 }
 0x405   : > { %955 = vrot.lane.b32.xlu0 %v922_v57, %s1395_s7 }
 0x40b   : > { %v821_v60 = vpop.permute.xlu1 %820 }
 0x40c   : > { %v971_v1 = vsel %vm963_vm3, %v969_v50, %v821_v60  ;;  %v924_v2 = vpop.f32.mrf.mxu2 }
 0x40d   : > { %v973_v62 = vsel %vm966_vm4, %v971_v1, %v930_v0  ;;  %992 = vperm.xlu0 %1305, %v1340_v61   ;;  %957 = vrot.lane.b32.xlu2 %v924_v2, %s1395_s7 }
 0x40e   : > { %v977_v43 = vmul.f32 0.0, %v973_v62 }
 0x413   : > { %v998_v59 = vpop.permute.xlu1 %997 }
 0x415   : > { %825 = vperm.xlu0 %1305, %v1342_v7  }
 0x41d   : > { %1011 = vperm.xlu0 %1305, %v1344_v8  }
 0x426   : > { %v940_v14 = vpop.permute.xlu0 %939 }
 0x427   : > { %v961_v10 = vsel %vm498_vm0, %v1582_v4, %v940_v14 }
 0x42e   : > { %v942_v15 = vpop.permute.xlu0 %941 }
 0x42f   : > { %v962_v56 = vsel %vm498_vm0, %v1584_v5, %v942_v15 }
 0x436   : > { %786 = vadd.xlane.f32.xlu2 %v785_v49 }
 0x441   : > { %v813_v3 = vpop.f32.mrf.mxu3 }
 0x447   : > { %789 = vadd.xlane.f32.xlu0 %v788_v12 }
 0x449   : > { %v815_v39 = vpop.f32.mrf.mxu3 }
 0x44e   : > { %1006 = vperm.xlu2 %1304, %v1346_v13  }
 0x45b   : > { %947 = vrot.lane.b32.xlu0 %v813_v3, %s1397_s8 }
 0x467   : > { %v958_v24 = vpop.permute.xlu2 %957 }
 0x477   : > { %v956_v16 = vpop.permute.xlu0 %955 }
 0x47f   : > { %v993_v18 = vpop.permute.xlu0 %992 }
 0x487   : > { %v826_v20 = vpop.permute.xlu0 %825 }
 0x488   : > { %v972_v22 = vsel %vm963_vm3, %v970_v19, %v826_v20 }
 0x489   : > { %v974_v23 = vsel %vm966_vm4, %v972_v22, %v935_v21 }
 0x48a   : > { %v978_v50 = vmul.f32 0.0, %v974_v23 }
 0x48f   : > { %v1012_v28 = vpop.permute.xlu0 %1011 }
 0x490   : > { %v1043_v60 = vsel %vm498_vm0, %v998_v59, %v1012_v28 }
 0x4a9   : > { %v787_v26 = vpop.xlane.xlu2 %786 }
 0x4aa   : > { %v791_v27 = vadd.f32 %v787_v26, %v783_v31 }
 0x4ac   : > { %793 = vst.msk [vmem:[#allocation3 + $0x20] sm:$0xff] %vm462_vm1, %v791_v27 }
 0x4b1   : > { %v1007_v9 = vpop.permute.xlu2 %1006 }
 0x4b2   : > { %v1042_v51 = vsel %vm498_vm0, %v993_v18, %v1007_v9 }
 0x4b3   : > { %v1014_v63 = vld [vmem:[#allocation3 + $0x20] sm:$0xff] }
 0x4b4   : > { %1347 = vrcp.f32 %v1014_v63 }
 0x4b5   : > { %1349 = vrcp.f32 %v1028_v37 }
 0x4ba   : > { %v1348_v33 = vpop.eup %1347  ;;  %v790_v35 = vpop.xlane.xlu0 %789 }
 0x4bb   : > { %v792_v36 = vadd.f32 %v790_v35, %v784_v34  ;;  %1020 = vperm.xlu2 %1304, %v1348_v33   ;;  %v1350_v41 = vpop.eup %1349 }
 0x4bd   : > { %794 = vst.msk [vmem:[#allocation3 + $0x28] sm:$0xff] %vm462_vm1, %v792_v36 }
 0x4c3   : > { %949 = vrot.lane.b32.xlu2 %v815_v39, %s1397_s8 }
 0x4c4   : > { %v1015_v29 = vld [vmem:[#allocation3 + $0x28] sm:$0xff] }
 0x4c5   : > { %1351 = vrcp.f32 %v1015_v29 }
 0x4c6   : > { %1353 = vrcp.f32 %v1029_v38 }
 0x4cb   : > { %v1352_v40 = vpop.eup %1351  ;;  %1034 = vperm.xlu2 %1304, %v1350_v41  }
 0x4cc   : > { %1025 = vperm.xlu0 %1305, %v1352_v40   ;;  %v1354_v47 = vpop.eup %1353 }
 0x4cd   : > { %v948_v42 = vpop.permute.xlu0 %947 }
 0x4ce   : > { %v964_v44 = vsel %vm963_vm3, %v961_v10, %v948_v42 }
 0x4cf   : > { %v967_v45 = vsel %vm966_vm4, %v964_v44, %v956_v16 }
 0x4d0   : > { %v979_v46 = vadd.f32 %v977_v43, %v967_v45 }
 0x4d4   : > { %1039 = vperm.xlu0 %1305, %v1354_v47  }
 0x515   : > { %v1021_v48 = vpop.permute.xlu2 %1020 }
 0x516   : > { %v1044_v52 = vsel %vm963_vm3, %v1042_v51, %v1021_v48 }
 0x51d   : > { %v950_v30 = vpop.permute.xlu2 %949 }
 0x51e   : > { %v965_v57 = vsel %vm963_vm3, %v962_v56, %v950_v30 }
 0x51f   : > { %v968_v58 = vsel %vm966_vm4, %v965_v57, %v958_v24 }
 0x520   : > { %v980_v0 = vadd.f32 %v978_v50, %v968_v58 }
 0x525   : > { %v1035_v53 = vpop.permute.xlu2 %1034 }
 0x526   : > { %v1046_v4 = vsel %vm966_vm4, %v1044_v52, %v1035_v53 }
 0x527   : > { %v1050_v54 = vmul.f32 %v1046_v4, %v979_v46 }
 0x53e   : > { %v1026_v55 = vpop.permute.xlu0 %1025 }
 0x53f   : > { %v1045_v61 = vsel %vm963_vm3, %v1043_v60, %v1026_v55 }
 0x546   : > { %v1040_v1 = vpop.permute.xlu0 %1039 }
 0x547   : > { %v1047_v2 = vsel %vm966_vm4, %v1045_v61, %v1040_v1 }
 0x548   : > { %v1051_v62 = vmul.f32 %v1047_v2, %v980_v0 }
 0x54a   : > { %v1254_v5 = vpack.c.bf16 %v1051_v62, %v1050_v54 }
 0x54c   : > { %1255 = vst [vmem:[%s455_s14] sm:$0xff] %v1254_v5  }
 0x54d PF: > { %s14_s19 = sadd.s32 1, %s1393_s19   ;;  %s1740_s15 = smov %s1381_s16 }
 0x54e   : > { %p11_p10 = scmp.ge.s32.totalorder %s14_s19, 4   ;;  %s1741_s16 = smov %s1465_s24 }
 0x54f   : > { %s1742_s17 = smov %s1389_s18  ;;  %s1743_s18 = smov %s1745_s20 }
 0x550   :  { %13 = sbr.rel (!%p11_p10) target bundleno = 3 (0x3), region = 227 }

// kernel: super_bert_forward.15
= control target key start
LH: loop header
LB: loop body
LE: loop exit
PB: predicated region body
PF: predicated region fallthrough
CT: control target
= control target key end

     0   :  { %s1015_s1 = inlined_call_operand.vmem [shape: bf16[128,256], index: 1, kind: input, shape index: {}]   ;;  %s1016_s0 = inlined_call_operand.vmem [shape: bf16[32,128], index: 0, kind: input, shape index: {}]   ;;  %s1017_s2 = inlined_call_operand.vmem [shape: f32[1,256], index: 2, kind: input, shape index: {}]   ;;  %s1018_s3 = inlined_call_operand.vmem [shape: bf16[32,256], index: 3, kind: output, shape index: {}]  }
   0x1   :  { %v600_v0 = vld [vmem:[%s1015_s1 + $0x70] sm:$0xf]  ;;  %v631_v1 = vld [vmem:[%s1015_s1 + $0x74] sm:$0xf0]  ;;  %v630_v2 = vld [vmem:[%s1015_s1 + $0x74] sm:$0xf] }
   0x2   :  { %v601_v3 = vor.u32 %v631_v1, %v600_v0  ;;  %v602_v4 = vld [vmem:[%s1015_s1 + $0x78] sm:$0xf0]  ;;  %v592_v5 = vld [vmem:[%s1015_s1 + $0x60] sm:$0xf]  ;;  %v629_v6 = vld [vmem:[%s1015_s1 + $0x64] sm:$0xf0] }
   0x3   :  { %v605_v7 = vor.u32 %v630_v2, %v602_v4  ;;  %v628_v8 = vld [vmem:[%s1015_s1 + $0x64] sm:$0xf]  ;;  %v594_v9 = vld [vmem:[%s1015_s1 + $0x68] sm:$0xf0]  ;;  %v593_v10 = vor.u32 %v629_v6, %v592_v5  ;;  %v584_v12 = vld [vmem:[%s1015_s1 + $0x50] sm:$0xf] }
   0x4   :  { %132 = vmatpush.bf16.msra.mxu0 %v601_v3  ;;  %632 = vmatpush.bf16.msra.mxu2 %v601_v3  ;;  %v597_v11 = vor.u32 %v628_v8, %v594_v9  ;;  %v627_v13 = vld [vmem:[%s1015_s1 + $0x54] sm:$0xf0]  ;;  %v626_v14 = vld [vmem:[%s1015_s1 + $0x54] sm:$0xf]  ;;  %v586_v15 = vld [vmem:[%s1015_s1 + $0x58] sm:$0xf0] }
   0x5   :  { %151 = vmatpush.bf16.msra.mxu1 %v605_v7  ;;  %640 = vmatpush.bf16.msra.mxu3 %v605_v7  ;;  %v585_v16 = vor.u32 %v627_v13, %v584_v12  ;;  %v589_v17 = vor.u32 %v626_v14, %v586_v15  ;;  %v576_v18 = vld [vmem:[%s1015_s1 + $0x40] sm:$0xf]  ;;  %v625_v19 = vld [vmem:[%s1015_s1 + $0x44] sm:$0xf0]  ;;  %v624_v20 = vld [vmem:[%s1015_s1 + $0x44] sm:$0xf] }
   0x6   :  { %v578_v21 = vld [vmem:[%s1015_s1 + $0x48] sm:$0xf0]  ;;  %v577_v22 = vor.u32 %v625_v19, %v576_v18  ;;  %v568_v24 = vld [vmem:[%s1015_s1 + $0x30] sm:$0xf]  ;;  %v623_v25 = vld [vmem:[%s1015_s1 + $0x34] sm:$0xf0] }
   0x7   :  { %v581_v23 = vor.u32 %v624_v20, %v578_v21  ;;  %v622_v26 = vld [vmem:[%s1015_s1 + $0x34] sm:$0xf]  ;;  %v570_v27 = vld [vmem:[%s1015_s1 + $0x38] sm:$0xf0]  ;;  %v569_v28 = vor.u32 %v623_v25, %v568_v24  ;;  %v560_v30 = vld [vmem:[%s1015_s1 + $0x20] sm:$0xf] }
   0x8   :  { %133 = vmatpush.bf16.msra.mxu0 %v593_v10  ;;  %633 = vmatpush.bf16.msra.mxu2 %v593_v10  ;;  %v573_v29 = vor.u32 %v622_v26, %v570_v27  ;;  %v621_v31 = vld [vmem:[%s1015_s1 + $0x24] sm:$0xf0]  ;;  %v620_v32 = vld [vmem:[%s1015_s1 + $0x24] sm:$0xf]  ;;  %v562_v33 = vld [vmem:[%s1015_s1 + $0x28] sm:$0xf0] }
   0x9   :  { %152 = vmatpush.bf16.msra.mxu1 %v597_v11  ;;  %641 = vmatpush.bf16.msra.mxu3 %v597_v11  ;;  %v561_v34 = vor.u32 %v621_v31, %v560_v30  ;;  %v565_v35 = vor.u32 %v620_v32, %v562_v33  ;;  %v552_v36 = vld [vmem:[%s1015_s1 + $0x10] sm:$0xf]  ;;  %v619_v37 = vld [vmem:[%s1015_s1 + $0x14] sm:$0xf0]  ;;  %v618_v38 = vld [vmem:[%s1015_s1 + $0x14] sm:$0xf] }
   0xa   :  { %v554_v39 = vld [vmem:[%s1015_s1 + $0x18] sm:$0xf0]  ;;  %v553_v40 = vor.u32 %v619_v37, %v552_v36  ;;  %v544_v42 = vld [vmem:[%s1015_s1] sm:$0xf]  ;;  %v617_v43 = vld [vmem:[%s1015_s1 + $0x4] sm:$0xf0] }
   0xb   :  { %v557_v41 = vor.u32 %v618_v38, %v554_v39  ;;  %v616_v44 = vld [vmem:[%s1015_s1 + $0x4] sm:$0xf]  ;;  %v546_v45 = vld [vmem:[%s1015_s1 + $0x8] sm:$0xf0]  ;;  %v545_v46 = vor.u32 %v617_v43, %v544_v42  ;;  %v34_v50 = vld [vmem:[%s1017_s2] sm:$0x3] }
   0xc   :  { %134 = vmatpush.bf16.msra.mxu0 %v585_v16  ;;  %634 = vmatpush.bf16.msra.mxu2 %v585_v16  ;;  %v549_v47 = vor.u32 %v616_v44, %v546_v45  ;;  %v614_v48 = vld [vmem:[%s1016_s0] sm:$0xff]  ;;  %v615_v49 = vld [vmem:[%s1016_s0 + $0x8] sm:$0xff]  ;;  %v789_v51 = vperm.slane %v34_v50, 0  ;;  %v791_v52 = vperm.slane %v34_v50, 1 }
   0xd   :  { %153 = vmatpush.bf16.msra.mxu1 %v589_v17  ;;  %642 = vmatpush.bf16.msra.mxu3 %v589_v17 }
  0x10   :  { %135 = vmatpush.bf16.msra.mxu0 %v577_v22  ;;  %635 = vmatpush.bf16.msra.mxu2 %v577_v22 }
  0x11   :  { %154 = vmatpush.bf16.msra.mxu1 %v581_v23  ;;  %643 = vmatpush.bf16.msra.mxu3 %v581_v23 }
  0x14   :  { %136 = vmatpush.bf16.msra.mxu0 %v569_v28  ;;  %636 = vmatpush.bf16.msra.mxu2 %v569_v28 }
  0x15   :  { %155 = vmatpush.bf16.msra.mxu1 %v573_v29  ;;  %644 = vmatpush.bf16.msra.mxu3 %v573_v29 }
  0x18   :  { %137 = vmatpush.bf16.msra.mxu0 %v561_v34  ;;  %637 = vmatpush.bf16.msra.mxu2 %v561_v34 }
  0x19   :  { %156 = vmatpush.bf16.msra.mxu1 %v565_v35  ;;  %645 = vmatpush.bf16.msra.mxu3 %v565_v35 }
  0x1c   :  { %138 = vmatpush.bf16.msra.mxu0 %v553_v40  ;;  %638 = vmatpush.bf16.msra.mxu2 %v553_v40 }
  0x1d   :  { %157 = vmatpush.bf16.msra.mxu1 %v557_v41  ;;  %646 = vmatpush.bf16.msra.mxu3 %v557_v41 }
  0x20   :  { %139 = vmatpush.bf16.msra.mxu0 %v545_v46  ;;  %639 = vmatpush.bf16.msra.mxu2 %v545_v46 }
  0x21   :  { %158 = vmatpush.bf16.msra.mxu1 %v549_v47  ;;  %647 = vmatpush.bf16.msra.mxu3 %v549_v47 }
  0x23   :  { %140 = vmatmul.bf16.vlgmr.msra.gmra.mxu0 %v614_v48  ;;  %145 = vmatmul.bf16.vlgmr.msra.gmra.mxu2 %v615_v49 }
  0x24   :  { %159 = vmatmul.bf16.vlgmr.msra.gmra.mxu1 %v614_v48  ;;  %164 = vmatmul.bf16.vlgmr.msra.gmra.mxu3 %v615_v49 }
  0xa0   :  { %v141_v53 = vpop.f32.mrf.mxu0 }
  0xa1   :  { %v794_v54 = vadd.f32 %v141_v53, %v789_v51  ;;  %v160_v55 = vpop.f32.mrf.mxu1 }
  0xa2   :  { %v797_v56 = vadd.f32 %v160_v55, %v791_v52 }
  0xa3   :  { %v800_v57 = vmul.f32 0.70710677, %v794_v54 }
  0xa4   :  { %v803_v58 = vmul.f32 0.70710677, %v797_v56 }
  0xa5   :  { %v186_v59 = vmul.f32 %v800_v57, %v800_v57 }
  0xa6   :  { %v226_v60 = vmul.f32 %v803_v58, %v803_v58  ;;  %v146_v61 = vpop.f32.mrf.mxu2 }
  0xa7   :  { %v187_v62 = vmin.f32 %v186_v59, 16.0  ;;  %v810_v63 = vadd.f32 %v146_v61, %v789_v51  ;;  %v165_v0 = vpop.f32.mrf.mxu3 }
  0xa8   :  { %v812_v1 = vmin.f32 %v226_v60, 16.0  ;;  %v815_v2 = vadd.f32 %v165_v0, %v791_v52  ;;  %v143_v8 = vpop.f32.mrf.mxu0 }
  0xa9   :  { %v188_v3 = vmul.f32 2.1237322e-06, %v187_v62  ;;  %v199_v4 = vmul.f32 3.8918573e-05, %v187_v62  ;;  %v820_v7 = vmul.f32 0.70710677, %v810_v63  ;;  %v828_v17 = vadd.f32 %v143_v8, %v789_v51  ;;  %v162_v42 = vpop.f32.mrf.mxu1 }
  0xaa   :  { %v228_v5 = vmul.f32 2.1237322e-06, %v812_v1  ;;  %v239_v6 = vmul.f32 3.8918573e-05, %v812_v1  ;;  %v825_v14 = vmul.f32 0.70710677, %v815_v2  ;;  %v852_v60 = vadd.f32 %v162_v42, %v791_v52 }
  0xab   :  { %v189_v9 = vadd.f32 0.00028619796, %v188_v3  ;;  %v200_v10 = vadd.f32 0.001143296, %v199_v4  ;;  %v346_v13 = vmul.f32 %v820_v7, %v820_v7  ;;  %v843_v34 = vmul.f32 0.70710677, %v828_v17 }
  0xac   :  { %v229_v11 = vadd.f32 0.00028619796, %v228_v5  ;;  %v240_v12 = vadd.f32 0.001143296, %v239_v6  ;;  %v386_v21 = vmul.f32 %v825_v14, %v825_v14 }
  0xad   :  { %v190_v15 = vmul.f32 %v189_v9, %v187_v62  ;;  %v201_v16 = vmul.f32 %v200_v10, %v187_v62  ;;  %v832_v20 = vmin.f32 %v346_v13, 16.0 }
  0xae   :  { %v230_v18 = vmul.f32 %v229_v11, %v812_v1  ;;  %v241_v19 = vmul.f32 %v240_v12, %v812_v1  ;;  %v838_v30 = vmin.f32 %v386_v21, 16.0 }
  0xaf   :  { %v191_v22 = vadd.f32 0.0036580483, %v190_v15  ;;  %v202_v23 = vadd.f32 0.014752088, %v201_v16  ;;  %v348_v26 = vmul.f32 2.1237322e-06, %v832_v20  ;;  %v266_v16 = vmul.f32 %v843_v34, %v843_v34 }
  0xb0   :  { %v231_v24 = vadd.f32 0.0036580483, %v230_v18  ;;  %v242_v25 = vadd.f32 0.014752088, %v241_v19  ;;  %v359_v29 = vmul.f32 3.8918573e-05, %v832_v20 }
  0xb1   :  { %v192_v27 = vmul.f32 %v191_v22, %v187_v62  ;;  %v203_v28 = vmul.f32 %v202_v23, %v187_v62  ;;  %v349_v33 = vadd.f32 0.00028619796, %v348_v26  ;;  %v388_v41 = vmul.f32 2.1237322e-06, %v838_v30 }
  0xb2   :  { %v232_v31 = vmul.f32 %v231_v24, %v812_v1  ;;  %v243_v32 = vmul.f32 %v242_v25, %v812_v1  ;;  %v360_v37 = vadd.f32 0.001143296, %v359_v29  ;;  %v399_v46 = vmul.f32 3.8918573e-05, %v838_v30 }
  0xb3   :  { %v193_v35 = vadd.f32 0.05243302, %v192_v27  ;;  %v204_v36 = vadd.f32 0.112945676, %v203_v28  ;;  %v350_v40 = vmul.f32 %v349_v33, %v832_v20  ;;  %v389_v50 = vadd.f32 0.00028619796, %v388_v41 }
  0xb4   :  { %v233_v38 = vadd.f32 0.05243302, %v232_v31  ;;  %v244_v39 = vadd.f32 0.112945676, %v243_v32  ;;  %v361_v45 = vmul.f32 %v360_v37, %v832_v20  ;;  %v400_v9 = vadd.f32 0.001143296, %v399_v46 }
  0xb5   :  { %v194_v43 = vmul.f32 %v193_v35, %v187_v62  ;;  %v205_v44 = vmul.f32 %v204_v36, %v187_v62  ;;  %v351_v49 = vadd.f32 0.0036580483, %v350_v40  ;;  %v390_v4 = vmul.f32 %v389_v50, %v838_v30 }
  0xb6   :  { %v234_v47 = vmul.f32 %v233_v38, %v812_v1  ;;  %v245_v48 = vmul.f32 %v244_v39, %v812_v1  ;;  %v362_v59 = vadd.f32 0.014752088, %v361_v45  ;;  %v401_v21 = vmul.f32 %v400_v9, %v838_v30 }
  0xb7   :  { %v195_v53 = vadd.f32 0.18741608, %v194_v43  ;;  %v206_v55 = vadd.f32 0.4994258, %v205_v44  ;;  %v352_v3 = vmul.f32 %v351_v49, %v832_v20  ;;  %v391_v12 = vadd.f32 0.0036580483, %v390_v4 }
  0xb8   :  { %v235_v61 = vadd.f32 0.18741608, %v234_v47  ;;  %v246_v0 = vadd.f32 0.4994258, %v245_v48  ;;  %v363_v8 = vmul.f32 %v362_v59, %v832_v20  ;;  %v870_v26 = vmin.f32 %v266_v16, 16.0 }
  0xb9   :  { %v196_v5 = vmul.f32 %v195_v53, %v187_v62  ;;  %v207_v6 = vmul.f32 %v206_v55, %v187_v62  ;;  %v353_v11 = vadd.f32 0.05243302, %v352_v3  ;;  %v865_v62 = vmul.f32 0.70710677, %v852_v60 }
  0xba   :  { %v247_v10 = vmul.f32 %v246_v0, %v812_v1  ;;  %v236_v15 = vmul.f32 %v235_v61, %v812_v1  ;;  %v364_v19 = vadd.f32 0.112945676, %v363_v8  ;;  %v392_v24 = vmul.f32 %v391_v12, %v838_v30  ;;  %v148_v1 = vpop.f32.mrf.mxu2 }
  0xbb   :  { %v208_v13 = vadd.f32 1.0, %v207_v6  ;;  %v197_v22 = vadd.f32 1.1283791, %v196_v5  ;;  %v354_v23 = vmul.f32 %v353_v11, %v832_v20  ;;  %v873_v27 = vmul.f32 0.5, %v794_v54 }
  0xbc   :  { %v861_v18 = vadd.f32 1.0, %v247_v10  ;;  %v237_v25 = vadd.f32 1.1283791, %v236_v15  ;;  %v876_v28 = vmul.f32 0.5, %v797_v56  ;;  %v365_v29 = vmul.f32 %v364_v19, %v832_v20 }
  0xbd   :  { %648 = vrcp.f32 %v208_v13  ;;  %v402_v31 = vadd.f32 0.014752088, %v401_v21  ;;  %v198_v32 = vmul.f32 %v197_v22, %v800_v57  ;;  %v218_v33 = vand.u32 2147483647, %v208_v13 }
  0xbe   :  { %650 = vrcp.f32 %v861_v18  ;;  %v306_v35 = vmul.f32 %v865_v62, %v865_v62  ;;  %v883_v36 = vadd.f32 %v148_v1, %v789_v51  ;;  %v355_v37 = vadd.f32 0.18741608, %v354_v23 }
  0xbf   :  { %v366_v38 = vadd.f32 0.4994258, %v365_v29  ;;  %v393_v39 = vadd.f32 0.05243302, %v392_v24  ;;  %v403_v54 = vmul.f32 %v402_v31, %v838_v30  ;;  %vm214_vm0 = vweird.f32 %v208_v13 }
  0xc0   :  { %v220_v56 = vand.u32 2147483648, %v208_v13  ;;  %v238_v41 = vmul.f32 %v237_v25, %v803_v58  ;;  %v279_v42 = vmul.f32 3.8918573e-05, %v870_v26  ;;  %vm254_vm1 = vweird.f32 %v861_v18 }
  0xc1   :  { %v367_v44 = vmul.f32 %v366_v38, %v832_v20  ;;  %v268_v51 = vmul.f32 2.1237322e-06, %v870_v26  ;;  %vm891_vm2 = vcmp.eq.f32.partialorder %v218_v33, 8.507059e+37  ;;  %v260_v47 = vand.u32 2147483648, %v861_v18 }
  0xc2   :  { %v404_v48 = vadd.f32 0.112945676, %v403_v54  ;;  %v356_v49 = vmul.f32 %v355_v37, %v832_v20  ;;  %v394_v53 = vmul.f32 %v393_v39, %v838_v30  ;;  %v280_v61 = vadd.f32 0.001143296, %v279_v42 }
  0xc3   :  { %v649_v40 = vpop.eup %648  ;;  %v898_v50 = vadd.f32 1.0, %v367_v44  ;;  %v902_v0 = vmin.f32 %v306_v35, 16.0  ;;  %v269_v4 = vadd.f32 0.00028619796, %v268_v51  ;;  %v258_v6 = vand.u32 2147483647, %v861_v18 }
  0xc4   :  { %v651_v57 = vpop.eup %650  ;;  %v210_v43 = vmul.f32 %v649_v40, %v208_v13  ;;  %v405_v59 = vmul.f32 %v404_v48, %v838_v30  ;;  %vm215_vm3 = vweird.f32 %v649_v40  ;;  %v221_v9 = vor.u32 1.1754944e-38, %v220_v56 }
  0xc5   :  { %v250_v46 = vmul.f32 %v651_v57, %v861_v18  ;;  %652 = vrcp.f32 %v898_v50  ;;  %vm255_vm4 = vweird.f32 %v651_v57  ;;  %v357_v10 = vadd.f32 1.1283791, %v356_v49  ;;  %vm216_vm5 = vmor %vm214_vm0, %vm215_vm3 }
  0xc6   :  { %v211_v58 = vsub.f32 1.0, %v210_v43  ;;  %v406_v20 = vadd.f32 0.4994258, %v405_v59  ;;  %v281_v11 = vmul.f32 %v280_v61, %v870_v26  ;;  %v261_v15 = vor.u32 1.1754944e-38, %v260_v47  ;;  %vm256_vm6 = vmor %vm254_vm1, %vm255_vm4 }
  0xc7   :  { %v251_v55 = vsub.f32 1.0, %v250_v46  ;;  %v308_v19 = vmul.f32 2.1237322e-06, %v902_v0  ;;  %v395_v22 = vadd.f32 0.18741608, %v394_v53  ;;  %v270_v23 = vmul.f32 %v269_v4, %v870_v26 }
  0xc8   :  { %v212_v3 = vmul.f32 %v649_v40, %v211_v58  ;;  %v407_v16 = vmul.f32 %v406_v20, %v838_v30  ;;  %v282_v24 = vadd.f32 0.014752088, %v281_v11  ;;  %vm259_vm7 = vcmp.eq.f32.partialorder %v258_v6, 8.507059e+37 }
  0xc9   :  { %v252_v5 = vmul.f32 %v651_v57, %v251_v55  ;;  %v358_v35 = vmul.f32 %v357_v10, %v820_v7  ;;  %v309_v39 = vadd.f32 0.00028619796, %v308_v19  ;;  %v271_v56 = vadd.f32 0.0036580483, %v270_v23 }
  0xca   :  { %v213_v8 = vadd.f32 %v649_v40, %v212_v3  ;;  %v915_v13 = vadd.f32 1.0, %v407_v16  ;;  %v283_v37 = vmul.f32 %v282_v24, %v870_v26  ;;  %v319_v42 = vmul.f32 3.8918573e-05, %v902_v0 }
  0xcb   :  { %v253_v12 = vadd.f32 %v651_v57, %v252_v5  ;;  %v653_v29 = vpop.eup %652  ;;  %vm374_vm8 = vweird.f32 %v898_v50  ;;  %v380_v44 = vand.u32 2147483648, %v898_v50  ;;  %v272_v58 = vmul.f32 %v271_v56, %v870_v26 }
  0xcc   :  { %v217_v21 = vsel %vm216_vm5, %v649_v40, %v213_v8  ;;  %v370_v38 = vmul.f32 %v653_v29, %v898_v50  ;;  %654 = vrcp.f32 %v915_v13  ;;  %v396_v40 = vmul.f32 %v395_v22, %v838_v30 }
  0xcd   :  { %v222_v1 = vsel %vm891_vm2, %v221_v9, %v217_v21  ;;  %v257_v25 = vsel %vm256_vm6, %v651_v57, %v253_v12  ;;  %vm375_vm9 = vweird.f32 %v653_v29  ;;  %v310_v30 = vmul.f32 %v309_v39, %v902_v0  ;;  %v167_v21 = vpop.f32.mrf.mxu3 }
  0xce   :  { %v223_v31 = vmul.f32 %v222_v1, %v198_v32  ;;  %v262_v33 = vsel %vm259_vm7, %v261_v15, %v257_v25  ;;  %v371_v43 = vsub.f32 1.0, %v370_v38  ;;  %v284_v32 = vadd.f32 0.112945676, %v283_v37  ;;  %vm376_vm10 = vmor %vm374_vm8, %vm375_vm9 }
  0xcf   :  { %v263_v18 = vmul.f32 %v262_v33, %v238_v41  ;;  %v378_v41 = vand.u32 2147483647, %v898_v50  ;;  %v397_v48 = vadd.f32 1.1283791, %v396_v40  ;;  %v320_v49 = vadd.f32 0.001143296, %v319_v42 }
  0xd0   :  { %v606_v54 = vclamps-f32 %v223_v31, 1.0  ;;  %v372_v45 = vmul.f32 %v653_v29, %v371_v43  ;;  %v285_v46 = vmul.f32 %v284_v32, %v870_v26  ;;  %v932_v3 = vmul.f32 0.70710677, %v883_v36 }
  0xd1   :  { %v607_v57 = vclamps-f32 %v263_v18, 1.0  ;;  %vm379_vm11 = vcmp.eq.f32.partialorder %v378_v41, 8.507059e+37  ;;  %v381_v4 = vor.u32 1.1754944e-38, %v380_v44  ;;  %v321_v5 = vmul.f32 %v320_v49, %v902_v0 }
  0xd2   :  { %v506_v7 = vadd.f32 1.0, %v606_v54  ;;  %v655_v53 = vpop.eup %654  ;;  %v373_v59 = vadd.f32 %v653_v29, %v372_v45  ;;  %v286_v61 = vadd.f32 0.4994258, %v285_v46  ;;  %v273_v11 = vadd.f32 0.05243302, %v272_v58 }
  0xd3   :  { %v507_v51 = vadd.f32 1.0, %v607_v57  ;;  %v322_v12 = vadd.f32 0.014752088, %v321_v5  ;;  %v420_v15 = vand.u32 2147483648, %v915_v13  ;;  %v426_v19 = vmul.f32 %v932_v3, %v932_v3 }
  0xd4   :  { %v514_v47 = vmul.f32 %v506_v7, %v873_v27  ;;  %v410_v27 = vmul.f32 %v655_v53, %v915_v13  ;;  %v377_v20 = vsel %vm376_vm10, %v653_v29, %v373_v59  ;;  %v287_v8 = vmul.f32 %v286_v61, %v870_v26 }
  0xd5   :  { %v515_v55 = vmul.f32 %v507_v51, %v876_v28  ;;  %v311_v28 = vadd.f32 0.0036580483, %v310_v30  ;;  %v382_v9 = vsel %vm379_vm11, %v381_v4, %v377_v20  ;;  %vm415_vm12 = vweird.f32 %v655_v53 }
  0xd6   :  { %v411_v10 = vsub.f32 1.0, %v410_v27  ;;  %v383_v50 = vmul.f32 %v382_v9, %v358_v35  ;;  %v944_v16 = vadd.f32 1.0, %v287_v8  ;;  %v418_v23 = vand.u32 2147483647, %v915_v13 }
  0xd7   :  { %v522_v6 = vpack.c.bf16 %v515_v55, %v514_v47  ;;  %v323_v24 = vmul.f32 %v322_v12, %v902_v0  ;;  %vm414_vm13 = vweird.f32 %v915_v13  ;;  %v312_v1 = vmul.f32 %v311_v28, %v902_v0 }
  0xd8   :  { %v412_v22 = vmul.f32 %v655_v53, %v411_v10  ;;  %656 = vrcp.f32 %v944_v16  ;;  %v610_v25 = vclamps-f32 %v383_v50, 1.0  ;;  %v954_v33 = vadd.f32 %v167_v21, %v791_v52  ;;  %vm416_vm14 = vmor %vm414_vm13, %vm415_vm12 }
  0xd9   :  { %526 = vst [vmem:[%s1018_s3] sm:$0xff] %v522_v6  ;;  %v324_v31 = vadd.f32 0.112945676, %v323_v24  ;;  %v421_v35 = vor.u32 1.1754944e-38, %v420_v15  ;;  %v274_v37 = vmul.f32 %v273_v11, %v870_v26  ;;  %v957_v18 = vmin.f32 %v426_v19, 16.0 }
  0xda   :  { %v413_v29 = vadd.f32 %v655_v53, %v412_v22  ;;  %v398_v38 = vmul.f32 %v397_v48, %v825_v14  ;;  %vm419_vm15 = vcmp.eq.f32.partialorder %v418_v23, 8.507059e+37  ;;  %v313_v40 = vadd.f32 0.05243302, %v312_v1 }
  0xdb   :  { %v325_v13 = vmul.f32 %v324_v31, %v902_v0  ;;  %v428_v56 = vmul.f32 2.1237322e-06, %v957_v18  ;;  %v439_v42 = vmul.f32 3.8918573e-05, %v957_v18  ;;  %v510_v52 = vadd.f32 1.0, %v610_v25 }
  0xdc   :  { %v417_v39 = vsel %vm416_vm14, %v655_v53, %v413_v29  ;;  %v964_v32 = vmul.f32 0.70710677, %v954_v33  ;;  %v275_v41 = vadd.f32 0.18741608, %v274_v37  ;;  %v174_v14 = vmul.f32 0.5, %v810_v63 }
  0xdd   :  { %v422_v54 = vsel %vm419_vm15, %v421_v35, %v417_v39  ;;  %v326_v43 = vadd.f32 0.4994258, %v325_v13  ;;  %v440_v44 = vadd.f32 0.001143296, %v439_v42  ;;  %v429_v46 = vadd.f32 0.00028619796, %v428_v56 }
  0xde   :  { %v423_v57 = vmul.f32 %v422_v54, %v398_v38  ;;  %v657_v7 = vpop.eup %656  ;;  %v175_v30 = vmul.f32 0.5, %v815_v2  ;;  %v466_v58 = vmul.f32 %v964_v32, %v964_v32  ;;  %v518_v49 = vmul.f32 %v510_v52, %v174_v14 }
  0xdf   :  { %v290_v45 = vmul.f32 %v657_v7, %v944_v16  ;;  %v327_v47 = vmul.f32 %v326_v43, %v902_v0  ;;  %v441_v48 = vmul.f32 %v440_v44, %v957_v18  ;;  %v314_v59 = vmul.f32 %v313_v40, %v902_v0 }
  0xe0   :  { %v611_v51 = vclamps-f32 %v423_v57, 1.0  ;;  %v276_v63 = vmul.f32 %v275_v41, %v870_v26  ;;  %v975_v27 = vmin.f32 %v466_v58, 16.0  ;;  %vm295_vm0 = vweird.f32 %v657_v7 }
  0xe1   :  { %v291_v55 = vsub.f32 1.0, %v290_v45  ;;  %v328_v61 = vadd.f32 1.0, %v327_v47  ;;  %v442_v4 = vadd.f32 0.014752088, %v441_v48  ;;  %v430_v6 = vmul.f32 %v429_v46, %v957_v18 }
  0xe2   :  { %v511_v53 = vadd.f32 1.0, %v611_v51  ;;  %vm294_vm1 = vweird.f32 %v944_v16  ;;  %v298_v20 = vand.u32 2147483647, %v944_v16  ;;  %v300_v8 = vand.u32 2147483648, %v944_v16 }
  0xe3   :  { %v292_v2 = vmul.f32 %v657_v7, %v291_v55  ;;  %658 = vrcp.f32 %v328_v61  ;;  %v315_v10 = vadd.f32 0.18741608, %v314_v59  ;;  %v443_v26 = vmul.f32 %v442_v4, %v957_v18  ;;  %vm296_vm2 = vmor %vm294_vm1, %vm295_vm0 }
  0xe4   :  { %v519_v5 = vmul.f32 %v511_v53, %v175_v30  ;;  %v277_v11 = vadd.f32 1.1283791, %v276_v63  ;;  %v468_v12 = vmul.f32 2.1237322e-06, %v975_v27  ;;  %v479_v50 = vmul.f32 3.8918573e-05, %v975_v27 }
  0xe5   :  { %v293_v9 = vadd.f32 %v657_v7, %v292_v2  ;;  %v431_v19 = vadd.f32 0.0036580483, %v430_v6  ;;  %v444_v21 = vadd.f32 0.112945676, %v443_v26  ;;  %v301_v16 = vor.u32 1.1754944e-38, %v300_v8 }
  0xe6   :  { %v524_v28 = vpack.c.bf16 %v519_v5, %v518_v49  ;;  %v469_v22 = vadd.f32 0.00028619796, %v468_v12  ;;  %v480_v23 = vadd.f32 0.001143296, %v479_v50  ;;  %vm299_vm3 = vcmp.eq.f32.partialorder %v298_v20, 8.507059e+37 }
  0xe7   :  { %v297_v15 = vsel %vm296_vm2, %v657_v7, %v293_v9  ;;  %v316_v24 = vmul.f32 %v315_v10, %v902_v0  ;;  %v445_v1 = vmul.f32 %v444_v21, %v957_v18  ;;  %v278_v35 = vmul.f32 %v277_v11, %v843_v34 }
  0xe8   :  { %528 = vst [vmem:[%s1018_s3 + $0x10] sm:$0xff] %v524_v28  ;;  %v302_v29 = vsel %vm299_vm3, %v301_v16, %v297_v15  ;;  %v481_v31 = vmul.f32 %v480_v23, %v975_v27  ;;  %v432_v38 = vmul.f32 %v431_v19, %v957_v18  ;;  %v470_v39 = vmul.f32 %v469_v22, %v975_v27 }
  0xe9   :  { %v659_v25 = vpop.eup %658  ;;  %v446_v13 = vadd.f32 0.4994258, %v445_v1  ;;  %v303_v40 = vmul.f32 %v302_v29, %v278_v35  ;;  %v317_v56 = vadd.f32 1.1283791, %v316_v24  ;;  %v338_v52 = vand.u32 2147483647, %v328_v61 }
  0xea   :  { %v330_v37 = vmul.f32 %v659_v25, %v328_v61  ;;  %v482_v54 = vadd.f32 0.014752088, %v481_v31  ;;  %v340_v0 = vand.u32 2147483648, %v328_v61  ;;  %vm335_vm4 = vweird.f32 %v659_v25 }
  0xeb   :  { %v447_v57 = vmul.f32 %v446_v13, %v957_v18  ;;  %v433_v41 = vadd.f32 0.05243302, %v432_v38  ;;  %v471_v34 = vadd.f32 0.0036580483, %v470_v39  ;;  %v608_v51 = vclamps-f32 %v303_v40, 1.0 }
  0xec   :  { %v331_v42 = vsub.f32 1.0, %v330_v37  ;;  %v483_v43 = vmul.f32 %v482_v54, %v975_v27  ;;  %vm334_vm5 = vweird.f32 %v328_v61  ;;  %v318_v46 = vmul.f32 %v317_v56, %v865_v62 }
  0xed   :  { %v448_v44 = vadd.f32 1.0, %v447_v57  ;;  %vm336_vm6 = vmor %vm334_vm5, %vm335_vm4  ;;  %vm339_vm7 = vcmp.eq.f32.partialorder %v338_v52, 8.507059e+37  ;;  %v341_v30 = vor.u32 1.1754944e-38, %v340_v0  ;;  %v434_v48 = vmul.f32 %v433_v41, %v957_v18 }
  0xee   :  { %v332_v7 = vmul.f32 %v659_v25, %v331_v42  ;;  %v484_v14 = vadd.f32 0.112945676, %v483_v43  ;;  %v472_v58 = vmul.f32 %v471_v34, %v975_v27  ;;  %v508_v55 = vadd.f32 1.0, %v608_v51 }
  0xef   :  { %660 = vrcp.f32 %v448_v44  ;;  %v172_v4 = vmul.f32 0.5, %v828_v17  ;;  %v435_v5 = vadd.f32 0.18741608, %v434_v48  ;;  %v173_v8 = vmul.f32 0.5, %v852_v60 }
  0xf0   :  { %v333_v45 = vadd.f32 %v659_v25, %v332_v7  ;;  %v485_v49 = vmul.f32 %v484_v14, %v975_v27  ;;  %v473_v62 = vadd.f32 0.05243302, %v472_v58  ;;  %v460_v15 = vand.u32 2147483648, %v448_v44 }
  0xf1   :  { %v516_v20 = vmul.f32 %v508_v55, %v172_v4  ;;  %v436_v11 = vmul.f32 %v435_v5, %v957_v18  ;;  %v458_v21 = vand.u32 2147483647, %v448_v44  ;;  %vm454_vm9 = vweird.f32 %v448_v44 }
  0xf2   :  { %v337_v47 = vsel %vm336_vm6, %v659_v25, %v333_v45  ;;  %v486_v63 = vadd.f32 0.4994258, %v485_v49  ;;  %v474_v50 = vmul.f32 %v473_v62, %v975_v27  ;;  %v461_v23 = vor.u32 1.1754944e-38, %v460_v15 }
  0xf3   :  { %v342_v53 = vsel %vm339_vm7, %v341_v30, %v337_v47  ;;  %v437_v60 = vadd.f32 1.1283791, %v436_v11  ;;  %vm459_vm11 = vcmp.eq.f32.partialorder %v458_v21, 8.507059e+37  ;;  %v176_v43 = vmul.f32 0.5, %v883_v36 }
  0xf4   :  { %v343_v59 = vmul.f32 %v342_v53, %v318_v46  ;;  %v487_v2 = vmul.f32 %v486_v63, %v975_v27  ;;  %v475_v22 = vadd.f32 0.18741608, %v474_v50  ;;  %v177_v34 = vmul.f32 0.5, %v954_v33 }
  0xf5   :  { %v661_v6 = vpop.eup %660  ;;  %v438_v25 = vmul.f32 %v437_v60, %v932_v3 }
  0xf6   :  { %v609_v61 = vclamps-f32 %v343_v59, 1.0  ;;  %v450_v9 = vmul.f32 %v661_v6, %v448_v44  ;;  %v488_v10 = vadd.f32 1.0, %v487_v2  ;;  %vm455_vm8 = vweird.f32 %v661_v6 }
  0xf7   :  { %vm456_vm10 = vmor %vm454_vm9, %vm455_vm8  ;;  %v476_v29 = vmul.f32 %v475_v22, %v975_v27 }
  0xf8   :  { %v509_v28 = vadd.f32 1.0, %v609_v61  ;;  %v451_v12 = vsub.f32 1.0, %v450_v9  ;;  %662 = vrcp.f32 %v488_v10  ;;  %v500_v38 = vand.u32 2147483648, %v488_v10 }
  0xf9   :  { %v477_v39 = vadd.f32 1.1283791, %v476_v29  ;;  %v498_v54 = vand.u32 2147483647, %v488_v10  ;;  %vm494_vm13 = vweird.f32 %v488_v10 }
  0xfa   :  { %v517_v26 = vmul.f32 %v509_v28, %v173_v8  ;;  %v452_v19 = vmul.f32 %v661_v6, %v451_v12  ;;  %v501_v42 = vor.u32 1.1754944e-38, %v500_v38 }
  0xfb   :  { %v478_v52 = vmul.f32 %v477_v39, %v964_v32  ;;  %vm499_vm15 = vcmp.eq.f32.partialorder %v498_v54, 8.507059e+37 }
  0xfc   :  { %v523_v17 = vpack.c.bf16 %v517_v26, %v516_v20  ;;  %v453_v16 = vadd.f32 %v661_v6, %v452_v19 }
  0xfe   :  { %527 = vst [vmem:[%s1018_s3 + $0x8] sm:$0xff] %v523_v17  ;;  %v457_v18 = vsel %vm456_vm10, %v661_v6, %v453_v16  ;;  %v663_v24 = vpop.eup %662 }
  0xff   :  { %v462_v1 = vsel %vm459_vm11, %v461_v23, %v457_v18  ;;  %v490_v31 = vmul.f32 %v663_v24, %v488_v10  ;;  %vm495_vm12 = vweird.f32 %v663_v24 }
 0x100   :  { %v463_v35 = vmul.f32 %v462_v1, %v438_v25  ;;  %vm496_vm14 = vmor %vm494_vm13, %vm495_vm12 }
 0x101   :  { %v491_v37 = vsub.f32 1.0, %v490_v31 }
 0x102   :  { %v612_v40 = vclamps-f32 %v463_v35, 1.0 }
 0x103   :  { %v492_v13 = vmul.f32 %v663_v24, %v491_v37 }
 0x104   :  { %v512_v57 = vadd.f32 1.0, %v612_v40 }
 0x105   :  { %v493_v56 = vadd.f32 %v663_v24, %v492_v13 }
 0x106   :  { %v520_v41 = vmul.f32 %v512_v57, %v176_v43 }
 0x107   :  { %v497_v0 = vsel %vm496_vm14, %v663_v24, %v493_v56 }
 0x108   :  { %v502_v3 = vsel %vm499_vm15, %v501_v42, %v497_v0 }
 0x109   :  { %v503_v27 = vmul.f32 %v502_v3, %v478_v52 }
 0x10b   :  { %v613_v7 = vclamps-f32 %v503_v27, 1.0 }
 0x10d   :  { %v513_v44 = vadd.f32 1.0, %v613_v7 }
 0x10f   :  { %v521_v14 = vmul.f32 %v513_v44, %v177_v34 }
 0x111   :  { %v525_v51 = vpack.c.bf16 %v521_v14, %v520_v41 }
 0x113   :  { %529 = vst [vmem:[%s1018_s3 + $0x18] sm:$0xff] %v525_v51 }

// kernel: super_bert_forward.19
= control target key start
LH: loop header
LB: loop body
LE: loop exit
PB: predicated region body
PF: predicated region fallthrough
CT: control target
= control target key end

     0   :  { %11 = vsyncpa [#allocation3], 0  ;;  %s391_s24 = smov [#allocation2]   ;;  %s392_s26 = smov 64   ;;  %s480_s0 = inlined_call_operand.vmem [shape: bf16[32,128], index: 0, kind: input, shape index: {}]   ;;  %s481_s1 = inlined_call_operand.hbm [shape: bf16[128,128], index: 1, kind: input, shape index: {}]   ;;  %s482_s2 = inlined_call_operand.vmem [shape: f32[1,128], index: 2, kind: input, shape index: {}]   ;;  %s483_s3 = inlined_call_operand.vmem [shape: bf16[32,128], index: 3, kind: input, shape index: {}]   ;;  %s484_s4 = inlined_call_operand.vmem [shape: f32[1,128], index: 4, kind: input, shape index: {}]   ;;  %s485_s5 = inlined_call_operand.vmem [shape: f32[1,128], index: 5, kind: input, shape index: {}]   ;;  %s486_s6 = inlined_call_operand.vmem [shape: bf16[32,128], index: 6, kind: output, shape index: {}]  }
   0x1   :  { %s18_s23 = sshll.u32 %s481_s1, 4  ;;  %s20_s25 = sshll.u32 %s391_s24, 4  ;;  %s19_s23 = int_to_ptr.hbm [resolvable:$true] %s18_s23  ;;  %s21_s25 = int_to_ptr.vmem [resolvable:$true] %s20_s25 }
   0x2   :  { %s393_s27 = smov 4  }
   0x3   :  { %26 = dma.hbm_to_vmem [thread:$0]  %s19_s23, 1024, %s21_s25, [#allocation3], %s392_s26, %s392_s26, %s393_s27  }
   0x4   :  { %389 = dma.done.wait [#allocation3], 1024  }
   0x5   :  { %390 = vsyncadd [#allocation3], 4294966272  ;;  %v319_v0 = vld [vmem:[#allocation2 + $0x38] sm:$0xff]  ;;  %v318_v1 = vld [vmem:[#allocation2 + $0x30] sm:$0xff]  ;;  %v394_v29 = vmov 128.0  }
   0x6   :  { %123 = vmatpush.bf16.msra.mxu0 %v319_v0  ;;  %340 = vmatpush.bf16.msra.mxu1 %v319_v0  ;;  %v317_v2 = vld [vmem:[#allocation2 + $0x28] sm:$0xff]  ;;  %v316_v3 = vld [vmem:[#allocation2 + $0x20] sm:$0xff]  ;;  %v315_v4 = vld [vmem:[#allocation2 + $0x18] sm:$0xff]  ;;  %355 = vrcp.f32 %v394_v29 }
   0x7   :  { %v314_v5 = vld [vmem:[#allocation2 + $0x10] sm:$0xff]  ;;  %v313_v6 = vld [vmem:[#allocation2 + $0x8] sm:$0xff]  ;;  %v312_v7 = vld [vmem:[#allocation2] sm:$0xff] }
   0x8   :  { %v310_v8 = vld [vmem:[%s480_s0] sm:$0xff]  ;;  %v311_v9 = vld [vmem:[%s480_s0 + $0x8] sm:$0xff] }
   0x9   :  { %v338_v10 = vld [vmem:[%s483_s3 + $0x8] sm:$0xff]   ;;  %v321_v11 = vld [vmem:[%s483_s3] sm:$0xff]  }
   0xa   :  { %124 = vmatpush.bf16.msra.mxu0 %v318_v1  ;;  %341 = vmatpush.bf16.msra.mxu1 %v318_v1  ;;  %v352_v12 = vld [vmem:[%s482_s2] ss:$0 sm:$0xff]  ;;  %v326_v13 = vunpack.c.l.bf16 %v338_v10  ;;  %v322_v14 = vunpack.c.l.bf16 %v321_v11  ;;  %v327_v21 = vunpack.c.h.bf16 %v338_v10  ;;  %v323_v22 = vunpack.c.h.bf16 %v321_v11 }
   0xc   :  { %v356_v30 = vpop.eup %355 }
   0xd   :  { %v163_v31 = vmul.f32 128.0, %v356_v30  ;;  %vm167_vm0 = vweird.f32 %v356_v30 }
   0xe   :  { %125 = vmatpush.bf16.msra.mxu0 %v317_v2  ;;  %342 = vmatpush.bf16.msra.mxu1 %v317_v2 }
   0xf   :  { %v164_v32 = vsub.f32 1.0, %v163_v31 }
  0x11   :  { %v165_v33 = vmul.f32 %v356_v30, %v164_v32 }
  0x12   :  { %126 = vmatpush.bf16.msra.mxu0 %v316_v3  ;;  %343 = vmatpush.bf16.msra.mxu1 %v316_v3 }
  0x13   :  { %v166_v34 = vadd.f32 %v356_v30, %v165_v33 }
  0x15   :  { %v168_v35 = vsel %vm167_vm0, %v356_v30, %v166_v34  ;;  %v354_v30 = vld [vmem:[%s485_s5] ss:$0 sm:$0xff] }
  0x16   :  { %127 = vmatpush.bf16.msra.mxu0 %v315_v4  ;;  %344 = vmatpush.bf16.msra.mxu1 %v315_v4 }
  0x1a   :  { %128 = vmatpush.bf16.msra.mxu0 %v314_v5  ;;  %345 = vmatpush.bf16.msra.mxu1 %v314_v5 }
  0x1e   :  { %129 = vmatpush.bf16.msra.mxu0 %v313_v6  ;;  %346 = vmatpush.bf16.msra.mxu1 %v313_v6 }
  0x22   :  { %130 = vmatpush.bf16.msra.mxu0 %v312_v7  ;;  %347 = vmatpush.bf16.msra.mxu1 %v312_v7 }
  0x25   :  { %131 = vmatmul.bf16.vlgmr.msra.gmra.mxu0 %v310_v8  ;;  %136 = vmatmul.bf16.vlgmr.msra.gmra.mxu1 %v311_v9 }
  0xa2   :  { %v132_v15 = vpop.f32.mrf.mxu0  ;;  %v137_v16 = vpop.f32.mrf.mxu1 }
  0xa3   :  { %v133_v17 = vadd.f32 %v352_v12, %v132_v15  ;;  %v138_v18 = vadd.f32 %v352_v12, %v137_v16 }
  0xa5   :  { %v152_v19 = vadd.f32 %v326_v13, %v138_v18  ;;  %v150_v20 = vadd.f32 %v322_v14, %v133_v17 }
  0xa7   :  { %158 = vadd.xlane.f32.xlu1 %v152_v19  ;;  %154 = vadd.xlane.f32.xlu0 %v150_v20 }
  0xaa   :  { %v134_v23 = vpop.f32.mrf.mxu0  ;;  %v139_v24 = vpop.f32.mrf.mxu1 }
  0xab   :  { %v135_v25 = vadd.f32 %v352_v12, %v134_v23  ;;  %v140_v26 = vadd.f32 %v352_v12, %v139_v24  ;;  %v353_v23 = vld [vmem:[%s484_s4] ss:$0 sm:$0xff] }
  0xad   :  { %v153_v27 = vadd.f32 %v327_v21, %v140_v26  ;;  %v151_v28 = vadd.f32 %v323_v22, %v135_v25 }
  0xaf   :  { %160 = vadd.xlane.f32.xlu1 %v153_v27  ;;  %156 = vadd.xlane.f32.xlu0 %v151_v28 }
 0x11a   :  { %v159_v36 = vpop.xlane.xlu1 %158  ;;  %v155_v37 = vpop.xlane.xlu0 %154 }
 0x11b   :  { %v171_v38 = vmul.f32 %v168_v35, %v159_v36  ;;  %v169_v39 = vmul.f32 %v168_v35, %v155_v37 }
 0x11d   :  { %v448_v40 = vsub.f32 %v152_v19, %v171_v38  ;;  %v450_v41 = vsub.f32 %v150_v20, %v169_v39 }
 0x11f   :  { %v179_v42 = vmul.f32 %v448_v40, %v448_v40  ;;  %v177_v43 = vmul.f32 %v450_v41, %v450_v41 }
 0x121   :  { %185 = vadd.xlane.f32.xlu0 %v179_v42  ;;  %181 = vadd.xlane.f32.xlu2 %v177_v43 }
 0x122   :  { %v161_v44 = vpop.xlane.xlu1 %160  ;;  %v157_v45 = vpop.xlane.xlu0 %156 }
 0x123   :  { %v172_v46 = vmul.f32 %v168_v35, %v161_v44  ;;  %v170_v47 = vmul.f32 %v168_v35, %v157_v45 }
 0x125   :  { %v456_v48 = vsub.f32 %v153_v27, %v172_v46  ;;  %v458_v49 = vsub.f32 %v151_v28, %v170_v47 }
 0x127   :  { %v180_v50 = vmul.f32 %v456_v48, %v456_v48  ;;  %v178_v51 = vmul.f32 %v458_v49, %v458_v49 }
 0x129   :  { %187 = vadd.xlane.f32.xlu1 %v180_v50  ;;  %183 = vadd.xlane.f32.xlu2 %v178_v51 }
 0x194   :  { %v182_v52 = vpop.xlane.xlu2 %181  ;;  %v186_v53 = vpop.xlane.xlu0 %185 }
 0x195   :  { %v189_v54 = vmul.f32 %v182_v52, %v168_v35  ;;  %v191_v55 = vmul.f32 %v186_v53, %v168_v35 }
 0x197   :  { %v193_v56 = vadd.f32 1e-12, %v189_v54  ;;  %v195_v57 = vadd.f32 1e-12, %v191_v55 }
 0x199   :  { %357 = vrsqrt.f32 %v193_v56  ;;  %vm223_vm3 = vweird.f32 %v195_v57  ;;  %vm203_vm4 = vweird.f32 %v193_v56 }
 0x19a   :  { %359 = vrsqrt.f32 %v195_v57 }
 0x19c   :  { %v188_v58 = vpop.xlane.xlu1 %187  ;;  %v184_v59 = vpop.xlane.xlu2 %183 }
 0x19d   :  { %v192_v60 = vmul.f32 %v188_v58, %v168_v35  ;;  %v190_v61 = vmul.f32 %v184_v59, %v168_v35 }
 0x19f   :  { %v358_v62 = vpop.eup %357  ;;  %v196_v63 = vadd.f32 1e-12, %v192_v60  ;;  %v194_v0 = vadd.f32 1e-12, %v190_v61 }
 0x1a0   :  { %v360_v1 = vpop.eup %359  ;;  %v198_v2 = vmul.f32 %v358_v62, %v193_v56  ;;  %vm204_vm2 = vweird.f32 %v358_v62 }
 0x1a1   :  { %v218_v3 = vmul.f32 %v360_v1, %v195_v57  ;;  %361 = vrsqrt.f32 %v196_v63  ;;  %vm224_vm1 = vweird.f32 %v360_v1  ;;  %vm205_vm6 = vmor %vm203_vm4, %vm204_vm2  ;;  %vm233_vm9 = vweird.f32 %v196_v63 }
 0x1a2   :  { %v199_v4 = vmul.f32 %v358_v62, %v198_v2  ;;  %363 = vrsqrt.f32 %v194_v0  ;;  %vm225_vm5 = vmor %vm223_vm3, %vm224_vm1  ;;  %vm213_vm11 = vweird.f32 %v194_v0 }
 0x1a3   :  { %v219_v5 = vmul.f32 %v360_v1, %v218_v3 }
 0x1a4   :  { %v200_v6 = vmul.f32 0.5, %v199_v4 }
 0x1a5   :  { %v220_v7 = vmul.f32 0.5, %v219_v5 }
 0x1a6   :  { %v201_v8 = vsub.f32 1.5, %v200_v6 }
 0x1a7   :  { %v362_v9 = vpop.eup %361  ;;  %v221_v10 = vsub.f32 1.5, %v220_v7 }
 0x1a8   :  { %v364_v11 = vpop.eup %363  ;;  %v228_v12 = vmul.f32 %v362_v9, %v196_v63  ;;  %v202_v13 = vmul.f32 %v358_v62, %v201_v8  ;;  %vm234_vm7 = vweird.f32 %v362_v9 }
 0x1a9   :  { %v222_v14 = vmul.f32 %v360_v1, %v221_v10  ;;  %v208_v15 = vmul.f32 %v364_v11, %v194_v0  ;;  %vm214_vm8 = vweird.f32 %v364_v11  ;;  %vm235_vm10 = vmor %vm233_vm9, %vm234_vm7 }
 0x1aa   :  { %v229_v16 = vmul.f32 %v362_v9, %v228_v12  ;;  %v206_v20 = vsel %vm205_vm6, %v358_v62, %v202_v13  ;;  %vm215_vm12 = vmor %vm213_vm11, %vm214_vm8 }
 0x1ab   :  { %v209_v17 = vmul.f32 %v364_v11, %v208_v15  ;;  %v226_v18 = vsel %vm225_vm5, %v360_v1, %v222_v14  ;;  %v237_v26 = vmul.f32 %v206_v20, %v450_v41 }
 0x1ac   :  { %v230_v19 = vmul.f32 0.5, %v229_v16  ;;  %v239_v24 = vmul.f32 %v226_v18, %v448_v40 }
 0x1ad   :  { %v210_v21 = vmul.f32 0.5, %v209_v17  ;;  %v245_v34 = vmul.f32 %v353_v23, %v237_v26 }
 0x1ae   :  { %v231_v22 = vsub.f32 1.5, %v230_v19  ;;  %v247_v31 = vmul.f32 %v353_v23, %v239_v24 }
 0x1af   :  { %v211_v25 = vsub.f32 1.5, %v210_v21  ;;  %v253_v40 = vadd.f32 %v354_v30, %v245_v34 }
 0x1b0   :  { %v232_v27 = vmul.f32 %v362_v9, %v231_v22  ;;  %v255_v38 = vadd.f32 %v354_v30, %v247_v31 }
 0x1b1   :  { %v212_v28 = vmul.f32 %v364_v11, %v211_v25 }
 0x1b2   :  { %v236_v29 = vsel %vm235_vm10, %v362_v9, %v232_v27 }
 0x1b3   :  { %v240_v32 = vmul.f32 %v236_v29, %v456_v48  ;;  %v216_v33 = vsel %vm215_vm12, %v364_v11, %v212_v28 }
 0x1b4   :  { %v238_v35 = vmul.f32 %v216_v33, %v458_v49 }
 0x1b5   :  { %v248_v36 = vmul.f32 %v353_v23, %v240_v32 }
 0x1b6   :  { %v246_v37 = vmul.f32 %v353_v23, %v238_v35 }
 0x1b7   :  { %v256_v39 = vadd.f32 %v354_v30, %v248_v36 }
 0x1b8   :  { %v254_v41 = vadd.f32 %v354_v30, %v246_v37 }
 0x1b9   :  { %v336_v42 = vpack.c.bf16 %v256_v39, %v255_v38 }
 0x1ba   :  { %v331_v43 = vpack.c.bf16 %v254_v41, %v253_v40 }
 0x1bb   :  { %339 = vst [vmem:[%s486_s6 + $0x8] sm:$0xff] %v336_v42  }
 0x1bc   :  { %332 = vst [vmem:[%s486_s6] sm:$0xff] %v331_v43  }
 0x1bd   :  { %269 = vsyncpa [#allocation3], 1 }

// kernel: super_bert_forward.16
= control target key start
LH: loop header
LB: loop body
LE: loop exit
PB: predicated region body
PF: predicated region fallthrough
CT: control target
= control target key end

     0   :  { %v494_v55 = vmov 128.0   ;;  %s638_s1 = inlined_call_operand.vmem [shape: bf16[256,128], index: 1, kind: input, shape index: {}]   ;;  %s639_s2 = inlined_call_operand.vmem [shape: f32[1,128], index: 2, kind: input, shape index: {}]   ;;  %s640_s0 = inlined_call_operand.vmem [shape: bf16[32,256], index: 0, kind: input, shape index: {}]   ;;  %s641_s3 = inlined_call_operand.vmem [shape: bf16[32,128], index: 3, kind: input, shape index: {}]   ;;  %s642_s4 = inlined_call_operand.vmem [shape: f32[1,128], index: 4, kind: input, shape index: {}]   ;;  %s643_s5 = inlined_call_operand.vmem [shape: f32[1,128], index: 5, kind: input, shape index: {}]   ;;  %s644_s6 = inlined_call_operand.vmem [shape: bf16[32,128], index: 6, kind: output, shape index: {}]  }
   0x1   :  { %v435_v0 = vld [vmem:[%s638_s1 + $0x38] sm:$0xff]  ;;  %v434_v2 = vld [vmem:[%s638_s1 + $0x30] sm:$0xff]  ;;  %v433_v4 = vld [vmem:[%s638_s1 + $0x28] sm:$0xff]  ;;  %484 = vrcp.f32 %v494_v55 }
   0x2   :  { %v443_v1 = vld [vmem:[%s638_s1 + $0x78] sm:$0xff]  ;;  %179 = vmatpush.bf16.msra.mxu0 %v435_v0  ;;  %464 = vmatpush.bf16.msra.mxu2 %v435_v0  ;;  %v442_v3 = vld [vmem:[%s638_s1 + $0x70] sm:$0xff]  ;;  %v441_v5 = vld [vmem:[%s638_s1 + $0x68] sm:$0xff] }
   0x3   :  { %198 = vmatpush.bf16.msra.mxu1 %v443_v1  ;;  %472 = vmatpush.bf16.msra.mxu3 %v443_v1  ;;  %v432_v6 = vld [vmem:[%s638_s1 + $0x20] sm:$0xff]  ;;  %v431_v8 = vld [vmem:[%s638_s1 + $0x18] sm:$0xff]  ;;  %v430_v10 = vld [vmem:[%s638_s1 + $0x10] sm:$0xff] }
   0x4   :  { %v440_v7 = vld [vmem:[%s638_s1 + $0x60] sm:$0xff]  ;;  %v439_v9 = vld [vmem:[%s638_s1 + $0x58] sm:$0xff]  ;;  %v438_v11 = vld [vmem:[%s638_s1 + $0x50] sm:$0xff] }
   0x5   :  { %v429_v12 = vld [vmem:[%s638_s1 + $0x8] sm:$0xff]  ;;  %v428_v14 = vld [vmem:[%s638_s1] sm:$0xff]  ;;  %v354_v18 = vld [vmem:[%s640_s0 + $0x10] sm:$0xf] }
   0x6   :  { %180 = vmatpush.bf16.msra.mxu0 %v434_v2  ;;  %465 = vmatpush.bf16.msra.mxu2 %v434_v2  ;;  %v437_v13 = vld [vmem:[%s638_s1 + $0x48] sm:$0xff]  ;;  %v436_v15 = vld [vmem:[%s638_s1 + $0x40] sm:$0xff]  ;;  %v427_v19 = vld [vmem:[%s640_s0 + $0x14] sm:$0xf0] }
   0x7   :  { %199 = vmatpush.bf16.msra.mxu1 %v442_v3  ;;  %473 = vmatpush.bf16.msra.mxu3 %v442_v3  ;;  %v346_v16 = vld [vmem:[%s640_s0] sm:$0xf]  ;;  %v425_v17 = vld [vmem:[%s640_s0 + $0x4] sm:$0xf0]  ;;  %v424_v20 = vld [vmem:[%s640_s0 + $0x4] sm:$0xf]  ;;  %v355_v25 = vor.u32 %v427_v19, %v354_v18  ;;  %v485_v56 = vpop.eup %484 }
   0x8   :  { %v348_v21 = vld [vmem:[%s640_s0 + $0x8] sm:$0xf0]  ;;  %v426_v22 = vld [vmem:[%s640_s0 + $0x14] sm:$0xf]  ;;  %v356_v23 = vld [vmem:[%s640_s0 + $0x18] sm:$0xf0]  ;;  %v347_v24 = vor.u32 %v425_v17, %v346_v16  ;;  %vm242_vm0 = vweird.f32 %v485_v56 }
   0x9   :  { %v351_v26 = vor.u32 %v424_v20, %v348_v21  ;;  %v359_v27 = vor.u32 %v426_v22, %v356_v23  ;;  %v481_v28 = vld [vmem:[%s639_s2] ss:$0 sm:$0xff]  ;;  %v462_v35 = vld [vmem:[%s641_s3 + $0x8] sm:$0xff]   ;;  %v238_v57 = vmul.f32 128.0, %v485_v56 }
   0xa   :  { %181 = vmatpush.bf16.msra.mxu0 %v433_v4  ;;  %466 = vmatpush.bf16.msra.mxu2 %v433_v4  ;;  %v445_v29 = vld [vmem:[%s641_s3] sm:$0xff]   ;;  %v450_v40 = vunpack.c.l.bf16 %v462_v35  ;;  %v451_v51 = vunpack.c.h.bf16 %v462_v35 }
   0xb   :  { %200 = vmatpush.bf16.msra.mxu1 %v441_v5  ;;  %474 = vmatpush.bf16.msra.mxu3 %v441_v5  ;;  %v446_v33 = vunpack.c.l.bf16 %v445_v29  ;;  %v447_v44 = vunpack.c.h.bf16 %v445_v29  ;;  %v239_v58 = vsub.f32 1.0, %v238_v57 }
   0xd   :  { %v240_v59 = vmul.f32 %v485_v56, %v239_v58 }
   0xe   :  { %182 = vmatpush.bf16.msra.mxu0 %v432_v6  ;;  %467 = vmatpush.bf16.msra.mxu2 %v432_v6 }
   0xf   :  { %201 = vmatpush.bf16.msra.mxu1 %v440_v7  ;;  %475 = vmatpush.bf16.msra.mxu3 %v440_v7  ;;  %v241_v60 = vadd.f32 %v485_v56, %v240_v59 }
  0x11   :  { %v243_v61 = vsel %vm242_vm0, %v485_v56, %v241_v60 }
  0x12   :  { %183 = vmatpush.bf16.msra.mxu0 %v431_v8  ;;  %468 = vmatpush.bf16.msra.mxu2 %v431_v8 }
  0x13   :  { %202 = vmatpush.bf16.msra.mxu1 %v439_v9  ;;  %476 = vmatpush.bf16.msra.mxu3 %v439_v9 }
  0x16   :  { %184 = vmatpush.bf16.msra.mxu0 %v430_v10  ;;  %469 = vmatpush.bf16.msra.mxu2 %v430_v10 }
  0x17   :  { %203 = vmatpush.bf16.msra.mxu1 %v438_v11  ;;  %477 = vmatpush.bf16.msra.mxu3 %v438_v11 }
  0x1a   :  { %185 = vmatpush.bf16.msra.mxu0 %v429_v12  ;;  %470 = vmatpush.bf16.msra.mxu2 %v429_v12 }
  0x1b   :  { %204 = vmatpush.bf16.msra.mxu1 %v437_v13  ;;  %478 = vmatpush.bf16.msra.mxu3 %v437_v13 }
  0x1e   :  { %186 = vmatpush.bf16.msra.mxu0 %v428_v14  ;;  %471 = vmatpush.bf16.msra.mxu2 %v428_v14 }
  0x1f   :  { %205 = vmatpush.bf16.msra.mxu1 %v436_v15  ;;  %479 = vmatpush.bf16.msra.mxu3 %v436_v15 }
  0x21   :  { %187 = vmatmul.bf16.vlgmr.msra.gmra.mxu0 %v347_v24  ;;  %192 = vmatmul.bf16.vlgmr.msra.gmra.mxu2 %v355_v25 }
  0x22   :  { %206 = vmatmul.bf16.vlgmr.msra.gmra.mxu1 %v351_v26  ;;  %211 = vmatmul.bf16.vlgmr.msra.gmra.mxu3 %v359_v27 }
  0x9e   :  { %v188_v30 = vpop.f32.mrf.mxu0 }
  0x9f   :  { %v189_v31 = vadd.f32 %v481_v28, %v188_v30  ;;  %v207_v32 = vpop.f32.mrf.mxu1 }
  0xa1   :  { %v208_v34 = vadd.f32 %v207_v32, %v189_v31 }
  0xa3   :  { %v225_v36 = vadd.f32 %v446_v33, %v208_v34 }
  0xa4   :  { %v193_v37 = vpop.f32.mrf.mxu2 }
  0xa5   :  { %v194_v38 = vadd.f32 %v481_v28, %v193_v37  ;;  %v212_v39 = vpop.f32.mrf.mxu3  ;;  %229 = vadd.xlane.f32.xlu0 %v225_v36 }
  0xa6   :  { %v190_v41 = vpop.f32.mrf.mxu0 }
  0xa7   :  { %v213_v42 = vadd.f32 %v212_v39, %v194_v38  ;;  %v191_v43 = vadd.f32 %v481_v28, %v190_v41  ;;  %v209_v45 = vpop.f32.mrf.mxu1 }
  0xa9   :  { %v210_v46 = vadd.f32 %v209_v45, %v191_v43  ;;  %v227_v47 = vadd.f32 %v450_v40, %v213_v42 }
  0xab   :  { %233 = vadd.xlane.f32.xlu1 %v227_v47  ;;  %v226_v48 = vadd.f32 %v447_v44, %v210_v46  ;;  %v482_v46 = vld [vmem:[%s642_s4] ss:$0 sm:$0xff] }
  0xac   :  { %v195_v49 = vpop.f32.mrf.mxu2 }
  0xad   :  { %v196_v50 = vadd.f32 %v481_v28, %v195_v49  ;;  %231 = vadd.xlane.f32.xlu0 %v226_v48  ;;  %v214_v52 = vpop.f32.mrf.mxu3 }
  0xaf   :  { %v215_v53 = vadd.f32 %v214_v52, %v196_v50 }
  0xb1   :  { %v228_v54 = vadd.f32 %v451_v51, %v215_v53  ;;  %v483_v53 = vld [vmem:[%s643_s5] ss:$0 sm:$0xff] }
  0xb3   :  { %235 = vadd.xlane.f32.xlu1 %v228_v54 }
 0x118   :  { %v230_v62 = vpop.xlane.xlu0 %229 }
 0x119   :  { %v244_v63 = vmul.f32 %v243_v61, %v230_v62 }
 0x11b   :  { %v248_v0 = vsub.f32 %v225_v36, %v244_v63 }
 0x11d   :  { %v252_v1 = vmul.f32 %v248_v0, %v248_v0 }
 0x11e   :  { %v234_v2 = vpop.xlane.xlu1 %233 }
 0x11f   :  { %v246_v3 = vmul.f32 %v243_v61, %v234_v2  ;;  %256 = vadd.xlane.f32.xlu2 %v252_v1 }
 0x120   :  { %v232_v4 = vpop.xlane.xlu0 %231 }
 0x121   :  { %v611_v5 = vsub.f32 %v227_v47, %v246_v3  ;;  %v245_v6 = vmul.f32 %v243_v61, %v232_v4 }
 0x123   :  { %v613_v7 = vsub.f32 %v226_v48, %v245_v6  ;;  %v254_v8 = vmul.f32 %v611_v5, %v611_v5 }
 0x125   :  { %260 = vadd.xlane.f32.xlu0 %v254_v8  ;;  %v253_v9 = vmul.f32 %v613_v7, %v613_v7 }
 0x126   :  { %v236_v10 = vpop.xlane.xlu1 %235 }
 0x127   :  { %v247_v11 = vmul.f32 %v243_v61, %v236_v10  ;;  %258 = vadd.xlane.f32.xlu2 %v253_v9 }
 0x129   :  { %v619_v12 = vsub.f32 %v228_v54, %v247_v11 }
 0x12b   :  { %v255_v13 = vmul.f32 %v619_v12, %v619_v12 }
 0x12d   :  { %262 = vadd.xlane.f32.xlu1 %v255_v13 }
 0x192   :  { %v257_v14 = vpop.xlane.xlu2 %256 }
 0x193   :  { %v264_v15 = vmul.f32 %v257_v14, %v243_v61 }
 0x195   :  { %v268_v16 = vadd.f32 1e-12, %v264_v15 }
 0x197   :  { %486 = vrsqrt.f32 %v268_v16  ;;  %vm278_vm2 = vweird.f32 %v268_v16 }
 0x198   :  { %v261_v17 = vpop.xlane.xlu0 %260 }
 0x199   :  { %v266_v18 = vmul.f32 %v261_v17, %v243_v61 }
 0x19a   :  { %v259_v19 = vpop.xlane.xlu2 %258 }
 0x19b   :  { %v270_v20 = vadd.f32 1e-12, %v266_v18  ;;  %v265_v21 = vmul.f32 %v259_v19, %v243_v61 }
 0x19d   :  { %v487_v22 = vpop.eup %486  ;;  %488 = vrsqrt.f32 %v270_v20  ;;  %v269_v23 = vadd.f32 1e-12, %v265_v21  ;;  %vm298_vm6 = vweird.f32 %v270_v20 }
 0x19e   :  { %v273_v24 = vmul.f32 %v487_v22, %v268_v16  ;;  %vm279_vm1 = vweird.f32 %v487_v22 }
 0x19f   :  { %490 = vrsqrt.f32 %v269_v23  ;;  %vm280_vm3 = vmor %vm278_vm2, %vm279_vm1  ;;  %vm288_vm8 = vweird.f32 %v269_v23 }
 0x1a0   :  { %v274_v25 = vmul.f32 %v487_v22, %v273_v24  ;;  %v263_v26 = vpop.xlane.xlu1 %262 }
 0x1a1   :  { %v267_v27 = vmul.f32 %v263_v26, %v243_v61 }
 0x1a2   :  { %v275_v28 = vmul.f32 0.5, %v274_v25 }
 0x1a3   :  { %v489_v29 = vpop.eup %488  ;;  %v271_v30 = vadd.f32 1e-12, %v267_v27 }
 0x1a4   :  { %v276_v31 = vsub.f32 1.5, %v275_v28  ;;  %v293_v32 = vmul.f32 %v489_v29, %v270_v20  ;;  %vm299_vm4 = vweird.f32 %v489_v29 }
 0x1a5   :  { %v491_v33 = vpop.eup %490  ;;  %492 = vrsqrt.f32 %v271_v30  ;;  %vm300_vm7 = vmor %vm298_vm6, %vm299_vm4  ;;  %vm308_vm11 = vweird.f32 %v271_v30 }
 0x1a6   :  { %v277_v34 = vmul.f32 %v487_v22, %v276_v31  ;;  %v294_v35 = vmul.f32 %v489_v29, %v293_v32  ;;  %v283_v36 = vmul.f32 %v491_v33, %v269_v23  ;;  %vm289_vm5 = vweird.f32 %v491_v33 }
 0x1a7   :  { %vm290_vm9 = vmor %vm288_vm8, %vm289_vm5 }
 0x1a8   :  { %v295_v37 = vmul.f32 0.5, %v294_v35  ;;  %v284_v38 = vmul.f32 %v491_v33, %v283_v36  ;;  %v281_v39 = vsel %vm280_vm3, %v487_v22, %v277_v34 }
 0x1a9   :  { %v312_v47 = vmul.f32 %v281_v39, %v248_v0 }
 0x1aa   :  { %v296_v40 = vsub.f32 1.5, %v295_v37  ;;  %v285_v41 = vmul.f32 0.5, %v284_v38 }
 0x1ab   :  { %v493_v42 = vpop.eup %492  ;;  %v320_v54 = vmul.f32 %v482_v46, %v312_v47 }
 0x1ac   :  { %v297_v43 = vmul.f32 %v489_v29, %v296_v40  ;;  %v286_v44 = vsub.f32 1.5, %v285_v41  ;;  %v303_v45 = vmul.f32 %v493_v42, %v271_v30  ;;  %vm309_vm10 = vweird.f32 %v493_v42 }
 0x1ad   :  { %v328_v60 = vadd.f32 %v483_v53, %v320_v54  ;;  %vm310_vm12 = vmor %vm308_vm11, %vm309_vm10 }
 0x1ae   :  { %v287_v48 = vmul.f32 %v491_v33, %v286_v44  ;;  %v304_v49 = vmul.f32 %v493_v42, %v303_v45  ;;  %v301_v50 = vsel %vm300_vm7, %v489_v29, %v297_v43 }
 0x1af   :  { %v314_v57 = vmul.f32 %v301_v50, %v611_v5 }
 0x1b0   :  { %v291_v51 = vsel %vm290_vm9, %v491_v33, %v287_v48  ;;  %v305_v52 = vmul.f32 0.5, %v304_v49 }
 0x1b1   :  { %v313_v55 = vmul.f32 %v291_v51, %v613_v7  ;;  %v322_v63 = vmul.f32 %v482_v46, %v314_v57 }
 0x1b2   :  { %v306_v56 = vsub.f32 1.5, %v305_v52 }
 0x1b3   :  { %v321_v58 = vmul.f32 %v482_v46, %v313_v55  ;;  %v330_v3 = vadd.f32 %v483_v53, %v322_v63 }
 0x1b4   :  { %v307_v59 = vmul.f32 %v493_v42, %v306_v56 }
 0x1b5   :  { %v329_v61 = vadd.f32 %v483_v53, %v321_v58 }
 0x1b6   :  { %v311_v62 = vsel %vm310_vm12, %v493_v42, %v307_v59 }
 0x1b7   :  { %v455_v0 = vpack.c.bf16 %v329_v61, %v328_v60  ;;  %v315_v1 = vmul.f32 %v311_v62, %v619_v12 }
 0x1b9   :  { %456 = vst [vmem:[%s644_s6] sm:$0xff] %v455_v0   ;;  %v323_v2 = vmul.f32 %v482_v46, %v315_v1 }
 0x1bb   :  { %v331_v4 = vadd.f32 %v483_v53, %v323_v2 }
 0x1bd   :  { %v460_v6 = vpack.c.bf16 %v331_v4, %v330_v3 }
 0x1bf   :  { %463 = vst [vmem:[%s644_s6 + $0x8] sm:$0xff] %v460_v6  }

// kernel: super_bert_forward.20
= control target key start
LH: loop header
LB: loop body
LE: loop exit
PB: predicated region body
PF: predicated region fallthrough
CT: control target
= control target key end

     0   :  { %8 = vsyncpa [#allocation3], 0  ;;  %s710_s15 = smov [#allocation2]   ;;  %s711_s17 = smov 128   ;;  %s971_s0 = inlined_call_operand.vmem [shape: bf16[32,128], index: 0, kind: input, shape index: {}]   ;;  %s972_s1 = inlined_call_operand.hbm [shape: bf16[128,256], index: 1, kind: input, shape index: {}]   ;;  %s973_s2 = inlined_call_operand.vmem [shape: f32[1,256], index: 2, kind: input, shape index: {}]   ;;  %s974_s3 = inlined_call_operand.vmem [shape: bf16[32,256], index: 3, kind: output, shape index: {}]  }
   0x1   :  { %s15_s14 = sshll.u32 %s972_s1, 4  ;;  %s17_s16 = sshll.u32 %s710_s15, 4  ;;  %s16_s14 = int_to_ptr.hbm [resolvable:$true] %s15_s14  ;;  %s18_s16 = int_to_ptr.vmem [resolvable:$true] %s17_s16 }
   0x2   :  { %s712_s18 = smov 8  }
   0x3   :  { %23 = dma.hbm_to_vmem [thread:$0]  %s16_s14, 2048, %s18_s16, [#allocation3], %s711_s17, %s711_s17, %s712_s18  }
   0x4   :  { %708 = dma.done.wait [#allocation3], 2048  }
   0x5   :  { %709 = vsyncadd [#allocation3], 4294965248  ;;  %v617_v0 = vld [vmem:[#allocation2 + $0x70] sm:$0xf]  ;;  %v648_v1 = vld [vmem:[#allocation2 + $0x74] sm:$0xf0] }
   0x6   :  { %v647_v2 = vld [vmem:[#allocation2 + $0x74] sm:$0xf]  ;;  %v618_v3 = vor.u32 %v648_v1, %v617_v0  ;;  %v619_v4 = vld [vmem:[#allocation2 + $0x78] sm:$0xf0]  ;;  %v609_v5 = vld [vmem:[#allocation2 + $0x60] sm:$0xf] }
   0x7   :  { %v646_v6 = vld [vmem:[#allocation2 + $0x64] sm:$0xf0]  ;;  %v622_v7 = vor.u32 %v647_v2, %v619_v4  ;;  %v645_v8 = vld [vmem:[#allocation2 + $0x64] sm:$0xf]  ;;  %v611_v9 = vld [vmem:[#allocation2 + $0x68] sm:$0xf0] }
   0x8   :  { %148 = vmatpush.bf16.msra.mxu0 %v618_v3  ;;  %649 = vmatpush.bf16.msra.mxu2 %v618_v3  ;;  %v610_v10 = vor.u32 %v646_v6, %v609_v5  ;;  %v614_v11 = vor.u32 %v645_v8, %v611_v9  ;;  %v601_v12 = vld [vmem:[#allocation2 + $0x50] sm:$0xf]  ;;  %v644_v13 = vld [vmem:[#allocation2 + $0x54] sm:$0xf0]  ;;  %v643_v14 = vld [vmem:[#allocation2 + $0x54] sm:$0xf] }
   0x9   :  { %167 = vmatpush.bf16.msra.mxu1 %v622_v7  ;;  %657 = vmatpush.bf16.msra.mxu3 %v622_v7  ;;  %v603_v15 = vld [vmem:[#allocation2 + $0x58] sm:$0xf0]  ;;  %v602_v16 = vor.u32 %v644_v13, %v601_v12  ;;  %v593_v18 = vld [vmem:[#allocation2 + $0x40] sm:$0xf]  ;;  %v642_v19 = vld [vmem:[#allocation2 + $0x44] sm:$0xf0] }
   0xa   :  { %v606_v17 = vor.u32 %v643_v14, %v603_v15  ;;  %v641_v20 = vld [vmem:[#allocation2 + $0x44] sm:$0xf]  ;;  %v595_v21 = vld [vmem:[#allocation2 + $0x48] sm:$0xf0]  ;;  %v594_v22 = vor.u32 %v642_v19, %v593_v18  ;;  %v585_v24 = vld [vmem:[#allocation2 + $0x30] sm:$0xf] }
   0xb   :  { %v598_v23 = vor.u32 %v641_v20, %v595_v21  ;;  %v640_v25 = vld [vmem:[#allocation2 + $0x34] sm:$0xf0]  ;;  %v639_v26 = vld [vmem:[#allocation2 + $0x34] sm:$0xf]  ;;  %v587_v27 = vld [vmem:[#allocation2 + $0x38] sm:$0xf0] }
   0xc   :  { %149 = vmatpush.bf16.msra.mxu0 %v610_v10  ;;  %650 = vmatpush.bf16.msra.mxu2 %v610_v10  ;;  %v586_v28 = vor.u32 %v640_v25, %v585_v24  ;;  %v590_v29 = vor.u32 %v639_v26, %v587_v27  ;;  %v577_v30 = vld [vmem:[#allocation2 + $0x20] sm:$0xf]  ;;  %v638_v31 = vld [vmem:[#allocation2 + $0x24] sm:$0xf0]  ;;  %v637_v32 = vld [vmem:[#allocation2 + $0x24] sm:$0xf] }
   0xd   :  { %168 = vmatpush.bf16.msra.mxu1 %v614_v11  ;;  %658 = vmatpush.bf16.msra.mxu3 %v614_v11  ;;  %v579_v33 = vld [vmem:[#allocation2 + $0x28] sm:$0xf0]  ;;  %v578_v34 = vor.u32 %v638_v31, %v577_v30  ;;  %v569_v36 = vld [vmem:[#allocation2 + $0x10] sm:$0xf]  ;;  %v636_v37 = vld [vmem:[#allocation2 + $0x14] sm:$0xf0] }
   0xe   :  { %v582_v35 = vor.u32 %v637_v32, %v579_v33  ;;  %v635_v38 = vld [vmem:[#allocation2 + $0x14] sm:$0xf]  ;;  %v571_v39 = vld [vmem:[#allocation2 + $0x18] sm:$0xf0]  ;;  %v570_v40 = vor.u32 %v636_v37, %v569_v36  ;;  %v561_v42 = vld [vmem:[#allocation2] sm:$0xf] }
   0xf   :  { %v574_v41 = vor.u32 %v635_v38, %v571_v39  ;;  %v634_v43 = vld [vmem:[#allocation2 + $0x4] sm:$0xf0]  ;;  %v633_v44 = vld [vmem:[#allocation2 + $0x4] sm:$0xf]  ;;  %v563_v45 = vld [vmem:[#allocation2 + $0x8] sm:$0xf0] }
  0x10   :  { %150 = vmatpush.bf16.msra.mxu0 %v602_v16  ;;  %651 = vmatpush.bf16.msra.mxu2 %v602_v16  ;;  %v562_v46 = vor.u32 %v634_v43, %v561_v42  ;;  %v566_v47 = vor.u32 %v633_v44, %v563_v45  ;;  %v631_v48 = vld [vmem:[%s971_s0] sm:$0xff]  ;;  %v632_v49 = vld [vmem:[%s971_s0 + $0x8] sm:$0xff] }
  0x11   :  { %169 = vmatpush.bf16.msra.mxu1 %v606_v17  ;;  %659 = vmatpush.bf16.msra.mxu3 %v606_v17  ;;  %v50_v50 = vld [vmem:[%s973_s2] sm:$0x3] }
  0x12   :  { %v745_v51 = vperm.slane %v50_v50, 0  ;;  %v747_v52 = vperm.slane %v50_v50, 1 }
  0x14   :  { %151 = vmatpush.bf16.msra.mxu0 %v594_v22  ;;  %652 = vmatpush.bf16.msra.mxu2 %v594_v22 }
  0x15   :  { %170 = vmatpush.bf16.msra.mxu1 %v598_v23  ;;  %660 = vmatpush.bf16.msra.mxu3 %v598_v23 }
  0x18   :  { %152 = vmatpush.bf16.msra.mxu0 %v586_v28  ;;  %653 = vmatpush.bf16.msra.mxu2 %v586_v28 }
  0x19   :  { %171 = vmatpush.bf16.msra.mxu1 %v590_v29  ;;  %661 = vmatpush.bf16.msra.mxu3 %v590_v29 }
  0x1c   :  { %153 = vmatpush.bf16.msra.mxu0 %v578_v34  ;;  %654 = vmatpush.bf16.msra.mxu2 %v578_v34 }
  0x1d   :  { %172 = vmatpush.bf16.msra.mxu1 %v582_v35  ;;  %662 = vmatpush.bf16.msra.mxu3 %v582_v35 }
  0x20   :  { %154 = vmatpush.bf16.msra.mxu0 %v570_v40  ;;  %655 = vmatpush.bf16.msra.mxu2 %v570_v40 }
  0x21   :  { %173 = vmatpush.bf16.msra.mxu1 %v574_v41  ;;  %663 = vmatpush.bf16.msra.mxu3 %v574_v41 }
  0x24   :  { %155 = vmatpush.bf16.msra.mxu0 %v562_v46  ;;  %656 = vmatpush.bf16.msra.mxu2 %v562_v46 }
  0x25   :  { %174 = vmatpush.bf16.msra.mxu1 %v566_v47  ;;  %664 = vmatpush.bf16.msra.mxu3 %v566_v47 }
  0x27   :  { %156 = vmatmul.bf16.vlgmr.msra.gmra.mxu0 %v631_v48  ;;  %161 = vmatmul.bf16.vlgmr.msra.gmra.mxu2 %v632_v49 }
  0x28   :  { %175 = vmatmul.bf16.vlgmr.msra.gmra.mxu1 %v631_v48  ;;  %180 = vmatmul.bf16.vlgmr.msra.gmra.mxu3 %v632_v49 }
  0xa4   :  { %v157_v53 = vpop.f32.mrf.mxu0 }
  0xa5   :  { %v750_v54 = vadd.f32 %v157_v53, %v745_v51  ;;  %v176_v55 = vpop.f32.mrf.mxu1 }
  0xa6   :  { %v753_v56 = vadd.f32 %v176_v55, %v747_v52 }
  0xa7   :  { %v756_v57 = vmul.f32 0.70710677, %v750_v54 }
  0xa8   :  { %v759_v58 = vmul.f32 0.70710677, %v753_v56 }
  0xa9   :  { %v202_v59 = vmul.f32 %v756_v57, %v756_v57 }
  0xaa   :  { %v242_v60 = vmul.f32 %v759_v58, %v759_v58  ;;  %v162_v61 = vpop.f32.mrf.mxu2 }
  0xab   :  { %v203_v62 = vmin.f32 %v202_v59, 16.0  ;;  %v766_v63 = vadd.f32 %v162_v61, %v745_v51  ;;  %v181_v0 = vpop.f32.mrf.mxu3 }
  0xac   :  { %v768_v1 = vmin.f32 %v242_v60, 16.0  ;;  %v771_v2 = vadd.f32 %v181_v0, %v747_v52  ;;  %v159_v8 = vpop.f32.mrf.mxu0 }
  0xad   :  { %v204_v3 = vmul.f32 2.1237322e-06, %v203_v62  ;;  %v215_v4 = vmul.f32 3.8918573e-05, %v203_v62  ;;  %v776_v7 = vmul.f32 0.70710677, %v766_v63  ;;  %v784_v17 = vadd.f32 %v159_v8, %v745_v51  ;;  %v178_v42 = vpop.f32.mrf.mxu1 }
  0xae   :  { %v244_v5 = vmul.f32 2.1237322e-06, %v768_v1  ;;  %v255_v6 = vmul.f32 3.8918573e-05, %v768_v1  ;;  %v781_v14 = vmul.f32 0.70710677, %v771_v2  ;;  %v808_v60 = vadd.f32 %v178_v42, %v747_v52 }
  0xaf   :  { %v205_v9 = vadd.f32 0.00028619796, %v204_v3  ;;  %v216_v10 = vadd.f32 0.001143296, %v215_v4  ;;  %v362_v13 = vmul.f32 %v776_v7, %v776_v7  ;;  %v799_v34 = vmul.f32 0.70710677, %v784_v17 }
  0xb0   :  { %v245_v11 = vadd.f32 0.00028619796, %v244_v5  ;;  %v256_v12 = vadd.f32 0.001143296, %v255_v6  ;;  %v402_v21 = vmul.f32 %v781_v14, %v781_v14 }
  0xb1   :  { %v206_v15 = vmul.f32 %v205_v9, %v203_v62  ;;  %v217_v16 = vmul.f32 %v216_v10, %v203_v62  ;;  %v788_v20 = vmin.f32 %v362_v13, 16.0 }
  0xb2   :  { %v246_v18 = vmul.f32 %v245_v11, %v768_v1  ;;  %v257_v19 = vmul.f32 %v256_v12, %v768_v1  ;;  %v794_v30 = vmin.f32 %v402_v21, 16.0 }
  0xb3   :  { %v207_v22 = vadd.f32 0.0036580483, %v206_v15  ;;  %v218_v23 = vadd.f32 0.014752088, %v217_v16  ;;  %v364_v26 = vmul.f32 2.1237322e-06, %v788_v20  ;;  %v282_v16 = vmul.f32 %v799_v34, %v799_v34 }
  0xb4   :  { %v247_v24 = vadd.f32 0.0036580483, %v246_v18  ;;  %v258_v25 = vadd.f32 0.014752088, %v257_v19  ;;  %v375_v29 = vmul.f32 3.8918573e-05, %v788_v20 }
  0xb5   :  { %v208_v27 = vmul.f32 %v207_v22, %v203_v62  ;;  %v219_v28 = vmul.f32 %v218_v23, %v203_v62  ;;  %v365_v33 = vadd.f32 0.00028619796, %v364_v26  ;;  %v404_v41 = vmul.f32 2.1237322e-06, %v794_v30 }
  0xb6   :  { %v248_v31 = vmul.f32 %v247_v24, %v768_v1  ;;  %v259_v32 = vmul.f32 %v258_v25, %v768_v1  ;;  %v376_v37 = vadd.f32 0.001143296, %v375_v29  ;;  %v415_v46 = vmul.f32 3.8918573e-05, %v794_v30 }
  0xb7   :  { %v209_v35 = vadd.f32 0.05243302, %v208_v27  ;;  %v220_v36 = vadd.f32 0.112945676, %v219_v28  ;;  %v366_v40 = vmul.f32 %v365_v33, %v788_v20  ;;  %v405_v50 = vadd.f32 0.00028619796, %v404_v41 }
  0xb8   :  { %v249_v38 = vadd.f32 0.05243302, %v248_v31  ;;  %v260_v39 = vadd.f32 0.112945676, %v259_v32  ;;  %v377_v45 = vmul.f32 %v376_v37, %v788_v20  ;;  %v416_v9 = vadd.f32 0.001143296, %v415_v46 }
  0xb9   :  { %v210_v43 = vmul.f32 %v209_v35, %v203_v62  ;;  %v221_v44 = vmul.f32 %v220_v36, %v203_v62  ;;  %v367_v49 = vadd.f32 0.0036580483, %v366_v40  ;;  %v406_v4 = vmul.f32 %v405_v50, %v794_v30 }
  0xba   :  { %v250_v47 = vmul.f32 %v249_v38, %v768_v1  ;;  %v261_v48 = vmul.f32 %v260_v39, %v768_v1  ;;  %v378_v59 = vadd.f32 0.014752088, %v377_v45  ;;  %v417_v21 = vmul.f32 %v416_v9, %v794_v30 }
  0xbb   :  { %v211_v53 = vadd.f32 0.18741608, %v210_v43  ;;  %v222_v55 = vadd.f32 0.4994258, %v221_v44  ;;  %v368_v3 = vmul.f32 %v367_v49, %v788_v20  ;;  %v407_v12 = vadd.f32 0.0036580483, %v406_v4 }
  0xbc   :  { %v251_v61 = vadd.f32 0.18741608, %v250_v47  ;;  %v262_v0 = vadd.f32 0.4994258, %v261_v48  ;;  %v379_v8 = vmul.f32 %v378_v59, %v788_v20  ;;  %v826_v26 = vmin.f32 %v282_v16, 16.0 }
  0xbd   :  { %v212_v5 = vmul.f32 %v211_v53, %v203_v62  ;;  %v223_v6 = vmul.f32 %v222_v55, %v203_v62  ;;  %v369_v11 = vadd.f32 0.05243302, %v368_v3  ;;  %v821_v62 = vmul.f32 0.70710677, %v808_v60 }
  0xbe   :  { %v263_v10 = vmul.f32 %v262_v0, %v768_v1  ;;  %v252_v15 = vmul.f32 %v251_v61, %v768_v1  ;;  %v380_v19 = vadd.f32 0.112945676, %v379_v8  ;;  %v408_v24 = vmul.f32 %v407_v12, %v794_v30  ;;  %v164_v1 = vpop.f32.mrf.mxu2 }
  0xbf   :  { %v224_v13 = vadd.f32 1.0, %v223_v6  ;;  %v213_v22 = vadd.f32 1.1283791, %v212_v5  ;;  %v370_v23 = vmul.f32 %v369_v11, %v788_v20  ;;  %v829_v27 = vmul.f32 0.5, %v750_v54 }
  0xc0   :  { %v817_v18 = vadd.f32 1.0, %v263_v10  ;;  %v253_v25 = vadd.f32 1.1283791, %v252_v15  ;;  %v832_v28 = vmul.f32 0.5, %v753_v56  ;;  %v381_v29 = vmul.f32 %v380_v19, %v788_v20 }
  0xc1   :  { %668 = vrcp.f32 %v224_v13  ;;  %v418_v31 = vadd.f32 0.014752088, %v417_v21  ;;  %v214_v32 = vmul.f32 %v213_v22, %v756_v57  ;;  %v234_v33 = vand.u32 2147483647, %v224_v13 }
  0xc2   :  { %670 = vrcp.f32 %v817_v18  ;;  %v322_v35 = vmul.f32 %v821_v62, %v821_v62  ;;  %v839_v36 = vadd.f32 %v164_v1, %v745_v51  ;;  %v371_v37 = vadd.f32 0.18741608, %v370_v23 }
  0xc3   :  { %v382_v38 = vadd.f32 0.4994258, %v381_v29  ;;  %v409_v39 = vadd.f32 0.05243302, %v408_v24  ;;  %v419_v54 = vmul.f32 %v418_v31, %v794_v30  ;;  %vm230_vm0 = vweird.f32 %v224_v13 }
  0xc4   :  { %v236_v56 = vand.u32 2147483648, %v224_v13  ;;  %v254_v41 = vmul.f32 %v253_v25, %v759_v58  ;;  %v295_v42 = vmul.f32 3.8918573e-05, %v826_v26  ;;  %vm270_vm1 = vweird.f32 %v817_v18 }
  0xc5   :  { %v383_v44 = vmul.f32 %v382_v38, %v788_v20  ;;  %v284_v51 = vmul.f32 2.1237322e-06, %v826_v26  ;;  %vm847_vm2 = vcmp.eq.f32.partialorder %v234_v33, 8.507059e+37  ;;  %v276_v47 = vand.u32 2147483648, %v817_v18 }
  0xc6   :  { %v420_v48 = vadd.f32 0.112945676, %v419_v54  ;;  %v372_v49 = vmul.f32 %v371_v37, %v788_v20  ;;  %v410_v53 = vmul.f32 %v409_v39, %v794_v30  ;;  %v296_v61 = vadd.f32 0.001143296, %v295_v42 }
  0xc7   :  { %v669_v40 = vpop.eup %668  ;;  %v854_v50 = vadd.f32 1.0, %v383_v44  ;;  %v858_v0 = vmin.f32 %v322_v35, 16.0  ;;  %v285_v4 = vadd.f32 0.00028619796, %v284_v51  ;;  %v274_v6 = vand.u32 2147483647, %v817_v18 }
  0xc8   :  { %v671_v57 = vpop.eup %670  ;;  %v226_v43 = vmul.f32 %v669_v40, %v224_v13  ;;  %v421_v59 = vmul.f32 %v420_v48, %v794_v30  ;;  %vm231_vm3 = vweird.f32 %v669_v40  ;;  %v237_v9 = vor.u32 1.1754944e-38, %v236_v56 }
  0xc9   :  { %v266_v46 = vmul.f32 %v671_v57, %v817_v18  ;;  %672 = vrcp.f32 %v854_v50  ;;  %vm271_vm4 = vweird.f32 %v671_v57  ;;  %v373_v10 = vadd.f32 1.1283791, %v372_v49  ;;  %vm232_vm5 = vmor %vm230_vm0, %vm231_vm3 }
  0xca   :  { %v227_v58 = vsub.f32 1.0, %v226_v43  ;;  %v422_v20 = vadd.f32 0.4994258, %v421_v59  ;;  %v297_v11 = vmul.f32 %v296_v61, %v826_v26  ;;  %v277_v15 = vor.u32 1.1754944e-38, %v276_v47  ;;  %vm272_vm6 = vmor %vm270_vm1, %vm271_vm4 }
  0xcb   :  { %v267_v55 = vsub.f32 1.0, %v266_v46  ;;  %v324_v19 = vmul.f32 2.1237322e-06, %v858_v0  ;;  %v411_v22 = vadd.f32 0.18741608, %v410_v53  ;;  %v286_v23 = vmul.f32 %v285_v4, %v826_v26 }
  0xcc   :  { %v228_v3 = vmul.f32 %v669_v40, %v227_v58  ;;  %v423_v16 = vmul.f32 %v422_v20, %v794_v30  ;;  %v298_v24 = vadd.f32 0.014752088, %v297_v11  ;;  %vm275_vm7 = vcmp.eq.f32.partialorder %v274_v6, 8.507059e+37 }
  0xcd   :  { %v268_v5 = vmul.f32 %v671_v57, %v267_v55  ;;  %v374_v35 = vmul.f32 %v373_v10, %v776_v7  ;;  %v325_v39 = vadd.f32 0.00028619796, %v324_v19  ;;  %v287_v56 = vadd.f32 0.0036580483, %v286_v23 }
  0xce   :  { %v229_v8 = vadd.f32 %v669_v40, %v228_v3  ;;  %v871_v13 = vadd.f32 1.0, %v423_v16  ;;  %v299_v37 = vmul.f32 %v298_v24, %v826_v26  ;;  %v335_v42 = vmul.f32 3.8918573e-05, %v858_v0 }
  0xcf   :  { %v269_v12 = vadd.f32 %v671_v57, %v268_v5  ;;  %v673_v29 = vpop.eup %672  ;;  %vm390_vm8 = vweird.f32 %v854_v50  ;;  %v396_v44 = vand.u32 2147483648, %v854_v50  ;;  %v288_v58 = vmul.f32 %v287_v56, %v826_v26 }
  0xd0   :  { %v233_v21 = vsel %vm232_vm5, %v669_v40, %v229_v8  ;;  %v386_v38 = vmul.f32 %v673_v29, %v854_v50  ;;  %674 = vrcp.f32 %v871_v13  ;;  %v412_v40 = vmul.f32 %v411_v22, %v794_v30 }
  0xd1   :  { %v238_v1 = vsel %vm847_vm2, %v237_v9, %v233_v21  ;;  %v273_v25 = vsel %vm272_vm6, %v671_v57, %v269_v12  ;;  %vm391_vm9 = vweird.f32 %v673_v29  ;;  %v326_v30 = vmul.f32 %v325_v39, %v858_v0  ;;  %v183_v21 = vpop.f32.mrf.mxu3 }
  0xd2   :  { %v239_v31 = vmul.f32 %v238_v1, %v214_v32  ;;  %v278_v33 = vsel %vm275_vm7, %v277_v15, %v273_v25  ;;  %v387_v43 = vsub.f32 1.0, %v386_v38  ;;  %v300_v32 = vadd.f32 0.112945676, %v299_v37  ;;  %vm392_vm10 = vmor %vm390_vm8, %vm391_vm9 }
  0xd3   :  { %v279_v18 = vmul.f32 %v278_v33, %v254_v41  ;;  %v394_v41 = vand.u32 2147483647, %v854_v50  ;;  %v413_v48 = vadd.f32 1.1283791, %v412_v40  ;;  %v336_v49 = vadd.f32 0.001143296, %v335_v42 }
  0xd4   :  { %v623_v54 = vclamps-f32 %v239_v31, 1.0  ;;  %v388_v45 = vmul.f32 %v673_v29, %v387_v43  ;;  %v301_v46 = vmul.f32 %v300_v32, %v826_v26  ;;  %v888_v3 = vmul.f32 0.70710677, %v839_v36 }
  0xd5   :  { %v624_v57 = vclamps-f32 %v279_v18, 1.0  ;;  %vm395_vm11 = vcmp.eq.f32.partialorder %v394_v41, 8.507059e+37  ;;  %v397_v4 = vor.u32 1.1754944e-38, %v396_v44  ;;  %v337_v5 = vmul.f32 %v336_v49, %v858_v0 }
  0xd6   :  { %v522_v7 = vadd.f32 1.0, %v623_v54  ;;  %v675_v53 = vpop.eup %674  ;;  %v389_v59 = vadd.f32 %v673_v29, %v388_v45  ;;  %v302_v61 = vadd.f32 0.4994258, %v301_v46  ;;  %v289_v11 = vadd.f32 0.05243302, %v288_v58 }
  0xd7   :  { %v523_v51 = vadd.f32 1.0, %v624_v57  ;;  %v338_v12 = vadd.f32 0.014752088, %v337_v5  ;;  %v436_v15 = vand.u32 2147483648, %v871_v13  ;;  %v442_v19 = vmul.f32 %v888_v3, %v888_v3 }
  0xd8   :  { %v530_v47 = vmul.f32 %v522_v7, %v829_v27  ;;  %v426_v27 = vmul.f32 %v675_v53, %v871_v13  ;;  %v393_v20 = vsel %vm392_vm10, %v673_v29, %v389_v59  ;;  %v303_v8 = vmul.f32 %v302_v61, %v826_v26 }
  0xd9   :  { %v531_v55 = vmul.f32 %v523_v51, %v832_v28  ;;  %v327_v28 = vadd.f32 0.0036580483, %v326_v30  ;;  %v398_v9 = vsel %vm395_vm11, %v397_v4, %v393_v20  ;;  %vm431_vm12 = vweird.f32 %v675_v53 }
  0xda   :  { %v427_v10 = vsub.f32 1.0, %v426_v27  ;;  %v399_v50 = vmul.f32 %v398_v9, %v374_v35  ;;  %v900_v16 = vadd.f32 1.0, %v303_v8  ;;  %v434_v23 = vand.u32 2147483647, %v871_v13 }
  0xdb   :  { %v538_v6 = vpack.c.bf16 %v531_v55, %v530_v47  ;;  %v339_v24 = vmul.f32 %v338_v12, %v858_v0  ;;  %vm430_vm13 = vweird.f32 %v871_v13  ;;  %v328_v1 = vmul.f32 %v327_v28, %v858_v0 }
  0xdc   :  { %v428_v22 = vmul.f32 %v675_v53, %v427_v10  ;;  %676 = vrcp.f32 %v900_v16  ;;  %v627_v25 = vclamps-f32 %v399_v50, 1.0  ;;  %v910_v33 = vadd.f32 %v183_v21, %v747_v52  ;;  %vm432_vm14 = vmor %vm430_vm13, %vm431_vm12 }
  0xdd   :  { %542 = vst [vmem:[%s974_s3] sm:$0xff] %v538_v6  ;;  %v340_v31 = vadd.f32 0.112945676, %v339_v24  ;;  %v437_v35 = vor.u32 1.1754944e-38, %v436_v15  ;;  %v290_v37 = vmul.f32 %v289_v11, %v826_v26  ;;  %v913_v18 = vmin.f32 %v442_v19, 16.0 }
  0xde   :  { %v429_v29 = vadd.f32 %v675_v53, %v428_v22  ;;  %v414_v38 = vmul.f32 %v413_v48, %v781_v14  ;;  %vm435_vm15 = vcmp.eq.f32.partialorder %v434_v23, 8.507059e+37  ;;  %v329_v40 = vadd.f32 0.05243302, %v328_v1 }
  0xdf   :  { %v341_v13 = vmul.f32 %v340_v31, %v858_v0  ;;  %v444_v56 = vmul.f32 2.1237322e-06, %v913_v18  ;;  %v455_v42 = vmul.f32 3.8918573e-05, %v913_v18  ;;  %v526_v52 = vadd.f32 1.0, %v627_v25 }
  0xe0   :  { %v433_v39 = vsel %vm432_vm14, %v675_v53, %v429_v29  ;;  %v920_v32 = vmul.f32 0.70710677, %v910_v33  ;;  %v291_v41 = vadd.f32 0.18741608, %v290_v37  ;;  %v190_v14 = vmul.f32 0.5, %v766_v63 }
  0xe1   :  { %v438_v54 = vsel %vm435_vm15, %v437_v35, %v433_v39  ;;  %v342_v43 = vadd.f32 0.4994258, %v341_v13  ;;  %v456_v44 = vadd.f32 0.001143296, %v455_v42  ;;  %v445_v46 = vadd.f32 0.00028619796, %v444_v56 }
  0xe2   :  { %v439_v57 = vmul.f32 %v438_v54, %v414_v38  ;;  %v677_v7 = vpop.eup %676  ;;  %v191_v30 = vmul.f32 0.5, %v771_v2  ;;  %v482_v58 = vmul.f32 %v920_v32, %v920_v32  ;;  %v534_v49 = vmul.f32 %v526_v52, %v190_v14 }
  0xe3   :  { %v306_v45 = vmul.f32 %v677_v7, %v900_v16  ;;  %v343_v47 = vmul.f32 %v342_v43, %v858_v0  ;;  %v457_v48 = vmul.f32 %v456_v44, %v913_v18  ;;  %v330_v59 = vmul.f32 %v329_v40, %v858_v0 }
  0xe4   :  { %v628_v51 = vclamps-f32 %v439_v57, 1.0  ;;  %v292_v63 = vmul.f32 %v291_v41, %v826_v26  ;;  %v931_v27 = vmin.f32 %v482_v58, 16.0  ;;  %vm311_vm0 = vweird.f32 %v677_v7 }
  0xe5   :  { %v307_v55 = vsub.f32 1.0, %v306_v45  ;;  %v344_v61 = vadd.f32 1.0, %v343_v47  ;;  %v458_v4 = vadd.f32 0.014752088, %v457_v48  ;;  %v446_v6 = vmul.f32 %v445_v46, %v913_v18 }
  0xe6   :  { %v527_v53 = vadd.f32 1.0, %v628_v51  ;;  %vm310_vm1 = vweird.f32 %v900_v16  ;;  %v314_v20 = vand.u32 2147483647, %v900_v16  ;;  %v316_v8 = vand.u32 2147483648, %v900_v16 }
  0xe7   :  { %v308_v2 = vmul.f32 %v677_v7, %v307_v55  ;;  %678 = vrcp.f32 %v344_v61  ;;  %v331_v10 = vadd.f32 0.18741608, %v330_v59  ;;  %v459_v26 = vmul.f32 %v458_v4, %v913_v18  ;;  %vm312_vm2 = vmor %vm310_vm1, %vm311_vm0 }
  0xe8   :  { %v535_v5 = vmul.f32 %v527_v53, %v191_v30  ;;  %v293_v11 = vadd.f32 1.1283791, %v292_v63  ;;  %v484_v12 = vmul.f32 2.1237322e-06, %v931_v27  ;;  %v495_v50 = vmul.f32 3.8918573e-05, %v931_v27 }
  0xe9   :  { %v309_v9 = vadd.f32 %v677_v7, %v308_v2  ;;  %v447_v19 = vadd.f32 0.0036580483, %v446_v6  ;;  %v460_v21 = vadd.f32 0.112945676, %v459_v26  ;;  %v317_v16 = vor.u32 1.1754944e-38, %v316_v8 }
  0xea   :  { %v540_v28 = vpack.c.bf16 %v535_v5, %v534_v49  ;;  %v485_v22 = vadd.f32 0.00028619796, %v484_v12  ;;  %v496_v23 = vadd.f32 0.001143296, %v495_v50  ;;  %vm315_vm3 = vcmp.eq.f32.partialorder %v314_v20, 8.507059e+37 }
  0xeb   :  { %v313_v15 = vsel %vm312_vm2, %v677_v7, %v309_v9  ;;  %v332_v24 = vmul.f32 %v331_v10, %v858_v0  ;;  %v461_v1 = vmul.f32 %v460_v21, %v913_v18  ;;  %v294_v35 = vmul.f32 %v293_v11, %v799_v34 }
  0xec   :  { %544 = vst [vmem:[%s974_s3 + $0x10] sm:$0xff] %v540_v28  ;;  %v318_v29 = vsel %vm315_vm3, %v317_v16, %v313_v15  ;;  %v497_v31 = vmul.f32 %v496_v23, %v931_v27  ;;  %v448_v38 = vmul.f32 %v447_v19, %v913_v18  ;;  %v486_v39 = vmul.f32 %v485_v22, %v931_v27 }
  0xed   :  { %v679_v25 = vpop.eup %678  ;;  %v462_v13 = vadd.f32 0.4994258, %v461_v1  ;;  %v319_v40 = vmul.f32 %v318_v29, %v294_v35  ;;  %v333_v56 = vadd.f32 1.1283791, %v332_v24  ;;  %v354_v52 = vand.u32 2147483647, %v344_v61 }
  0xee   :  { %v346_v37 = vmul.f32 %v679_v25, %v344_v61  ;;  %v498_v54 = vadd.f32 0.014752088, %v497_v31  ;;  %v356_v0 = vand.u32 2147483648, %v344_v61  ;;  %vm351_vm4 = vweird.f32 %v679_v25 }
  0xef   :  { %v463_v57 = vmul.f32 %v462_v13, %v913_v18  ;;  %v449_v41 = vadd.f32 0.05243302, %v448_v38  ;;  %v487_v34 = vadd.f32 0.0036580483, %v486_v39  ;;  %v625_v51 = vclamps-f32 %v319_v40, 1.0 }
  0xf0   :  { %v347_v42 = vsub.f32 1.0, %v346_v37  ;;  %v499_v43 = vmul.f32 %v498_v54, %v931_v27  ;;  %vm350_vm5 = vweird.f32 %v344_v61  ;;  %v334_v46 = vmul.f32 %v333_v56, %v821_v62 }
  0xf1   :  { %v464_v44 = vadd.f32 1.0, %v463_v57  ;;  %vm352_vm6 = vmor %vm350_vm5, %vm351_vm4  ;;  %vm355_vm7 = vcmp.eq.f32.partialorder %v354_v52, 8.507059e+37  ;;  %v357_v30 = vor.u32 1.1754944e-38, %v356_v0  ;;  %v450_v48 = vmul.f32 %v449_v41, %v913_v18 }
  0xf2   :  { %v348_v7 = vmul.f32 %v679_v25, %v347_v42  ;;  %v500_v14 = vadd.f32 0.112945676, %v499_v43  ;;  %v488_v58 = vmul.f32 %v487_v34, %v931_v27  ;;  %v524_v55 = vadd.f32 1.0, %v625_v51 }
  0xf3   :  { %680 = vrcp.f32 %v464_v44  ;;  %v188_v4 = vmul.f32 0.5, %v784_v17  ;;  %v451_v5 = vadd.f32 0.18741608, %v450_v48  ;;  %v189_v8 = vmul.f32 0.5, %v808_v60 }
  0xf4   :  { %v349_v45 = vadd.f32 %v679_v25, %v348_v7  ;;  %v501_v49 = vmul.f32 %v500_v14, %v931_v27  ;;  %v489_v62 = vadd.f32 0.05243302, %v488_v58  ;;  %v476_v15 = vand.u32 2147483648, %v464_v44 }
  0xf5   :  { %v532_v20 = vmul.f32 %v524_v55, %v188_v4  ;;  %v452_v11 = vmul.f32 %v451_v5, %v913_v18  ;;  %v474_v21 = vand.u32 2147483647, %v464_v44  ;;  %vm470_vm9 = vweird.f32 %v464_v44 }
  0xf6   :  { %v353_v47 = vsel %vm352_vm6, %v679_v25, %v349_v45  ;;  %v502_v63 = vadd.f32 0.4994258, %v501_v49  ;;  %v490_v50 = vmul.f32 %v489_v62, %v931_v27  ;;  %v477_v23 = vor.u32 1.1754944e-38, %v476_v15 }
  0xf7   :  { %v358_v53 = vsel %vm355_vm7, %v357_v30, %v353_v47  ;;  %v453_v60 = vadd.f32 1.1283791, %v452_v11  ;;  %vm475_vm11 = vcmp.eq.f32.partialorder %v474_v21, 8.507059e+37  ;;  %v192_v43 = vmul.f32 0.5, %v839_v36 }
  0xf8   :  { %v359_v59 = vmul.f32 %v358_v53, %v334_v46  ;;  %v503_v2 = vmul.f32 %v502_v63, %v931_v27  ;;  %v491_v22 = vadd.f32 0.18741608, %v490_v50  ;;  %v193_v34 = vmul.f32 0.5, %v910_v33 }
  0xf9   :  { %v681_v6 = vpop.eup %680  ;;  %v454_v25 = vmul.f32 %v453_v60, %v888_v3 }
  0xfa   :  { %v626_v61 = vclamps-f32 %v359_v59, 1.0  ;;  %v466_v9 = vmul.f32 %v681_v6, %v464_v44  ;;  %v504_v10 = vadd.f32 1.0, %v503_v2  ;;  %vm471_vm8 = vweird.f32 %v681_v6 }
  0xfb   :  { %vm472_vm10 = vmor %vm470_vm9, %vm471_vm8  ;;  %v492_v29 = vmul.f32 %v491_v22, %v931_v27 }
  0xfc   :  { %v525_v28 = vadd.f32 1.0, %v626_v61  ;;  %v467_v12 = vsub.f32 1.0, %v466_v9  ;;  %682 = vrcp.f32 %v504_v10  ;;  %v516_v38 = vand.u32 2147483648, %v504_v10 }
  0xfd   :  { %v493_v39 = vadd.f32 1.1283791, %v492_v29  ;;  %v514_v54 = vand.u32 2147483647, %v504_v10  ;;  %vm510_vm13 = vweird.f32 %v504_v10 }
  0xfe   :  { %v533_v26 = vmul.f32 %v525_v28, %v189_v8  ;;  %v468_v19 = vmul.f32 %v681_v6, %v467_v12  ;;  %v517_v42 = vor.u32 1.1754944e-38, %v516_v38 }
  0xff   :  { %v494_v52 = vmul.f32 %v493_v39, %v920_v32  ;;  %vm515_vm15 = vcmp.eq.f32.partialorder %v514_v54, 8.507059e+37 }
 0x100   :  { %v539_v17 = vpack.c.bf16 %v533_v26, %v532_v20  ;;  %v469_v16 = vadd.f32 %v681_v6, %v468_v19 }
 0x102   :  { %543 = vst [vmem:[%s974_s3 + $0x8] sm:$0xff] %v539_v17  ;;  %v473_v18 = vsel %vm472_vm10, %v681_v6, %v469_v16  ;;  %v683_v24 = vpop.eup %682 }
 0x103   :  { %v478_v1 = vsel %vm475_vm11, %v477_v23, %v473_v18  ;;  %v506_v31 = vmul.f32 %v683_v24, %v504_v10  ;;  %vm511_vm12 = vweird.f32 %v683_v24 }
 0x104   :  { %v479_v35 = vmul.f32 %v478_v1, %v454_v25  ;;  %vm512_vm14 = vmor %vm510_vm13, %vm511_vm12 }
 0x105   :  { %v507_v37 = vsub.f32 1.0, %v506_v31 }
 0x106   :  { %v629_v40 = vclamps-f32 %v479_v35, 1.0 }
 0x107   :  { %v508_v13 = vmul.f32 %v683_v24, %v507_v37 }
 0x108   :  { %v528_v57 = vadd.f32 1.0, %v629_v40 }
 0x109   :  { %v509_v56 = vadd.f32 %v683_v24, %v508_v13 }
 0x10a   :  { %v536_v41 = vmul.f32 %v528_v57, %v192_v43 }
 0x10b   :  { %v513_v0 = vsel %vm512_vm14, %v683_v24, %v509_v56 }
 0x10c   :  { %v518_v3 = vsel %vm515_vm15, %v517_v42, %v513_v0 }
 0x10d   :  { %v519_v27 = vmul.f32 %v518_v3, %v494_v52 }
 0x10f   :  { %v630_v7 = vclamps-f32 %v519_v27, 1.0 }
 0x111   :  { %v529_v44 = vadd.f32 1.0, %v630_v7 }
 0x113   :  { %v537_v14 = vmul.f32 %v529_v44, %v193_v34 }
 0x115   :  { %v541_v51 = vpack.c.bf16 %v537_v14, %v536_v41 }
 0x117   :  { %545 = vst [vmem:[%s974_s3 + $0x18] sm:$0xff] %v541_v51 }
 0x118   :  { %550 = vsyncpa [#allocation3], 1 }

// kernel: super_bert_forward.21
= control target key start
LH: loop header
LB: loop body
LE: loop exit
PB: predicated region body
PF: predicated region fallthrough
CT: control target
= control target key end

     0   :  { %11 = vsyncpa [#allocation3], 0  ;;  %s525_s24 = smov [#allocation2]   ;;  %s526_s26 = smov 64   ;;  %s633_s0 = inlined_call_operand.vmem [shape: bf16[32,256], index: 0, kind: input, shape index: {}]   ;;  %s634_s1 = inlined_call_operand.hbm [shape: bf16[256,128], index: 1, kind: input, shape index: {}]   ;;  %s635_s2 = inlined_call_operand.vmem [shape: f32[1,128], index: 2, kind: input, shape index: {}]   ;;  %s636_s3 = inlined_call_operand.vmem [shape: bf16[32,128], index: 3, kind: input, shape index: {}]   ;;  %s637_s4 = inlined_call_operand.vmem [shape: f32[1,128], index: 4, kind: input, shape index: {}]   ;;  %s638_s5 = inlined_call_operand.vmem [shape: f32[1,128], index: 5, kind: input, shape index: {}]   ;;  %s639_s6 = inlined_call_operand.vmem [shape: f32[32,128], index: 6, kind: output, shape index: {}]  }
   0x1   :  { %s18_s23 = sshll.u32 %s634_s1, 4  ;;  %s20_s25 = sshll.u32 %s525_s24, 4  ;;  %s19_s23 = int_to_ptr.hbm [resolvable:$true] %s18_s23  ;;  %s21_s25 = int_to_ptr.vmem [resolvable:$true] %s20_s25 }
   0x2   :  { %s527_s27 = smov 4  }
   0x3   :  { %26 = dma.hbm_to_vmem [thread:$0]  %s19_s23, 2048, %s21_s25, [#allocation3], %s526_s26, %s526_s26, %s527_s27  }
   0x4   :  { %523 = dma.done.wait [#allocation3], 2048  }
   0x5   :  { %524 = vsyncadd [#allocation3], 4294965248  ;;  %v448_v0 = vld [vmem:[#allocation2 + $0x38] sm:$0xff]  ;;  %v447_v2 = vld [vmem:[#allocation2 + $0x30] sm:$0xff]  ;;  %v528_v55 = vmov 128.0  }
   0x6   :  { %v456_v1 = vld [vmem:[#allocation2 + $0x78] sm:$0xff]  ;;  %195 = vmatpush.bf16.msra.mxu0 %v448_v0  ;;  %466 = vmatpush.bf16.msra.mxu2 %v448_v0  ;;  %v455_v3 = vld [vmem:[#allocation2 + $0x70] sm:$0xff]  ;;  %v446_v4 = vld [vmem:[#allocation2 + $0x28] sm:$0xff]  ;;  %489 = vrcp.f32 %v528_v55 }
   0x7   :  { %214 = vmatpush.bf16.msra.mxu1 %v456_v1  ;;  %474 = vmatpush.bf16.msra.mxu3 %v456_v1  ;;  %v454_v5 = vld [vmem:[#allocation2 + $0x68] sm:$0xff]  ;;  %v445_v6 = vld [vmem:[#allocation2 + $0x20] sm:$0xff]  ;;  %v444_v8 = vld [vmem:[#allocation2 + $0x18] sm:$0xff] }
   0x8   :  { %v453_v7 = vld [vmem:[#allocation2 + $0x60] sm:$0xff]  ;;  %v452_v9 = vld [vmem:[#allocation2 + $0x58] sm:$0xff]  ;;  %v443_v10 = vld [vmem:[#allocation2 + $0x10] sm:$0xff] }
   0x9   :  { %v451_v11 = vld [vmem:[#allocation2 + $0x50] sm:$0xff]  ;;  %v442_v12 = vld [vmem:[#allocation2 + $0x8] sm:$0xff]  ;;  %v441_v14 = vld [vmem:[#allocation2] sm:$0xff] }
   0xa   :  { %196 = vmatpush.bf16.msra.mxu0 %v447_v2  ;;  %467 = vmatpush.bf16.msra.mxu2 %v447_v2  ;;  %v450_v13 = vld [vmem:[#allocation2 + $0x48] sm:$0xff]  ;;  %v449_v15 = vld [vmem:[#allocation2 + $0x40] sm:$0xff]  ;;  %v367_v18 = vld [vmem:[%s633_s0 + $0x10] sm:$0xf] }
   0xb   :  { %215 = vmatpush.bf16.msra.mxu1 %v455_v3  ;;  %475 = vmatpush.bf16.msra.mxu3 %v455_v3  ;;  %v359_v16 = vld [vmem:[%s633_s0] sm:$0xf]  ;;  %v438_v17 = vld [vmem:[%s633_s0 + $0x4] sm:$0xf0]  ;;  %v440_v19 = vld [vmem:[%s633_s0 + $0x14] sm:$0xf0] }
   0xc   :  { %v437_v20 = vld [vmem:[%s633_s0 + $0x4] sm:$0xf]  ;;  %v361_v21 = vld [vmem:[%s633_s0 + $0x8] sm:$0xf0]  ;;  %v439_v22 = vld [vmem:[%s633_s0 + $0x14] sm:$0xf]  ;;  %v360_v24 = vor.u32 %v438_v17, %v359_v16  ;;  %v368_v25 = vor.u32 %v440_v19, %v367_v18  ;;  %v490_v56 = vpop.eup %489 }
   0xd   :  { %v369_v23 = vld [vmem:[%s633_s0 + $0x18] sm:$0xf0]  ;;  %v364_v26 = vor.u32 %v437_v20, %v361_v21  ;;  %v486_v28 = vld [vmem:[%s635_s2] ss:$0 sm:$0xff]  ;;  %v465_v35 = vld [vmem:[%s636_s3 + $0x8] sm:$0xff]   ;;  %v254_v57 = vmul.f32 128.0, %v490_v56  ;;  %vm258_vm0 = vweird.f32 %v490_v56 }
   0xe   :  { %197 = vmatpush.bf16.msra.mxu0 %v446_v4  ;;  %468 = vmatpush.bf16.msra.mxu2 %v446_v4  ;;  %v372_v27 = vor.u32 %v439_v22, %v369_v23  ;;  %v458_v29 = vld [vmem:[%s636_s3] sm:$0xff]   ;;  %v463_v40 = vunpack.c.l.bf16 %v465_v35  ;;  %v464_v51 = vunpack.c.h.bf16 %v465_v35 }
   0xf   :  { %216 = vmatpush.bf16.msra.mxu1 %v454_v5  ;;  %476 = vmatpush.bf16.msra.mxu3 %v454_v5  ;;  %v459_v33 = vunpack.c.l.bf16 %v458_v29  ;;  %v460_v44 = vunpack.c.h.bf16 %v458_v29  ;;  %v255_v58 = vsub.f32 1.0, %v254_v57 }
  0x11   :  { %v256_v59 = vmul.f32 %v490_v56, %v255_v58 }
  0x12   :  { %198 = vmatpush.bf16.msra.mxu0 %v445_v6  ;;  %469 = vmatpush.bf16.msra.mxu2 %v445_v6 }
  0x13   :  { %217 = vmatpush.bf16.msra.mxu1 %v453_v7  ;;  %477 = vmatpush.bf16.msra.mxu3 %v453_v7  ;;  %v257_v60 = vadd.f32 %v490_v56, %v256_v59 }
  0x15   :  { %v259_v61 = vsel %vm258_vm0, %v490_v56, %v257_v60 }
  0x16   :  { %199 = vmatpush.bf16.msra.mxu0 %v444_v8  ;;  %470 = vmatpush.bf16.msra.mxu2 %v444_v8 }
  0x17   :  { %218 = vmatpush.bf16.msra.mxu1 %v452_v9  ;;  %478 = vmatpush.bf16.msra.mxu3 %v452_v9 }
  0x1a   :  { %200 = vmatpush.bf16.msra.mxu0 %v443_v10  ;;  %471 = vmatpush.bf16.msra.mxu2 %v443_v10 }
  0x1b   :  { %219 = vmatpush.bf16.msra.mxu1 %v451_v11  ;;  %479 = vmatpush.bf16.msra.mxu3 %v451_v11 }
  0x1e   :  { %201 = vmatpush.bf16.msra.mxu0 %v442_v12  ;;  %472 = vmatpush.bf16.msra.mxu2 %v442_v12 }
  0x1f   :  { %220 = vmatpush.bf16.msra.mxu1 %v450_v13  ;;  %480 = vmatpush.bf16.msra.mxu3 %v450_v13 }
  0x22   :  { %202 = vmatpush.bf16.msra.mxu0 %v441_v14  ;;  %473 = vmatpush.bf16.msra.mxu2 %v441_v14 }
  0x23   :  { %221 = vmatpush.bf16.msra.mxu1 %v449_v15  ;;  %481 = vmatpush.bf16.msra.mxu3 %v449_v15 }
  0x25   :  { %203 = vmatmul.bf16.vlgmr.msra.gmra.mxu0 %v360_v24  ;;  %208 = vmatmul.bf16.vlgmr.msra.gmra.mxu2 %v368_v25 }
  0x26   :  { %222 = vmatmul.bf16.vlgmr.msra.gmra.mxu1 %v364_v26  ;;  %227 = vmatmul.bf16.vlgmr.msra.gmra.mxu3 %v372_v27 }
  0xa2   :  { %v204_v30 = vpop.f32.mrf.mxu0 }
  0xa3   :  { %v205_v31 = vadd.f32 %v486_v28, %v204_v30  ;;  %v223_v32 = vpop.f32.mrf.mxu1 }
  0xa5   :  { %v224_v34 = vadd.f32 %v223_v32, %v205_v31 }
  0xa7   :  { %v241_v36 = vadd.f32 %v459_v33, %v224_v34 }
  0xa8   :  { %v209_v37 = vpop.f32.mrf.mxu2 }
  0xa9   :  { %v210_v38 = vadd.f32 %v486_v28, %v209_v37  ;;  %v228_v39 = vpop.f32.mrf.mxu3  ;;  %245 = vadd.xlane.f32.xlu0 %v241_v36  ;;  %v487_v37 = vld [vmem:[%s637_s4] ss:$0 sm:$0xff] }
  0xaa   :  { %v206_v41 = vpop.f32.mrf.mxu0 }
  0xab   :  { %v229_v42 = vadd.f32 %v228_v39, %v210_v38  ;;  %v207_v43 = vadd.f32 %v486_v28, %v206_v41  ;;  %v225_v45 = vpop.f32.mrf.mxu1  ;;  %v488_v41 = vld [vmem:[%s638_s5] ss:$0 sm:$0xff] }
  0xad   :  { %v226_v46 = vadd.f32 %v225_v45, %v207_v43  ;;  %v243_v47 = vadd.f32 %v463_v40, %v229_v42 }
  0xaf   :  { %249 = vadd.xlane.f32.xlu1 %v243_v47  ;;  %v242_v48 = vadd.f32 %v460_v44, %v226_v46 }
  0xb0   :  { %v211_v49 = vpop.f32.mrf.mxu2 }
  0xb1   :  { %v212_v50 = vadd.f32 %v486_v28, %v211_v49  ;;  %247 = vadd.xlane.f32.xlu0 %v242_v48  ;;  %v230_v52 = vpop.f32.mrf.mxu3 }
  0xb3   :  { %v231_v53 = vadd.f32 %v230_v52, %v212_v50 }
  0xb5   :  { %v244_v54 = vadd.f32 %v464_v51, %v231_v53 }
  0xb7   :  { %251 = vadd.xlane.f32.xlu1 %v244_v54 }
 0x11c   :  { %v246_v62 = vpop.xlane.xlu0 %245 }
 0x11d   :  { %v260_v63 = vmul.f32 %v259_v61, %v246_v62 }
 0x11f   :  { %v264_v0 = vsub.f32 %v241_v36, %v260_v63 }
 0x121   :  { %v268_v1 = vmul.f32 %v264_v0, %v264_v0 }
 0x122   :  { %v250_v2 = vpop.xlane.xlu1 %249 }
 0x123   :  { %v262_v3 = vmul.f32 %v259_v61, %v250_v2  ;;  %272 = vadd.xlane.f32.xlu2 %v268_v1 }
 0x124   :  { %v248_v4 = vpop.xlane.xlu0 %247 }
 0x125   :  { %v600_v5 = vsub.f32 %v243_v47, %v262_v3  ;;  %v261_v6 = vmul.f32 %v259_v61, %v248_v4 }
 0x127   :  { %v602_v7 = vsub.f32 %v242_v48, %v261_v6  ;;  %v270_v8 = vmul.f32 %v600_v5, %v600_v5 }
 0x129   :  { %276 = vadd.xlane.f32.xlu0 %v270_v8  ;;  %v269_v9 = vmul.f32 %v602_v7, %v602_v7 }
 0x12a   :  { %v252_v10 = vpop.xlane.xlu1 %251 }
 0x12b   :  { %v263_v11 = vmul.f32 %v259_v61, %v252_v10  ;;  %274 = vadd.xlane.f32.xlu2 %v269_v9 }
 0x12d   :  { %v608_v12 = vsub.f32 %v244_v54, %v263_v11 }
 0x12f   :  { %v271_v13 = vmul.f32 %v608_v12, %v608_v12 }
 0x131   :  { %278 = vadd.xlane.f32.xlu1 %v271_v13 }
 0x196   :  { %v273_v14 = vpop.xlane.xlu2 %272 }
 0x197   :  { %v280_v15 = vmul.f32 %v273_v14, %v259_v61 }
 0x199   :  { %v284_v16 = vadd.f32 1e-12, %v280_v15 }
 0x19b   :  { %491 = vrsqrt.f32 %v284_v16  ;;  %vm294_vm2 = vweird.f32 %v284_v16 }
 0x19c   :  { %v277_v17 = vpop.xlane.xlu0 %276 }
 0x19d   :  { %v282_v18 = vmul.f32 %v277_v17, %v259_v61 }
 0x19e   :  { %v275_v19 = vpop.xlane.xlu2 %274 }
 0x19f   :  { %v286_v20 = vadd.f32 1e-12, %v282_v18  ;;  %v281_v21 = vmul.f32 %v275_v19, %v259_v61 }
 0x1a1   :  { %v492_v22 = vpop.eup %491  ;;  %493 = vrsqrt.f32 %v286_v20  ;;  %v285_v23 = vadd.f32 1e-12, %v281_v21  ;;  %vm314_vm5 = vweird.f32 %v286_v20 }
 0x1a2   :  { %v289_v24 = vmul.f32 %v492_v22, %v284_v16  ;;  %vm295_vm1 = vweird.f32 %v492_v22 }
 0x1a3   :  { %495 = vrsqrt.f32 %v285_v23  ;;  %vm296_vm3 = vmor %vm294_vm2, %vm295_vm1  ;;  %vm304_vm8 = vweird.f32 %v285_v23 }
 0x1a4   :  { %v290_v25 = vmul.f32 %v492_v22, %v289_v24  ;;  %v279_v26 = vpop.xlane.xlu1 %278 }
 0x1a5   :  { %v283_v27 = vmul.f32 %v279_v26, %v259_v61 }
 0x1a6   :  { %v291_v28 = vmul.f32 0.5, %v290_v25 }
 0x1a7   :  { %v494_v29 = vpop.eup %493  ;;  %v287_v30 = vadd.f32 1e-12, %v283_v27 }
 0x1a8   :  { %v292_v31 = vsub.f32 1.5, %v291_v28  ;;  %v309_v32 = vmul.f32 %v494_v29, %v286_v20  ;;  %vm315_vm4 = vweird.f32 %v494_v29 }
 0x1a9   :  { %v496_v33 = vpop.eup %495  ;;  %497 = vrsqrt.f32 %v287_v30  ;;  %vm316_vm7 = vmor %vm314_vm5, %vm315_vm4  ;;  %vm324_vm11 = vweird.f32 %v287_v30 }
 0x1aa   :  { %v293_v34 = vmul.f32 %v492_v22, %v292_v31  ;;  %v310_v35 = vmul.f32 %v494_v29, %v309_v32  ;;  %v299_v36 = vmul.f32 %v496_v33, %v285_v23  ;;  %vm305_vm6 = vweird.f32 %v496_v33 }
 0x1ab   :  { %vm306_vm9 = vmor %vm304_vm8, %vm305_vm6 }
 0x1ac   :  { %v297_v38 = vsel %vm296_vm3, %v492_v22, %v293_v34  ;;  %v311_v39 = vmul.f32 0.5, %v310_v35  ;;  %v300_v40 = vmul.f32 %v496_v33, %v299_v36 }
 0x1ad   :  { %v328_v42 = vmul.f32 %v297_v38, %v264_v0 }
 0x1ae   :  { %v312_v43 = vsub.f32 1.5, %v311_v39  ;;  %v301_v44 = vmul.f32 0.5, %v300_v40 }
 0x1af   :  { %v498_v45 = vpop.eup %497  ;;  %v336_v46 = vmul.f32 %v487_v37, %v328_v42 }
 0x1b0   :  { %v313_v47 = vmul.f32 %v494_v29, %v312_v43  ;;  %v302_v48 = vsub.f32 1.5, %v301_v44  ;;  %v319_v49 = vmul.f32 %v498_v45, %v287_v30  ;;  %vm325_vm10 = vweird.f32 %v498_v45 }
 0x1b1   :  { %v344_v50 = vadd.f32 %v488_v41, %v336_v46  ;;  %vm326_vm12 = vmor %vm324_vm11, %vm325_vm10 }
 0x1b2   :  { %v317_v51 = vsel %vm316_vm7, %v494_v29, %v313_v47  ;;  %v303_v52 = vmul.f32 %v496_v33, %v302_v48  ;;  %v320_v53 = vmul.f32 %v498_v45, %v319_v49 }
 0x1b3   :  { %348 = vst [vmem:[%s639_s6] sm:$0xff] %v344_v50  ;;  %v330_v54 = vmul.f32 %v317_v51, %v600_v5 }
 0x1b4   :  { %v307_v55 = vsel %vm306_vm9, %v496_v33, %v303_v52  ;;  %v321_v56 = vmul.f32 0.5, %v320_v53 }
 0x1b5   :  { %v338_v57 = vmul.f32 %v487_v37, %v330_v54  ;;  %v329_v58 = vmul.f32 %v307_v55, %v602_v7 }
 0x1b6   :  { %v322_v59 = vsub.f32 1.5, %v321_v56 }
 0x1b7   :  { %v346_v60 = vadd.f32 %v488_v41, %v338_v57  ;;  %v337_v61 = vmul.f32 %v487_v37, %v329_v58 }
 0x1b8   :  { %v323_v62 = vmul.f32 %v498_v45, %v322_v59 }
 0x1b9   :  { %350 = vst [vmem:[%s639_s6 + $0x10] sm:$0xff] %v346_v60  ;;  %v345_v63 = vadd.f32 %v488_v41, %v337_v61 }
 0x1ba   :  { %v327_v0 = vsel %vm326_vm12, %v498_v45, %v323_v62 }
 0x1bb   :  { %349 = vst [vmem:[%s639_s6 + $0x8] sm:$0xff] %v345_v63  ;;  %v331_v1 = vmul.f32 %v327_v0, %v608_v12 }
 0x1bd   :  { %v339_v2 = vmul.f32 %v487_v37, %v331_v1 }
 0x1bf   :  { %v347_v3 = vadd.f32 %v488_v41, %v339_v2 }
 0x1c1   :  { %351 = vst [vmem:[%s639_s6 + $0x18] sm:$0xff] %v347_v3 }
 0x1c2   :  { %356 = vsyncpa [#allocation3], 1 }

</bundles_post_ra>
